<compile_context>
chip_gen: v7x
topology: tpu7x:2x2x1
jax: 0.10.0
libtpu: 0.0.40
codegen_flags: <defaults>
</compile_context>

<pallas_src>
import functools

import jax
import jax.numpy as jnp
from jax.experimental import pallas as pl
from jax.experimental.pallas import tpu as pltpu


# ----------------------------------------------------------------------------
# Single fused kernel (grid-free).
# ----------------------------------------------------------------------------
def _fused_network_kernel(*refs, T, B, Bp, H, num_layers, num_head, head_dims):
    """Fused forward pass.

    Positional refs (inputs, output, scratch):
      x_ref        (T*Bp, E)            time-major, batch-padded embeddings
      wx0_ref      (E, 8H)              layer-0 input weights [fwd|bwd]
      wx_rest_ref  (L-1, 2H, 8H)        (only if num_layers > 1)
      wh_all_ref   (L, H, 8H)           recurrent weights [fwd|bwd]
      b_all_ref    (L, 8H)              b_ih + b_hh, [fwd|bwd]
      w_blob_ref   (sum fan_in, 128)    head weights packed row-block-wise
      b_blob_ref   (num_head, 128)      head biases (zero padded)
      out_ref      (Bp, 128)            padded output slab
      xp_scr       (T*Bp, 8H)           hoisted gate pre-activations (both dirs)
      seq_a/seq_b  (T*Bp, 2H)           per-layer bidirectional output (ping-pong)
    """
    f32 = jnp.float32
    H4 = 4 * H

    idx = 0

    def nxt():
        nonlocal idx
        r = refs[idx]
        idx += 1
        return r

    x_ref = nxt()
    wx0_ref = nxt()
    wx_rest_ref = nxt() if num_layers > 1 else None
    wh_all_ref = nxt()
    b_all_ref = nxt()
    w_blob_ref = nxt()
    b_blob_ref = nxt()
    out_ref = nxt()
    xp_scr = nxt()
    seq_bufs = (nxt(), nxt())

    src_seq = None
    s = None
    for layer in range(num_layers):
        # (H, 8H) = 8 vregs at H=32: safe to hoist out of the time loop.
        wh = wh_all_ref[layer]                               # (H, 8H)
        bias = b_all_ref[layer:layer + 1, :]                 # (1, 8H)

        # Hoisted input projection for BOTH directions in one big matmul.
        if layer == 0:
            xp_scr[...] = jnp.dot(x_ref[...], wx0_ref[...],
                                  preferred_element_type=f32) + bias
        else:
            wx = wx_rest_ref[layer - 1]                      # (2H, 8H)
            xp_scr[...] = jnp.dot(src_seq[...], wx,
                                  preferred_element_type=f32) + bias

        dst_seq = seq_bufs[layer % 2]

        # Interleaved bidirectional recurrence.  Carries are stacked
        # [fwd ; bwd] along sublanes: (2*Bp, H).  Time loop fully unrolled at
        # trace time (T is small & static here).
        h = jnp.zeros((2 * Bp, H), f32)
        c = jnp.zeros((2 * Bp, H), f32)
        s = jnp.zeros((2 * Bp, H), f32)                      # running time-sum
        for step in range(T):
            tf = step                                        # forward time index
            tb = T - 1 - step                                # backward time index
            xg = jnp.concatenate(
                [xp_scr[tf * Bp:(tf + 1) * Bp, :H4],
                 xp_scr[tb * Bp:(tb + 1) * Bp, H4:]], axis=0)        # (2Bp, 4H)
            # One fused recurrent matmul for both directions: (2Bp,H)x(H,8H).
            prod = jnp.dot(h, wh, preferred_element_type=f32)        # (2Bp, 8H)
            gates = xg + jnp.concatenate(
                [prod[:Bp, :H4], prod[Bp:, H4:]], axis=0)            # (2Bp, 4H)
            sig = jax.nn.sigmoid(gates)          # one pass over both directions
            ig = sig[:, 0 * H:1 * H]
            fg = sig[:, 1 * H:2 * H]
            og = sig[:, 3 * H:4 * H]
            gg = jnp.tanh(gates[:, 2 * H:3 * H])
            c = fg * c + ig * gg
            h = og * jnp.tanh(c)
            s = s + h
            # Store at original time index; fwd -> cols 0:H, bwd -> cols H:2H.
            dst_seq[tf * Bp:(tf + 1) * Bp, :H] = h[:Bp]
            dst_seq[tb * Bp:(tb + 1) * Bp, H:] = h[Bp:]
        src_seq = dst_seq

    # Temporal mean fused with the first head matmul:
    #   concat([mean_f, mean_b]) @ W1 == mean_f @ W1[:H] + mean_b @ W1[H:]
    inv_T = 1.0 / T
    sum_f = s[:Bp] * inv_T
    sum_b = s[Bp:] * inv_T
    r0, fin0, fout0 = head_dims[0]
    w1 = w_blob_ref[r0:r0 + fin0, :fout0]                    # (2H, H)
    b1 = b_blob_ref[0:1, :fout0]
    h0 = (jnp.dot(sum_f, w1[:H, :], preferred_element_type=f32)
          + jnp.dot(sum_b, w1[H:, :], preferred_element_type=f32) + b1)

    eps = 1e-5

    def bn_relu(v):
        # Train-mode BatchNorm1d (batch stats, gamma=1, beta=0) + ReLU.
        # Statistics over the TRUE batch rows only (padded rows excluded).
        vb = v[:B] if B < Bp else v
        mu = jnp.mean(vb, axis=0, keepdims=True)
        var = jnp.mean((vb - mu) ** 2, axis=0, keepdims=True)   # biased variance
        return jnp.maximum((v - mu) * jax.lax.rsqrt(var + eps), 0.0)

    hcur = bn_relu(h0)
    for li in range(1, num_head):
        r0, fin, fout = head_dims[li]
        w = w_blob_ref[r0:r0 + fin, :fout]
        b = b_blob_ref[li:li + 1, :fout]
        hcur = jnp.dot(hcur, w, preferred_element_type=f32) + b
        if li < num_head - 1:
            hcur = bn_relu(hcur)

    # Last head is lane-padded to 128 -> full unmasked (Bp, 128) tile store.
    out_ref[...] = hcur


# ----------------------------------------------------------------------------
# One-time parameter packing (transposes / bias sums / concats hoisted out of
# the per-call path; collapses 21 small operands into 6 blobs).
# ----------------------------------------------------------------------------
_LANES = 128


def pack_params(params, hidden_size):
    H = hidden_size
    packed = {"embedding": jnp.asarray(params["embedding"], jnp.float32)}

    wx0 = None
    wx_rest, wh_all, b_all = [], [], []
    for layer, dirs in enumerate(params["lstm"]):
        (wif, whf, bif, bhf), (wib, whb, bib, bhb) = dirs
        wx_cat = jnp.concatenate([wif.T, wib.T], axis=1).astype(jnp.float32)  # (E_in, 8H)
        wh_cat = jnp.concatenate([whf.T, whb.T], axis=1).astype(jnp.float32)  # (H, 8H)
        b_cat = jnp.concatenate([bif + bhf, bib + bhb]).astype(jnp.float32)   # (8H,)
        if layer == 0:
            wx0 = wx_cat
        else:
            wx_rest.append(wx_cat)
        wh_all.append(wh_cat)
        b_all.append(b_cat)
    packed["wx0"] = wx0
    packed["wx_rest"] = jnp.stack(wx_rest) if wx_rest else None
    packed["wh_all"] = jnp.stack(wh_all)                      # (L, H, 8H)
    packed["b_all"] = jnp.stack(b_all)                        # (L, 8H)

    head = params["linear"]
    num_head = len(head)
    dims = []
    rows = 0
    for li, (w, _) in enumerate(head):
        fan_out, fan_in = w.shape
        assert fan_out <= _LANES
        # Last head is lane-padded to 128 so the kernel output store is a full tile.
        out_w = _LANES if li == num_head - 1 else int(fan_out)
        dims.append((rows, int(fan_in), out_w))
        rows += int(fan_in)
    w_blob = jnp.zeros((rows, _LANES), jnp.float32)
    b_blob = jnp.zeros((num_head, _LANES), jnp.float32)
    for li, (w, b) in enumerate(head):
        fan_out, fan_in = w.shape
        r0 = dims[li][0]
        w_blob = w_blob.at[r0:r0 + fan_in, :fan_out].set(
            jnp.asarray(w.T, jnp.float32))
        b_blob = b_blob.at[li, :fan_out].set(jnp.asarray(b, jnp.float32))
    packed["w_blob"] = w_blob
    packed["b_blob"] = b_blob
    packed["head_dims"] = tuple(dims)                         # static metadata
    return packed


# ----------------------------------------------------------------------------
# Wrapper: embedding gather in XLA (time-major, batch padded to the 8-row
# sublane tile), one pallas_call, slice padded rows/lanes off the result.
# ----------------------------------------------------------------------------
def network_forward(tokens, packed, hidden_size, out_neuron):
    H = hidden_size
    B, T = tokens.shape
    Bp = max(8, ((B + 7) // 8) * 8)

    emb = packed["embedding"][tokens]                         # (B, T, E) gather
    emb = jnp.transpose(emb, (1, 0, 2))                       # (T, B, E) time-major
    if Bp != B:
        emb = jnp.pad(emb, ((0, 0), (0, Bp - B), (0, 0)))     # pad batch rows
    x = emb.reshape(T * Bp, -1).astype(jnp.float32)           # (T*Bp, E)
    # Dropout p=0 -> identity.

    num_layers = int(packed["wh_all"].shape[0])
    head_dims = packed["head_dims"]
    num_head = len(head_dims)

    args = [x, packed["wx0"]]
    if num_layers > 1:
        args.append(packed["wx_rest"])
    args += [packed["wh_all"], packed["b_all"],
             packed["w_blob"], packed["b_blob"]]

    kernel = functools.partial(
        _fused_network_kernel, T=T, B=B, Bp=Bp, H=H,
        num_layers=num_layers, num_head=num_head, head_dims=head_dims)

    scratch = [
        pltpu.VMEM((T * Bp, 8 * H), jnp.float32),             # fused fwd+bwd xproj
        pltpu.VMEM((T * Bp, 2 * H), jnp.float32),             # layer output (ping)
        pltpu.VMEM((T * Bp, 2 * H), jnp.float32),             # layer output (pong)
    ]
    in_specs = [pl.BlockSpec(memory_space=pltpu.MemorySpace.VMEM) for _ in args]
    out_spec = pl.BlockSpec(memory_space=pltpu.MemorySpace.VMEM)

    out = pl.pallas_call(
        kernel,
        out_shape=jax.ShapeDtypeStruct((Bp, _LANES), jnp.float32),
        in_specs=in_specs,
        out_specs=out_spec,
        scratch_shapes=scratch,
    )(*args)
    return out[:B, :out_neuron]


# ----------------------------------------------------------------------------
# Parameter construction (deterministic, PyTorch-like init shapes).
# ----------------------------------------------------------------------------
def init_params(key, in_neuron, num_layers, embedding_dim, hidden_size,
                out_neuron):
    H = hidden_size
    ks = iter(jax.random.split(key, 64))
    params = {}
    params["embedding"] = jax.random.normal(next(ks), (in_neuron, embedding_dim),
                                            jnp.float32)
    k_lstm = 1.0 / jnp.sqrt(H)
    lstm = []
    for layer in range(num_layers):
        in_dim = embedding_dim if layer == 0 else 2 * H
        dirs = []
        for _ in range(2):  # forward, reverse
            w_ih = jax.random.uniform(next(ks), (4 * H, in_dim), jnp.float32,
                                      -k_lstm, k_lstm)
            w_hh = jax.random.uniform(next(ks), (4 * H, H), jnp.float32,
                                      -k_lstm, k_lstm)
            b_ih = jax.random.uniform(next(ks), (4 * H,), jnp.float32,
                                      -k_lstm, k_lstm)
            b_hh = jax.random.uniform(next(ks), (4 * H,), jnp.float32,
                                      -k_lstm, k_lstm)
            dirs.append((w_ih, w_hh, b_ih, b_hh))
        lstm.append(dirs)
    params["lstm"] = lstm

    dims = [(2 * H, H), (H, H // 2), (H // 2, H // 4), (H // 4, out_neuron)]
    lin = []
    for (fan_in, fan_out) in dims:
        k = 1.0 / jnp.sqrt(fan_in)
        w = jax.random.uniform(next(ks), (fan_out, fan_in), jnp.float32, -k, k)
        b = jax.random.uniform(next(ks), (fan_out,), jnp.float32, -k, k)
        lin.append((w, b))
    params["linear"] = lin
    return params


if __name__ == "__main__":
    # Small, forward-consistent shapes.
    in_neuron = 32       # vocab size
    num_layers = 2
    embedding_dim = 16
    hidden_size = 32
    out_neuron = 4
    batch, seq_len = 4, 8

    key = jax.random.PRNGKey(0)
    k_param, k_tok = jax.random.split(key)
    params = init_params(k_param, in_neuron, num_layers, embedding_dim,
                         hidden_size, out_neuron)
    packed = pack_params(params, hidden_size)   # one-time parameter prep
    tokens = jax.random.randint(k_tok, (batch, seq_len), 0, in_neuron,
                                dtype=jnp.int32)

    out = network_forward(tokens, packed, hidden_size, out_neuron)
    out = jax.block_until_ready(out)
    assert out.shape == (batch, out_neuron) and out.dtype == jnp.float32
    print("KERNEL_OK")
</pallas_src>

<mosaic_0001>
module attributes {stable_mosaic.version = 11 : i64} {
  func.func @_fused_network_kernel(%arg0: memref<64x16xf32, #tpu.memory_space<vmem>>, %arg1: memref<16x256xf32, #tpu.memory_space<vmem>>, %arg2: memref<1x64x256xf32, #tpu.memory_space<vmem>>, %arg3: memref<2x32x256xf32, #tpu.memory_space<vmem>>, %arg4: memref<2x256xf32, #tpu.memory_space<vmem>>, %arg5: memref<120x128xf32, #tpu.memory_space<vmem>>, %arg6: memref<4x128xf32, #tpu.memory_space<vmem>>, %arg7: memref<8x128xf32, #tpu.memory_space<vmem>>, %arg8: memref<64x256xf32, #tpu.memory_space<vmem>>, %arg9: memref<64x64xf32, #tpu.memory_space<vmem>>, %arg10: memref<64x64xf32, #tpu.memory_space<vmem>>) attributes {dimension_semantics = [], scalar_prefetch = 0 : i64, scratch_operands = 3 : i64, tpu.core_type = #tpu.core_type<tc>} {
    %c0 = arith.constant 0 : index
    %c0_0 = arith.constant 0 : index
    %c0_1 = arith.constant 0 : index
    %0 = vector.load %arg3[%c0, %c0_0, %c0_1] : memref<2x32x256xf32, #tpu.memory_space<vmem>>, vector<1x32x256xf32>
    %1 = vector.shape_cast %0 : vector<1x32x256xf32> to vector<32x256xf32>
    %c0_2 = arith.constant 0 : index
    %c0_3 = arith.constant 0 : index
    %2 = vector.load %arg4[%c0_2, %c0_3] : memref<2x256xf32, #tpu.memory_space<vmem>>, vector<1x256xf32>
    %c0_4 = arith.constant 0 : index
    %c0_5 = arith.constant 0 : index
    %3 = vector.load %arg0[%c0_4, %c0_5] : memref<64x16xf32, #tpu.memory_space<vmem>>, vector<64x16xf32>
    %c0_6 = arith.constant 0 : index
    %c0_7 = arith.constant 0 : index
    %4 = vector.load %arg1[%c0_6, %c0_7] : memref<16x256xf32, #tpu.memory_space<vmem>>, vector<16x256xf32>
    %cst = arith.constant dense<0.000000e+00> : vector<64x256xf32>
    %5 = tpu.matmul %3, %4, %cst {dimension_numbers = #tpu.dot_dimension_numbers<[1], [0], [0], [1], [0, 0, 1, 1], [], []>} : vector<64x16xf32>, vector<16x256xf32>, vector<64x256xf32> -> vector<64x256xf32>
    %6 = vector.broadcast %2 : vector<1x256xf32> to vector<64x256xf32>
    %7 = arith.addf %5, %6 : vector<64x256xf32>
    %c0_8 = arith.constant 0 : index
    %c0_9 = arith.constant 0 : index
    %8 = vector.load %arg8[%c0_8, %c0_9] : memref<64x256xf32, #tpu.memory_space<vmem>>, vector<64x256xf32>
    tpu.vector_store %arg8[%c0_8, %c0_9], %7 {strides = array<i32>} : memref<64x256xf32, #tpu.memory_space<vmem>>, vector<64x256xf32>,
    %cst_10 = arith.constant 0.000000e+00 : f32
    %9 = vector.broadcast %cst_10 : f32 to vector<16x32xf32>
    %cst_11 = arith.constant 0.000000e+00 : f32
    %10 = vector.broadcast %cst_11 : f32 to vector<16x32xf32>
    %c0_12 = arith.constant 0 : index
    %c0_13 = arith.constant 0 : index
    %11 = vector.load %arg8[%c0_12, %c0_13] : memref<64x256xf32, #tpu.memory_space<vmem>>, vector<8x128xf32>
    %c56 = arith.constant 56 : index
    %c128 = arith.constant 128 : index
    %12 = vector.load %arg8[%c56, %c128] : memref<64x256xf32, #tpu.memory_space<vmem>>, vector<8x128xf32>
    %13 = tpu.concatenate %11, %12 in 0 : vector<8x128xf32>, vector<8x128xf32> -> vector<16x128xf32>
    %cst_14 = arith.constant dense<0.000000e+00> : vector<16x256xf32>
    %14 = tpu.matmul %9, %1, %cst_14 {dimension_numbers = #tpu.dot_dimension_numbers<[1], [0], [0], [1], [0, 0, 1, 1], [], []>} : vector<16x32xf32>, vector<32x256xf32>, vector<16x256xf32> -> vector<16x256xf32>
    %15 = vector.extract_strided_slice %14 {offsets = [0, 0], sizes = [8, 128], strides = [1, 1]} : vector<16x256xf32> to vector<8x128xf32>
    %16 = vector.extract_strided_slice %14 {offsets = [8, 128], sizes = [8, 128], strides = [1, 1]} : vector<16x256xf32> to vector<8x128xf32>
    %17 = tpu.concatenate %15, %16 in 0 : vector<8x128xf32>, vector<8x128xf32> -> vector<16x128xf32>
    %18 = arith.addf %13, %17 : vector<16x128xf32>
    %19 = arith.negf %18 : vector<16x128xf32>
    %20 = math.exp %19 : vector<16x128xf32>
    %cst_15 = arith.constant 1.000000e+00 : f32
    %21 = vector.broadcast %cst_15 : f32 to vector<16x128xf32>
    %22 = arith.addf %21, %20 : vector<16x128xf32>
    %23 = arith.divf %21, %22 : vector<16x128xf32>
    %24 = vector.extract_strided_slice %23 {offsets = [0, 0], sizes = [16, 32], strides = [1, 1]} : vector<16x128xf32> to vector<16x32xf32>
    %25 = vector.extract_strided_slice %23 {offsets = [0, 32], sizes = [16, 32], strides = [1, 1]} : vector<16x128xf32> to vector<16x32xf32>
    %26 = vector.extract_strided_slice %23 {offsets = [0, 96], sizes = [16, 32], strides = [1, 1]} : vector<16x128xf32> to vector<16x32xf32>
    %27 = vector.extract_strided_slice %18 {offsets = [0, 64], sizes = [16, 32], strides = [1, 1]} : vector<16x128xf32> to vector<16x32xf32>
    %28 = math.tanh %27 : vector<16x32xf32>
    %29 = arith.mulf %25, %10 : vector<16x32xf32>
    %30 = arith.mulf %24, %28 : vector<16x32xf32>
    %31 = arith.addf %29, %30 : vector<16x32xf32>
    %32 = math.tanh %31 : vector<16x32xf32>
    %33 = arith.mulf %26, %32 : vector<16x32xf32>
    %34 = vector.extract_strided_slice %33 {offsets = [0, 0], sizes = [8, 32], strides = [1, 1]} : vector<16x32xf32> to vector<8x32xf32>
    %c0_16 = arith.constant 0 : index
    %c0_17 = arith.constant 0 : index
    %35 = vector.load %arg9[%c0_16, %c0_17] : memref<64x64xf32, #tpu.memory_space<vmem>>, vector<8x32xf32>
    tpu.vector_store %arg9[%c0_16, %c0_17], %34 {strides = array<i32>} : memref<64x64xf32, #tpu.memory_space<vmem>>, vector<8x32xf32>,
    %36 = vector.extract_strided_slice %33 {offsets = [8, 0], sizes = [8, 32], strides = [1, 1]} : vector<16x32xf32> to vector<8x32xf32>
    %c56_18 = arith.constant 56 : index
    %c32 = arith.constant 32 : index
    %37 = vector.load %arg9[%c56_18, %c32] : memref<64x64xf32, #tpu.memory_space<vmem>>, vector<8x32xf32>
    tpu.vector_store %arg9[%c56_18, %c32], %36 {strides = array<i32>} : memref<64x64xf32, #tpu.memory_space<vmem>>, vector<8x32xf32>,
    %c8 = arith.constant 8 : index
    %c0_19 = arith.constant 0 : index
    %38 = vector.load %arg8[%c8, %c0_19] : memref<64x256xf32, #tpu.memory_space<vmem>>, vector<8x128xf32>
    %c48 = arith.constant 48 : index
    %c128_20 = arith.constant 128 : index
    %39 = vector.load %arg8[%c48, %c128_20] : memref<64x256xf32, #tpu.memory_space<vmem>>, vector<8x128xf32>
    %40 = tpu.concatenate %38, %39 in 0 : vector<8x128xf32>, vector<8x128xf32> -> vector<16x128xf32>
    %cst_21 = arith.constant dense<0.000000e+00> : vector<16x256xf32>
    %41 = tpu.matmul %33, %1, %cst_21 {dimension_numbers = #tpu.dot_dimension_numbers<[1], [0], [0], [1], [0, 0, 1, 1], [], []>} : vector<16x32xf32>, vector<32x256xf32>, vector<16x256xf32> -> vector<16x256xf32>
    %42 = vector.extract_strided_slice %41 {offsets = [0, 0], sizes = [8, 128], strides = [1, 1]} : vector<16x256xf32> to vector<8x128xf32>
    %43 = vector.extract_strided_slice %41 {offsets = [8, 128], sizes = [8, 128], strides = [1, 1]} : vector<16x256xf32> to vector<8x128xf32>
    %44 = tpu.concatenate %42, %43 in 0 : vector<8x128xf32>, vector<8x128xf32> -> vector<16x128xf32>
    %45 = arith.addf %40, %44 : vector<16x128xf32>
    %46 = arith.negf %45 : vector<16x128xf32>
    %47 = math.exp %46 : vector<16x128xf32>
    %cst_22 = arith.constant 1.000000e+00 : f32
    %48 = vector.broadcast %cst_22 : f32 to vector<16x128xf32>
    %49 = arith.addf %48, %47 : vector<16x128xf32>
    %50 = arith.divf %48, %49 : vector<16x128xf32>
    %51 = vector.extract_strided_slice %50 {offsets = [0, 0], sizes = [16, 32], strides = [1, 1]} : vector<16x128xf32> to vector<16x32xf32>
    %52 = vector.extract_strided_slice %50 {offsets = [0, 32], sizes = [16, 32], strides = [1, 1]} : vector<16x128xf32> to vector<16x32xf32>
    %53 = vector.extract_strided_slice %50 {offsets = [0, 96], sizes = [16, 32], strides = [1, 1]} : vector<16x128xf32> to vector<16x32xf32>
    %54 = vector.extract_strided_slice %45 {offsets = [0, 64], sizes = [16, 32], strides = [1, 1]} : vector<16x128xf32> to vector<16x32xf32>
    %55 = math.tanh %54 : vector<16x32xf32>
    %56 = arith.mulf %52, %31 : vector<16x32xf32>
    %57 = arith.mulf %51, %55 : vector<16x32xf32>
    %58 = arith.addf %56, %57 : vector<16x32xf32>
    %59 = math.tanh %58 : vector<16x32xf32>
    %60 = arith.mulf %53, %59 : vector<16x32xf32>
    %61 = vector.extract_strided_slice %60 {offsets = [0, 0], sizes = [8, 32], strides = [1, 1]} : vector<16x32xf32> to vector<8x32xf32>
    %c8_23 = arith.constant 8 : index
    %c0_24 = arith.constant 0 : index
    %62 = vector.load %arg9[%c8_23, %c0_24] : memref<64x64xf32, #tpu.memory_space<vmem>>, vector<8x32xf32>
    tpu.vector_store %arg9[%c8_23, %c0_24], %61 {strides = array<i32>} : memref<64x64xf32, #tpu.memory_space<vmem>>, vector<8x32xf32>,
    %63 = vector.extract_strided_slice %60 {offsets = [8, 0], sizes = [8, 32], strides = [1, 1]} : vector<16x32xf32> to vector<8x32xf32>
    %c48_25 = arith.constant 48 : index
    %c32_26 = arith.constant 32 : index
    %64 = vector.load %arg9[%c48_25, %c32_26] : memref<64x64xf32, #tpu.memory_space<vmem>>, vector<8x32xf32>
    tpu.vector_store %arg9[%c48_25, %c32_26], %63 {strides = array<i32>} : memref<64x64xf32, #tpu.memory_space<vmem>>, vector<8x32xf32>,
    %c16 = arith.constant 16 : index
    %c0_27 = arith.constant 0 : index
    %65 = vector.load %arg8[%c16, %c0_27] : memref<64x256xf32, #tpu.memory_space<vmem>>, vector<8x128xf32>
    %c40 = arith.constant 40 : index
    %c128_28 = arith.constant 128 : index
    %66 = vector.load %arg8[%c40, %c128_28] : memref<64x256xf32, #tpu.memory_space<vmem>>, vector<8x128xf32>
    %67 = tpu.concatenate %65, %66 in 0 : vector<8x128xf32>, vector<8x128xf32> -> vector<16x128xf32>
    %cst_29 = arith.constant dense<0.000000e+00> : vector<16x256xf32>
    %68 = tpu.matmul %60, %1, %cst_29 {dimension_numbers = #tpu.dot_dimension_numbers<[1], [0], [0], [1], [0, 0, 1, 1], [], []>} : vector<16x32xf32>, vector<32x256xf32>, vector<16x256xf32> -> vector<16x256xf32>
    %69 = vector.extract_strided_slice %68 {offsets = [0, 0], sizes = [8, 128], strides = [1, 1]} : vector<16x256xf32> to vector<8x128xf32>
    %70 = vector.extract_strided_slice %68 {offsets = [8, 128], sizes = [8, 128], strides = [1, 1]} : vector<16x256xf32> to vector<8x128xf32>
    %71 = tpu.concatenate %69, %70 in 0 : vector<8x128xf32>, vector<8x128xf32> -> vector<16x128xf32>
    %72 = arith.addf %67, %71 : vector<16x128xf32>
    %73 = arith.negf %72 : vector<16x128xf32>
    %74 = math.exp %73 : vector<16x128xf32>
    %cst_30 = arith.constant 1.000000e+00 : f32
    %75 = vector.broadcast %cst_30 : f32 to vector<16x128xf32>
    %76 = arith.addf %75, %74 : vector<16x128xf32>
    %77 = arith.divf %75, %76 : vector<16x128xf32>
    %78 = vector.extract_strided_slice %77 {offsets = [0, 0], sizes = [16, 32], strides = [1, 1]} : vector<16x128xf32> to vector<16x32xf32>
    %79 = vector.extract_strided_slice %77 {offsets = [0, 32], sizes = [16, 32], strides = [1, 1]} : vector<16x128xf32> to vector<16x32xf32>
    %80 = vector.extract_strided_slice %77 {offsets = [0, 96], sizes = [16, 32], strides = [1, 1]} : vector<16x128xf32> to vector<16x32xf32>
    %81 = vector.extract_strided_slice %72 {offsets = [0, 64], sizes = [16, 32], strides = [1, 1]} : vector<16x128xf32> to vector<16x32xf32>
    %82 = math.tanh %81 : vector<16x32xf32>
    %83 = arith.mulf %79, %58 : vector<16x32xf32>
    %84 = arith.mulf %78, %82 : vector<16x32xf32>
    %85 = arith.addf %83, %84 : vector<16x32xf32>
    %86 = math.tanh %85 : vector<16x32xf32>
    %87 = arith.mulf %80, %86 : vector<16x32xf32>
    %88 = vector.extract_strided_slice %87 {offsets = [0, 0], sizes = [8, 32], strides = [1, 1]} : vector<16x32xf32> to vector<8x32xf32>
    %c16_31 = arith.constant 16 : index
    %c0_32 = arith.constant 0 : index
    %89 = vector.load %arg9[%c16_31, %c0_32] : memref<64x64xf32, #tpu.memory_space<vmem>>, vector<8x32xf32>
    tpu.vector_store %arg9[%c16_31, %c0_32], %88 {strides = array<i32>} : memref<64x64xf32, #tpu.memory_space<vmem>>, vector<8x32xf32>,
    %90 = vector.extract_strided_slice %87 {offsets = [8, 0], sizes = [8, 32], strides = [1, 1]} : vector<16x32xf32> to vector<8x32xf32>
    %c40_33 = arith.constant 40 : index
    %c32_34 = arith.constant 32 : index
    %91 = vector.load %arg9[%c40_33, %c32_34] : memref<64x64xf32, #tpu.memory_space<vmem>>, vector<8x32xf32>
    tpu.vector_store %arg9[%c40_33, %c32_34], %90 {strides = array<i32>} : memref<64x64xf32, #tpu.memory_space<vmem>>, vector<8x32xf32>,
    %c24 = arith.constant 24 : index
    %c0_35 = arith.constant 0 : index
    %92 = vector.load %arg8[%c24, %c0_35] : memref<64x256xf32, #tpu.memory_space<vmem>>, vector<8x128xf32>
    %c32_36 = arith.constant 32 : index
    %c128_37 = arith.constant 128 : index
    %93 = vector.load %arg8[%c32_36, %c128_37] : memref<64x256xf32, #tpu.memory_space<vmem>>, vector<8x128xf32>
    %94 = tpu.concatenate %92, %93 in 0 : vector<8x128xf32>, vector<8x128xf32> -> vector<16x128xf32>
    %cst_38 = arith.constant dense<0.000000e+00> : vector<16x256xf32>
    %95 = tpu.matmul %87, %1, %cst_38 {dimension_numbers = #tpu.dot_dimension_numbers<[1], [0], [0], [1], [0, 0, 1, 1], [], []>} : vector<16x32xf32>, vector<32x256xf32>, vector<16x256xf32> -> vector<16x256xf32>
    %96 = vector.extract_strided_slice %95 {offsets = [0, 0], sizes = [8, 128], strides = [1, 1]} : vector<16x256xf32> to vector<8x128xf32>
    %97 = vector.extract_strided_slice %95 {offsets = [8, 128], sizes = [8, 128], strides = [1, 1]} : vector<16x256xf32> to vector<8x128xf32>
    %98 = tpu.concatenate %96, %97 in 0 : vector<8x128xf32>, vector<8x128xf32> -> vector<16x128xf32>
    %99 = arith.addf %94, %98 : vector<16x128xf32>
    %100 = arith.negf %99 : vector<16x128xf32>
    %101 = math.exp %100 : vector<16x128xf32>
    %cst_39 = arith.constant 1.000000e+00 : f32
    %102 = vector.broadcast %cst_39 : f32 to vector<16x128xf32>
    %103 = arith.addf %102, %101 : vector<16x128xf32>
    %104 = arith.divf %102, %103 : vector<16x128xf32>
    %105 = vector.extract_strided_slice %104 {offsets = [0, 0], sizes = [16, 32], strides = [1, 1]} : vector<16x128xf32> to vector<16x32xf32>
    %106 = vector.extract_strided_slice %104 {offsets = [0, 32], sizes = [16, 32], strides = [1, 1]} : vector<16x128xf32> to vector<16x32xf32>
    %107 = vector.extract_strided_slice %104 {offsets = [0, 96], sizes = [16, 32], strides = [1, 1]} : vector<16x128xf32> to vector<16x32xf32>
    %108 = vector.extract_strided_slice %99 {offsets = [0, 64], sizes = [16, 32], strides = [1, 1]} : vector<16x128xf32> to vector<16x32xf32>
    %109 = math.tanh %108 : vector<16x32xf32>
    %110 = arith.mulf %106, %85 : vector<16x32xf32>
    %111 = arith.mulf %105, %109 : vector<16x32xf32>
    %112 = arith.addf %110, %111 : vector<16x32xf32>
    %113 = math.tanh %112 : vector<16x32xf32>
    %114 = arith.mulf %107, %113 : vector<16x32xf32>
    %115 = vector.extract_strided_slice %114 {offsets = [0, 0], sizes = [8, 32], strides = [1, 1]} : vector<16x32xf32> to vector<8x32xf32>
    %c24_40 = arith.constant 24 : index
    %c0_41 = arith.constant 0 : index
    %116 = vector.load %arg9[%c24_40, %c0_41] : memref<64x64xf32, #tpu.memory_space<vmem>>, vector<8x32xf32>
    tpu.vector_store %arg9[%c24_40, %c0_41], %115 {strides = array<i32>} : memref<64x64xf32, #tpu.memory_space<vmem>>, vector<8x32xf32>,
    %117 = vector.extract_strided_slice %114 {offsets = [8, 0], sizes = [8, 32], strides = [1, 1]} : vector<16x32xf32> to vector<8x32xf32>
    %c32_42 = arith.constant 32 : index
    %c32_43 = arith.constant 32 : index
    %118 = vector.load %arg9[%c32_42, %c32_43] : memref<64x64xf32, #tpu.memory_space<vmem>>, vector<8x32xf32>
    tpu.vector_store %arg9[%c32_42, %c32_43], %117 {strides = array<i32>} : memref<64x64xf32, #tpu.memory_space<vmem>>, vector<8x32xf32>,
    %c32_44 = arith.constant 32 : index
    %c0_45 = arith.constant 0 : index
    %119 = vector.load %arg8[%c32_44, %c0_45] : memref<64x256xf32, #tpu.memory_space<vmem>>, vector<8x128xf32>
    %c24_46 = arith.constant 24 : index
    %c128_47 = arith.constant 128 : index
    %120 = vector.load %arg8[%c24_46, %c128_47] : memref<64x256xf32, #tpu.memory_space<vmem>>, vector<8x128xf32>
    %121 = tpu.concatenate %119, %120 in 0 : vector<8x128xf32>, vector<8x128xf32> -> vector<16x128xf32>
    %cst_48 = arith.constant dense<0.000000e+00> : vector<16x256xf32>
    %122 = tpu.matmul %114, %1, %cst_48 {dimension_numbers = #tpu.dot_dimension_numbers<[1], [0], [0], [1], [0, 0, 1, 1], [], []>} : vector<16x32xf32>, vector<32x256xf32>, vector<16x256xf32> -> vector<16x256xf32>
    %123 = vector.extract_strided_slice %122 {offsets = [0, 0], sizes = [8, 128], strides = [1, 1]} : vector<16x256xf32> to vector<8x128xf32>
    %124 = vector.extract_strided_slice %122 {offsets = [8, 128], sizes = [8, 128], strides = [1, 1]} : vector<16x256xf32> to vector<8x128xf32>
    %125 = tpu.concatenate %123, %124 in 0 : vector<8x128xf32>, vector<8x128xf32> -> vector<16x128xf32>
    %126 = arith.addf %121, %125 : vector<16x128xf32>
    %127 = arith.negf %126 : vector<16x128xf32>
    %128 = math.exp %127 : vector<16x128xf32>
    %cst_49 = arith.constant 1.000000e+00 : f32
    %129 = vector.broadcast %cst_49 : f32 to vector<16x128xf32>
    %130 = arith.addf %129, %128 : vector<16x128xf32>
    %131 = arith.divf %129, %130 : vector<16x128xf32>
    %132 = vector.extract_strided_slice %131 {offsets = [0, 0], sizes = [16, 32], strides = [1, 1]} : vector<16x128xf32> to vector<16x32xf32>
    %133 = vector.extract_strided_slice %131 {offsets = [0, 32], sizes = [16, 32], strides = [1, 1]} : vector<16x128xf32> to vector<16x32xf32>
    %134 = vector.extract_strided_slice %131 {offsets = [0, 96], sizes = [16, 32], strides = [1, 1]} : vector<16x128xf32> to vector<16x32xf32>
    %135 = vector.extract_strided_slice %126 {offsets = [0, 64], sizes = [16, 32], strides = [1, 1]} : vector<16x128xf32> to vector<16x32xf32>
    %136 = math.tanh %135 : vector<16x32xf32>
    %137 = arith.mulf %133, %112 : vector<16x32xf32>
    %138 = arith.mulf %132, %136 : vector<16x32xf32>
    %139 = arith.addf %137, %138 : vector<16x32xf32>
    %140 = math.tanh %139 : vector<16x32xf32>
    %141 = arith.mulf %134, %140 : vector<16x32xf32>
    %142 = vector.extract_strided_slice %141 {offsets = [0, 0], sizes = [8, 32], strides = [1, 1]} : vector<16x32xf32> to vector<8x32xf32>
    %c32_50 = arith.constant 32 : index
    %c0_51 = arith.constant 0 : index
    %143 = vector.load %arg9[%c32_50, %c0_51] : memref<64x64xf32, #tpu.memory_space<vmem>>, vector<8x32xf32>
    tpu.vector_store %arg9[%c32_50, %c0_51], %142 {strides = array<i32>} : memref<64x64xf32, #tpu.memory_space<vmem>>, vector<8x32xf32>,
    %144 = vector.extract_strided_slice %141 {offsets = [8, 0], sizes = [8, 32], strides = [1, 1]} : vector<16x32xf32> to vector<8x32xf32>
    %c24_52 = arith.constant 24 : index
    %c32_53 = arith.constant 32 : index
    %145 = vector.load %arg9[%c24_52, %c32_53] : memref<64x64xf32, #tpu.memory_space<vmem>>, vector<8x32xf32>
    tpu.vector_store %arg9[%c24_52, %c32_53], %144 {strides = array<i32>} : memref<64x64xf32, #tpu.memory_space<vmem>>, vector<8x32xf32>,
    %c40_54 = arith.constant 40 : index
    %c0_55 = arith.constant 0 : index
    %146 = vector.load %arg8[%c40_54, %c0_55] : memref<64x256xf32, #tpu.memory_space<vmem>>, vector<8x128xf32>
    %c16_56 = arith.constant 16 : index
    %c128_57 = arith.constant 128 : index
    %147 = vector.load %arg8[%c16_56, %c128_57] : memref<64x256xf32, #tpu.memory_space<vmem>>, vector<8x128xf32>
    %148 = tpu.concatenate %146, %147 in 0 : vector<8x128xf32>, vector<8x128xf32> -> vector<16x128xf32>
    %cst_58 = arith.constant dense<0.000000e+00> : vector<16x256xf32>
    %149 = tpu.matmul %141, %1, %cst_58 {dimension_numbers = #tpu.dot_dimension_numbers<[1], [0], [0], [1], [0, 0, 1, 1], [], []>} : vector<16x32xf32>, vector<32x256xf32>, vector<16x256xf32> -> vector<16x256xf32>
    %150 = vector.extract_strided_slice %149 {offsets = [0, 0], sizes = [8, 128], strides = [1, 1]} : vector<16x256xf32> to vector<8x128xf32>
    %151 = vector.extract_strided_slice %149 {offsets = [8, 128], sizes = [8, 128], strides = [1, 1]} : vector<16x256xf32> to vector<8x128xf32>
    %152 = tpu.concatenate %150, %151 in 0 : vector<8x128xf32>, vector<8x128xf32> -> vector<16x128xf32>
    %153 = arith.addf %148, %152 : vector<16x128xf32>
    %154 = arith.negf %153 : vector<16x128xf32>
    %155 = math.exp %154 : vector<16x128xf32>
    %cst_59 = arith.constant 1.000000e+00 : f32
    %156 = vector.broadcast %cst_59 : f32 to vector<16x128xf32>
    %157 = arith.addf %156, %155 : vector<16x128xf32>
    %158 = arith.divf %156, %157 : vector<16x128xf32>
    %159 = vector.extract_strided_slice %158 {offsets = [0, 0], sizes = [16, 32], strides = [1, 1]} : vector<16x128xf32> to vector<16x32xf32>
    %160 = vector.extract_strided_slice %158 {offsets = [0, 32], sizes = [16, 32], strides = [1, 1]} : vector<16x128xf32> to vector<16x32xf32>
    %161 = vector.extract_strided_slice %158 {offsets = [0, 96], sizes = [16, 32], strides = [1, 1]} : vector<16x128xf32> to vector<16x32xf32>
    %162 = vector.extract_strided_slice %153 {offsets = [0, 64], sizes = [16, 32], strides = [1, 1]} : vector<16x128xf32> to vector<16x32xf32>
    %163 = math.tanh %162 : vector<16x32xf32>
    %164 = arith.mulf %160, %139 : vector<16x32xf32>
    %165 = arith.mulf %159, %163 : vector<16x32xf32>
    %166 = arith.addf %164, %165 : vector<16x32xf32>
    %167 = math.tanh %166 : vector<16x32xf32>
    %168 = arith.mulf %161, %167 : vector<16x32xf32>
    %169 = vector.extract_strided_slice %168 {offsets = [0, 0], sizes = [8, 32], strides = [1, 1]} : vector<16x32xf32> to vector<8x32xf32>
    %c40_60 = arith.constant 40 : index
    %c0_61 = arith.constant 0 : index
    %170 = vector.load %arg9[%c40_60, %c0_61] : memref<64x64xf32, #tpu.memory_space<vmem>>, vector<8x32xf32>
    tpu.vector_store %arg9[%c40_60, %c0_61], %169 {strides = array<i32>} : memref<64x64xf32, #tpu.memory_space<vmem>>, vector<8x32xf32>,
    %171 = vector.extract_strided_slice %168 {offsets = [8, 0], sizes = [8, 32], strides = [1, 1]} : vector<16x32xf32> to vector<8x32xf32>
    %c16_62 = arith.constant 16 : index
    %c32_63 = arith.constant 32 : index
    %172 = vector.load %arg9[%c16_62, %c32_63] : memref<64x64xf32, #tpu.memory_space<vmem>>, vector<8x32xf32>
    tpu.vector_store %arg9[%c16_62, %c32_63], %171 {strides = array<i32>} : memref<64x64xf32, #tpu.memory_space<vmem>>, vector<8x32xf32>,
    %c48_64 = arith.constant 48 : index
    %c0_65 = arith.constant 0 : index
    %173 = vector.load %arg8[%c48_64, %c0_65] : memref<64x256xf32, #tpu.memory_space<vmem>>, vector<8x128xf32>
    %c8_66 = arith.constant 8 : index
    %c128_67 = arith.constant 128 : index
    %174 = vector.load %arg8[%c8_66, %c128_67] : memref<64x256xf32, #tpu.memory_space<vmem>>, vector<8x128xf32>
    %175 = tpu.concatenate %173, %174 in 0 : vector<8x128xf32>, vector<8x128xf32> -> vector<16x128xf32>
    %cst_68 = arith.constant dense<0.000000e+00> : vector<16x256xf32>
    %176 = tpu.matmul %168, %1, %cst_68 {dimension_numbers = #tpu.dot_dimension_numbers<[1], [0], [0], [1], [0, 0, 1, 1], [], []>} : vector<16x32xf32>, vector<32x256xf32>, vector<16x256xf32> -> vector<16x256xf32>
    %177 = vector.extract_strided_slice %176 {offsets = [0, 0], sizes = [8, 128], strides = [1, 1]} : vector<16x256xf32> to vector<8x128xf32>
    %178 = vector.extract_strided_slice %176 {offsets = [8, 128], sizes = [8, 128], strides = [1, 1]} : vector<16x256xf32> to vector<8x128xf32>
    %179 = tpu.concatenate %177, %178 in 0 : vector<8x128xf32>, vector<8x128xf32> -> vector<16x128xf32>
    %180 = arith.addf %175, %179 : vector<16x128xf32>
    %181 = arith.negf %180 : vector<16x128xf32>
    %182 = math.exp %181 : vector<16x128xf32>
    %cst_69 = arith.constant 1.000000e+00 : f32
    %183 = vector.broadcast %cst_69 : f32 to vector<16x128xf32>
    %184 = arith.addf %183, %182 : vector<16x128xf32>
    %185 = arith.divf %183, %184 : vector<16x128xf32>
    %186 = vector.extract_strided_slice %185 {offsets = [0, 0], sizes = [16, 32], strides = [1, 1]} : vector<16x128xf32> to vector<16x32xf32>
    %187 = vector.extract_strided_slice %185 {offsets = [0, 32], sizes = [16, 32], strides = [1, 1]} : vector<16x128xf32> to vector<16x32xf32>
    %188 = vector.extract_strided_slice %185 {offsets = [0, 96], sizes = [16, 32], strides = [1, 1]} : vector<16x128xf32> to vector<16x32xf32>
    %189 = vector.extract_strided_slice %180 {offsets = [0, 64], sizes = [16, 32], strides = [1, 1]} : vector<16x128xf32> to vector<16x32xf32>
    %190 = math.tanh %189 : vector<16x32xf32>
    %191 = arith.mulf %187, %166 : vector<16x32xf32>
    %192 = arith.mulf %186, %190 : vector<16x32xf32>
    %193 = arith.addf %191, %192 : vector<16x32xf32>
    %194 = math.tanh %193 : vector<16x32xf32>
    %195 = arith.mulf %188, %194 : vector<16x32xf32>
    %196 = vector.extract_strided_slice %195 {offsets = [0, 0], sizes = [8, 32], strides = [1, 1]} : vector<16x32xf32> to vector<8x32xf32>
    %c48_70 = arith.constant 48 : index
    %c0_71 = arith.constant 0 : index
    %197 = vector.load %arg9[%c48_70, %c0_71] : memref<64x64xf32, #tpu.memory_space<vmem>>, vector<8x32xf32>
    tpu.vector_store %arg9[%c48_70, %c0_71], %196 {strides = array<i32>} : memref<64x64xf32, #tpu.memory_space<vmem>>, vector<8x32xf32>,
    %198 = vector.extract_strided_slice %195 {offsets = [8, 0], sizes = [8, 32], strides = [1, 1]} : vector<16x32xf32> to vector<8x32xf32>
    %c8_72 = arith.constant 8 : index
    %c32_73 = arith.constant 32 : index
    %199 = vector.load %arg9[%c8_72, %c32_73] : memref<64x64xf32, #tpu.memory_space<vmem>>, vector<8x32xf32>
    tpu.vector_store %arg9[%c8_72, %c32_73], %198 {strides = array<i32>} : memref<64x64xf32, #tpu.memory_space<vmem>>, vector<8x32xf32>,
    %c56_74 = arith.constant 56 : index
    %c0_75 = arith.constant 0 : index
    %200 = vector.load %arg8[%c56_74, %c0_75] : memref<64x256xf32, #tpu.memory_space<vmem>>, vector<8x128xf32>
    %c0_76 = arith.constant 0 : index
    %c128_77 = arith.constant 128 : index
    %201 = vector.load %arg8[%c0_76, %c128_77] : memref<64x256xf32, #tpu.memory_space<vmem>>, vector<8x128xf32>
    %202 = tpu.concatenate %200, %201 in 0 : vector<8x128xf32>, vector<8x128xf32> -> vector<16x128xf32>
    %cst_78 = arith.constant dense<0.000000e+00> : vector<16x256xf32>
    %203 = tpu.matmul %195, %1, %cst_78 {dimension_numbers = #tpu.dot_dimension_numbers<[1], [0], [0], [1], [0, 0, 1, 1], [], []>} : vector<16x32xf32>, vector<32x256xf32>, vector<16x256xf32> -> vector<16x256xf32>
    %204 = vector.extract_strided_slice %203 {offsets = [0, 0], sizes = [8, 128], strides = [1, 1]} : vector<16x256xf32> to vector<8x128xf32>
    %205 = vector.extract_strided_slice %203 {offsets = [8, 128], sizes = [8, 128], strides = [1, 1]} : vector<16x256xf32> to vector<8x128xf32>
    %206 = tpu.concatenate %204, %205 in 0 : vector<8x128xf32>, vector<8x128xf32> -> vector<16x128xf32>
    %207 = arith.addf %202, %206 : vector<16x128xf32>
    %208 = arith.negf %207 : vector<16x128xf32>
    %209 = math.exp %208 : vector<16x128xf32>
    %cst_79 = arith.constant 1.000000e+00 : f32
    %210 = vector.broadcast %cst_79 : f32 to vector<16x128xf32>
    %211 = arith.addf %210, %209 : vector<16x128xf32>
    %212 = arith.divf %210, %211 : vector<16x128xf32>
    %213 = vector.extract_strided_slice %212 {offsets = [0, 0], sizes = [16, 32], strides = [1, 1]} : vector<16x128xf32> to vector<16x32xf32>
    %214 = vector.extract_strided_slice %212 {offsets = [0, 32], sizes = [16, 32], strides = [1, 1]} : vector<16x128xf32> to vector<16x32xf32>
    %215 = vector.extract_strided_slice %212 {offsets = [0, 96], sizes = [16, 32], strides = [1, 1]} : vector<16x128xf32> to vector<16x32xf32>
    %216 = vector.extract_strided_slice %207 {offsets = [0, 64], sizes = [16, 32], strides = [1, 1]} : vector<16x128xf32> to vector<16x32xf32>
    %217 = math.tanh %216 : vector<16x32xf32>
    %218 = arith.mulf %214, %193 : vector<16x32xf32>
    %219 = arith.mulf %213, %217 : vector<16x32xf32>
    %220 = arith.addf %218, %219 : vector<16x32xf32>
    %221 = math.tanh %220 : vector<16x32xf32>
    %222 = arith.mulf %215, %221 : vector<16x32xf32>
    %223 = vector.extract_strided_slice %222 {offsets = [0, 0], sizes = [8, 32], strides = [1, 1]} : vector<16x32xf32> to vector<8x32xf32>
    %c56_80 = arith.constant 56 : index
    %c0_81 = arith.constant 0 : index
    %224 = vector.load %arg9[%c56_80, %c0_81] : memref<64x64xf32, #tpu.memory_space<vmem>>, vector<8x32xf32>
    tpu.vector_store %arg9[%c56_80, %c0_81], %223 {strides = array<i32>} : memref<64x64xf32, #tpu.memory_space<vmem>>, vector<8x32xf32>,
    %225 = vector.extract_strided_slice %222 {offsets = [8, 0], sizes = [8, 32], strides = [1, 1]} : vector<16x32xf32> to vector<8x32xf32>
    %c0_82 = arith.constant 0 : index
    %c32_83 = arith.constant 32 : index
    %226 = vector.load %arg9[%c0_82, %c32_83] : memref<64x64xf32, #tpu.memory_space<vmem>>, vector<8x32xf32>
    tpu.vector_store %arg9[%c0_82, %c32_83], %225 {strides = array<i32>} : memref<64x64xf32, #tpu.memory_space<vmem>>, vector<8x32xf32>,
    %c1 = arith.constant 1 : index
    %c0_84 = arith.constant 0 : index
    %c0_85 = arith.constant 0 : index
    %227 = vector.load %arg3[%c1, %c0_84, %c0_85] : memref<2x32x256xf32, #tpu.memory_space<vmem>>, vector<1x32x256xf32>
    %228 = vector.shape_cast %227 : vector<1x32x256xf32> to vector<32x256xf32>
    %c1_86 = arith.constant 1 : index
    %c0_87 = arith.constant 0 : index
    %229 = vector.load %arg4[%c1_86, %c0_87] : memref<2x256xf32, #tpu.memory_space<vmem>>, vector<1x256xf32>
    %c0_88 = arith.constant 0 : index
    %c0_89 = arith.constant 0 : index
    %c0_90 = arith.constant 0 : index
    %230 = vector.load %arg2[%c0_88, %c0_89, %c0_90] : memref<1x64x256xf32, #tpu.memory_space<vmem>>, vector<1x64x256xf32>
    %231 = vector.shape_cast %230 : vector<1x64x256xf32> to vector<64x256xf32>
    %c0_91 = arith.constant 0 : index
    %c0_92 = arith.constant 0 : index
    %232 = vector.load %arg9[%c0_91, %c0_92] : memref<64x64xf32, #tpu.memory_space<vmem>>, vector<64x64xf32>
    %cst_93 = arith.constant dense<0.000000e+00> : vector<64x256xf32>
    %233 = tpu.matmul %232, %231, %cst_93 {dimension_numbers = #tpu.dot_dimension_numbers<[1], [0], [0], [1], [0, 0, 1, 1], [], []>} : vector<64x64xf32>, vector<64x256xf32>, vector<64x256xf32> -> vector<64x256xf32>
    %234 = vector.broadcast %229 : vector<1x256xf32> to vector<64x256xf32>
    %235 = arith.addf %233, %234 : vector<64x256xf32>
    %c0_94 = arith.constant 0 : index
    %c0_95 = arith.constant 0 : index
    %236 = vector.load %arg8[%c0_94, %c0_95] : memref<64x256xf32, #tpu.memory_space<vmem>>, vector<64x256xf32>
    tpu.vector_store %arg8[%c0_94, %c0_95], %235 {strides = array<i32>} : memref<64x256xf32, #tpu.memory_space<vmem>>, vector<64x256xf32>,
    %cst_96 = arith.constant 0.000000e+00 : f32
    %237 = vector.broadcast %cst_96 : f32 to vector<16x32xf32>
    %cst_97 = arith.constant 0.000000e+00 : f32
    %238 = vector.broadcast %cst_97 : f32 to vector<16x32xf32>
    %cst_98 = arith.constant 0.000000e+00 : f32
    %239 = vector.broadcast %cst_98 : f32 to vector<16x32xf32>
    %c0_99 = arith.constant 0 : index
    %c0_100 = arith.constant 0 : index
    %240 = vector.load %arg8[%c0_99, %c0_100] : memref<64x256xf32, #tpu.memory_space<vmem>>, vector<8x128xf32>
    %c56_101 = arith.constant 56 : index
    %c128_102 = arith.constant 128 : index
    %241 = vector.load %arg8[%c56_101, %c128_102] : memref<64x256xf32, #tpu.memory_space<vmem>>, vector<8x128xf32>
    %242 = tpu.concatenate %240, %241 in 0 : vector<8x128xf32>, vector<8x128xf32> -> vector<16x128xf32>
    %cst_103 = arith.constant dense<0.000000e+00> : vector<16x256xf32>
    %243 = tpu.matmul %237, %228, %cst_103 {dimension_numbers = #tpu.dot_dimension_numbers<[1], [0], [0], [1], [0, 0, 1, 1], [], []>} : vector<16x32xf32>, vector<32x256xf32>, vector<16x256xf32> -> vector<16x256xf32>
    %244 = vector.extract_strided_slice %243 {offsets = [0, 0], sizes = [8, 128], strides = [1, 1]} : vector<16x256xf32> to vector<8x128xf32>
    %245 = vector.extract_strided_slice %243 {offsets = [8, 128], sizes = [8, 128], strides = [1, 1]} : vector<16x256xf32> to vector<8x128xf32>
    %246 = tpu.concatenate %244, %245 in 0 : vector<8x128xf32>, vector<8x128xf32> -> vector<16x128xf32>
    %247 = arith.addf %242, %246 : vector<16x128xf32>
    %248 = arith.negf %247 : vector<16x128xf32>
    %249 = math.exp %248 : vector<16x128xf32>
    %cst_104 = arith.constant 1.000000e+00 : f32
    %250 = vector.broadcast %cst_104 : f32 to vector<16x128xf32>
    %251 = arith.addf %250, %249 : vector<16x128xf32>
    %252 = arith.divf %250, %251 : vector<16x128xf32>
    %253 = vector.extract_strided_slice %252 {offsets = [0, 0], sizes = [16, 32], strides = [1, 1]} : vector<16x128xf32> to vector<16x32xf32>
    %254 = vector.extract_strided_slice %252 {offsets = [0, 32], sizes = [16, 32], strides = [1, 1]} : vector<16x128xf32> to vector<16x32xf32>
    %255 = vector.extract_strided_slice %252 {offsets = [0, 96], sizes = [16, 32], strides = [1, 1]} : vector<16x128xf32> to vector<16x32xf32>
    %256 = vector.extract_strided_slice %247 {offsets = [0, 64], sizes = [16, 32], strides = [1, 1]} : vector<16x128xf32> to vector<16x32xf32>
    %257 = math.tanh %256 : vector<16x32xf32>
    %258 = arith.mulf %254, %238 : vector<16x32xf32>
    %259 = arith.mulf %253, %257 : vector<16x32xf32>
    %260 = arith.addf %258, %259 : vector<16x32xf32>
    %261 = math.tanh %260 : vector<16x32xf32>
    %262 = arith.mulf %255, %261 : vector<16x32xf32>
    %263 = arith.addf %239, %262 : vector<16x32xf32>
    %264 = vector.extract_strided_slice %262 {offsets = [0, 0], sizes = [8, 32], strides = [1, 1]} : vector<16x32xf32> to vector<8x32xf32>
    %c0_105 = arith.constant 0 : index
    %c0_106 = arith.constant 0 : index
    %265 = vector.load %arg10[%c0_105, %c0_106] : memref<64x64xf32, #tpu.memory_space<vmem>>, vector<8x32xf32>
    tpu.vector_store %arg10[%c0_105, %c0_106], %264 {strides = array<i32>} : memref<64x64xf32, #tpu.memory_space<vmem>>, vector<8x32xf32>,
    %266 = vector.extract_strided_slice %262 {offsets = [8, 0], sizes = [8, 32], strides = [1, 1]} : vector<16x32xf32> to vector<8x32xf32>
    %c56_107 = arith.constant 56 : index
    %c32_108 = arith.constant 32 : index
    %267 = vector.load %arg10[%c56_107, %c32_108] : memref<64x64xf32, #tpu.memory_space<vmem>>, vector<8x32xf32>
    tpu.vector_store %arg10[%c56_107, %c32_108], %266 {strides = array<i32>} : memref<64x64xf32, #tpu.memory_space<vmem>>, vector<8x32xf32>,
    %c8_109 = arith.constant 8 : index
    %c0_110 = arith.constant 0 : index
    %268 = vector.load %arg8[%c8_109, %c0_110] : memref<64x256xf32, #tpu.memory_space<vmem>>, vector<8x128xf32>
    %c48_111 = arith.constant 48 : index
    %c128_112 = arith.constant 128 : index
    %269 = vector.load %arg8[%c48_111, %c128_112] : memref<64x256xf32, #tpu.memory_space<vmem>>, vector<8x128xf32>
    %270 = tpu.concatenate %268, %269 in 0 : vector<8x128xf32>, vector<8x128xf32> -> vector<16x128xf32>
    %cst_113 = arith.constant dense<0.000000e+00> : vector<16x256xf32>
    %271 = tpu.matmul %262, %228, %cst_113 {dimension_numbers = #tpu.dot_dimension_numbers<[1], [0], [0], [1], [0, 0, 1, 1], [], []>} : vector<16x32xf32>, vector<32x256xf32>, vector<16x256xf32> -> vector<16x256xf32>
    %272 = vector.extract_strided_slice %271 {offsets = [0, 0], sizes = [8, 128], strides = [1, 1]} : vector<16x256xf32> to vector<8x128xf32>
    %273 = vector.extract_strided_slice %271 {offsets = [8, 128], sizes = [8, 128], strides = [1, 1]} : vector<16x256xf32> to vector<8x128xf32>
    %274 = tpu.concatenate %272, %273 in 0 : vector<8x128xf32>, vector<8x128xf32> -> vector<16x128xf32>
    %275 = arith.addf %270, %274 : vector<16x128xf32>
    %276 = arith.negf %275 : vector<16x128xf32>
    %277 = math.exp %276 : vector<16x128xf32>
    %cst_114 = arith.constant 1.000000e+00 : f32
    %278 = vector.broadcast %cst_114 : f32 to vector<16x128xf32>
    %279 = arith.addf %278, %277 : vector<16x128xf32>
    %280 = arith.divf %278, %279 : vector<16x128xf32>
    %281 = vector.extract_strided_slice %280 {offsets = [0, 0], sizes = [16, 32], strides = [1, 1]} : vector<16x128xf32> to vector<16x32xf32>
    %282 = vector.extract_strided_slice %280 {offsets = [0, 32], sizes = [16, 32], strides = [1, 1]} : vector<16x128xf32> to vector<16x32xf32>
    %283 = vector.extract_strided_slice %280 {offsets = [0, 96], sizes = [16, 32], strides = [1, 1]} : vector<16x128xf32> to vector<16x32xf32>
    %284 = vector.extract_strided_slice %275 {offsets = [0, 64], sizes = [16, 32], strides = [1, 1]} : vector<16x128xf32> to vector<16x32xf32>
    %285 = math.tanh %284 : vector<16x32xf32>
    %286 = arith.mulf %282, %260 : vector<16x32xf32>
    %287 = arith.mulf %281, %285 : vector<16x32xf32>
    %288 = arith.addf %286, %287 : vector<16x32xf32>
    %289 = math.tanh %288 : vector<16x32xf32>
    %290 = arith.mulf %283, %289 : vector<16x32xf32>
    %291 = arith.addf %263, %290 : vector<16x32xf32>
    %292 = vector.extract_strided_slice %290 {offsets = [0, 0], sizes = [8, 32], strides = [1, 1]} : vector<16x32xf32> to vector<8x32xf32>
    %c8_115 = arith.constant 8 : index
    %c0_116 = arith.constant 0 : index
    %293 = vector.load %arg10[%c8_115, %c0_116] : memref<64x64xf32, #tpu.memory_space<vmem>>, vector<8x32xf32>
    tpu.vector_store %arg10[%c8_115, %c0_116], %292 {strides = array<i32>} : memref<64x64xf32, #tpu.memory_space<vmem>>, vector<8x32xf32>,
    %294 = vector.extract_strided_slice %290 {offsets = [8, 0], sizes = [8, 32], strides = [1, 1]} : vector<16x32xf32> to vector<8x32xf32>
    %c48_117 = arith.constant 48 : index
    %c32_118 = arith.constant 32 : index
    %295 = vector.load %arg10[%c48_117, %c32_118] : memref<64x64xf32, #tpu.memory_space<vmem>>, vector<8x32xf32>
    tpu.vector_store %arg10[%c48_117, %c32_118], %294 {strides = array<i32>} : memref<64x64xf32, #tpu.memory_space<vmem>>, vector<8x32xf32>,
    %c16_119 = arith.constant 16 : index
    %c0_120 = arith.constant 0 : index
    %296 = vector.load %arg8[%c16_119, %c0_120] : memref<64x256xf32, #tpu.memory_space<vmem>>, vector<8x128xf32>
    %c40_121 = arith.constant 40 : index
    %c128_122 = arith.constant 128 : index
    %297 = vector.load %arg8[%c40_121, %c128_122] : memref<64x256xf32, #tpu.memory_space<vmem>>, vector<8x128xf32>
    %298 = tpu.concatenate %296, %297 in 0 : vector<8x128xf32>, vector<8x128xf32> -> vector<16x128xf32>
    %cst_123 = arith.constant dense<0.000000e+00> : vector<16x256xf32>
    %299 = tpu.matmul %290, %228, %cst_123 {dimension_numbers = #tpu.dot_dimension_numbers<[1], [0], [0], [1], [0, 0, 1, 1], [], []>} : vector<16x32xf32>, vector<32x256xf32>, vector<16x256xf32> -> vector<16x256xf32>
    %300 = vector.extract_strided_slice %299 {offsets = [0, 0], sizes = [8, 128], strides = [1, 1]} : vector<16x256xf32> to vector<8x128xf32>
    %301 = vector.extract_strided_slice %299 {offsets = [8, 128], sizes = [8, 128], strides = [1, 1]} : vector<16x256xf32> to vector<8x128xf32>
    %302 = tpu.concatenate %300, %301 in 0 : vector<8x128xf32>, vector<8x128xf32> -> vector<16x128xf32>
    %303 = arith.addf %298, %302 : vector<16x128xf32>
    %304 = arith.negf %303 : vector<16x128xf32>
    %305 = math.exp %304 : vector<16x128xf32>
    %cst_124 = arith.constant 1.000000e+00 : f32
    %306 = vector.broadcast %cst_124 : f32 to vector<16x128xf32>
    %307 = arith.addf %306, %305 : vector<16x128xf32>
    %308 = arith.divf %306, %307 : vector<16x128xf32>
    %309 = vector.extract_strided_slice %308 {offsets = [0, 0], sizes = [16, 32], strides = [1, 1]} : vector<16x128xf32> to vector<16x32xf32>
    %310 = vector.extract_strided_slice %308 {offsets = [0, 32], sizes = [16, 32], strides = [1, 1]} : vector<16x128xf32> to vector<16x32xf32>
    %311 = vector.extract_strided_slice %308 {offsets = [0, 96], sizes = [16, 32], strides = [1, 1]} : vector<16x128xf32> to vector<16x32xf32>
    %312 = vector.extract_strided_slice %303 {offsets = [0, 64], sizes = [16, 32], strides = [1, 1]} : vector<16x128xf32> to vector<16x32xf32>
    %313 = math.tanh %312 : vector<16x32xf32>
    %314 = arith.mulf %310, %288 : vector<16x32xf32>
    %315 = arith.mulf %309, %313 : vector<16x32xf32>
    %316 = arith.addf %314, %315 : vector<16x32xf32>
    %317 = math.tanh %316 : vector<16x32xf32>
    %318 = arith.mulf %311, %317 : vector<16x32xf32>
    %319 = arith.addf %291, %318 : vector<16x32xf32>
    %320 = vector.extract_strided_slice %318 {offsets = [0, 0], sizes = [8, 32], strides = [1, 1]} : vector<16x32xf32> to vector<8x32xf32>
    %c16_125 = arith.constant 16 : index
    %c0_126 = arith.constant 0 : index
    %321 = vector.load %arg10[%c16_125, %c0_126] : memref<64x64xf32, #tpu.memory_space<vmem>>, vector<8x32xf32>
    tpu.vector_store %arg10[%c16_125, %c0_126], %320 {strides = array<i32>} : memref<64x64xf32, #tpu.memory_space<vmem>>, vector<8x32xf32>,
    %322 = vector.extract_strided_slice %318 {offsets = [8, 0], sizes = [8, 32], strides = [1, 1]} : vector<16x32xf32> to vector<8x32xf32>
    %c40_127 = arith.constant 40 : index
    %c32_128 = arith.constant 32 : index
    %323 = vector.load %arg10[%c40_127, %c32_128] : memref<64x64xf32, #tpu.memory_space<vmem>>, vector<8x32xf32>
    tpu.vector_store %arg10[%c40_127, %c32_128], %322 {strides = array<i32>} : memref<64x64xf32, #tpu.memory_space<vmem>>, vector<8x32xf32>,
    %c24_129 = arith.constant 24 : index
    %c0_130 = arith.constant 0 : index
    %324 = vector.load %arg8[%c24_129, %c0_130] : memref<64x256xf32, #tpu.memory_space<vmem>>, vector<8x128xf32>
    %c32_131 = arith.constant 32 : index
    %c128_132 = arith.constant 128 : index
    %325 = vector.load %arg8[%c32_131, %c128_132] : memref<64x256xf32, #tpu.memory_space<vmem>>, vector<8x128xf32>
    %326 = tpu.concatenate %324, %325 in 0 : vector<8x128xf32>, vector<8x128xf32> -> vector<16x128xf32>
    %cst_133 = arith.constant dense<0.000000e+00> : vector<16x256xf32>
    %327 = tpu.matmul %318, %228, %cst_133 {dimension_numbers = #tpu.dot_dimension_numbers<[1], [0], [0], [1], [0, 0, 1, 1], [], []>} : vector<16x32xf32>, vector<32x256xf32>, vector<16x256xf32> -> vector<16x256xf32>
    %328 = vector.extract_strided_slice %327 {offsets = [0, 0], sizes = [8, 128], strides = [1, 1]} : vector<16x256xf32> to vector<8x128xf32>
    %329 = vector.extract_strided_slice %327 {offsets = [8, 128], sizes = [8, 128], strides = [1, 1]} : vector<16x256xf32> to vector<8x128xf32>
    %330 = tpu.concatenate %328, %329 in 0 : vector<8x128xf32>, vector<8x128xf32> -> vector<16x128xf32>
    %331 = arith.addf %326, %330 : vector<16x128xf32>
    %332 = arith.negf %331 : vector<16x128xf32>
    %333 = math.exp %332 : vector<16x128xf32>
    %cst_134 = arith.constant 1.000000e+00 : f32
    %334 = vector.broadcast %cst_134 : f32 to vector<16x128xf32>
    %335 = arith.addf %334, %333 : vector<16x128xf32>
    %336 = arith.divf %334, %335 : vector<16x128xf32>
    %337 = vector.extract_strided_slice %336 {offsets = [0, 0], sizes = [16, 32], strides = [1, 1]} : vector<16x128xf32> to vector<16x32xf32>
    %338 = vector.extract_strided_slice %336 {offsets = [0, 32], sizes = [16, 32], strides = [1, 1]} : vector<16x128xf32> to vector<16x32xf32>
    %339 = vector.extract_strided_slice %336 {offsets = [0, 96], sizes = [16, 32], strides = [1, 1]} : vector<16x128xf32> to vector<16x32xf32>
    %340 = vector.extract_strided_slice %331 {offsets = [0, 64], sizes = [16, 32], strides = [1, 1]} : vector<16x128xf32> to vector<16x32xf32>
    %341 = math.tanh %340 : vector<16x32xf32>
    %342 = arith.mulf %338, %316 : vector<16x32xf32>
    %343 = arith.mulf %337, %341 : vector<16x32xf32>
    %344 = arith.addf %342, %343 : vector<16x32xf32>
    %345 = math.tanh %344 : vector<16x32xf32>
    %346 = arith.mulf %339, %345 : vector<16x32xf32>
    %347 = arith.addf %319, %346 : vector<16x32xf32>
    %348 = vector.extract_strided_slice %346 {offsets = [0, 0], sizes = [8, 32], strides = [1, 1]} : vector<16x32xf32> to vector<8x32xf32>
    %c24_135 = arith.constant 24 : index
    %c0_136 = arith.constant 0 : index
    %349 = vector.load %arg10[%c24_135, %c0_136] : memref<64x64xf32, #tpu.memory_space<vmem>>, vector<8x32xf32>
    tpu.vector_store %arg10[%c24_135, %c0_136], %348 {strides = array<i32>} : memref<64x64xf32, #tpu.memory_space<vmem>>, vector<8x32xf32>,
    %350 = vector.extract_strided_slice %346 {offsets = [8, 0], sizes = [8, 32], strides = [1, 1]} : vector<16x32xf32> to vector<8x32xf32>
    %c32_137 = arith.constant 32 : index
    %c32_138 = arith.constant 32 : index
    %351 = vector.load %arg10[%c32_137, %c32_138] : memref<64x64xf32, #tpu.memory_space<vmem>>, vector<8x32xf32>
    tpu.vector_store %arg10[%c32_137, %c32_138], %350 {strides = array<i32>} : memref<64x64xf32, #tpu.memory_space<vmem>>, vector<8x32xf32>,
    %c32_139 = arith.constant 32 : index
    %c0_140 = arith.constant 0 : index
    %352 = vector.load %arg8[%c32_139, %c0_140] : memref<64x256xf32, #tpu.memory_space<vmem>>, vector<8x128xf32>
    %c24_141 = arith.constant 24 : index
    %c128_142 = arith.constant 128 : index
    %353 = vector.load %arg8[%c24_141, %c128_142] : memref<64x256xf32, #tpu.memory_space<vmem>>, vector<8x128xf32>
    %354 = tpu.concatenate %352, %353 in 0 : vector<8x128xf32>, vector<8x128xf32> -> vector<16x128xf32>
    %cst_143 = arith.constant dense<0.000000e+00> : vector<16x256xf32>
    %355 = tpu.matmul %346, %228, %cst_143 {dimension_numbers = #tpu.dot_dimension_numbers<[1], [0], [0], [1], [0, 0, 1, 1], [], []>} : vector<16x32xf32>, vector<32x256xf32>, vector<16x256xf32> -> vector<16x256xf32>
    %356 = vector.extract_strided_slice %355 {offsets = [0, 0], sizes = [8, 128], strides = [1, 1]} : vector<16x256xf32> to vector<8x128xf32>
    %357 = vector.extract_strided_slice %355 {offsets = [8, 128], sizes = [8, 128], strides = [1, 1]} : vector<16x256xf32> to vector<8x128xf32>
    %358 = tpu.concatenate %356, %357 in 0 : vector<8x128xf32>, vector<8x128xf32> -> vector<16x128xf32>
    %359 = arith.addf %354, %358 : vector<16x128xf32>
    %360 = arith.negf %359 : vector<16x128xf32>
    %361 = math.exp %360 : vector<16x128xf32>
    %cst_144 = arith.constant 1.000000e+00 : f32
    %362 = vector.broadcast %cst_144 : f32 to vector<16x128xf32>
    %363 = arith.addf %362, %361 : vector<16x128xf32>
    %364 = arith.divf %362, %363 : vector<16x128xf32>
    %365 = vector.extract_strided_slice %364 {offsets = [0, 0], sizes = [16, 32], strides = [1, 1]} : vector<16x128xf32> to vector<16x32xf32>
    %366 = vector.extract_strided_slice %364 {offsets = [0, 32], sizes = [16, 32], strides = [1, 1]} : vector<16x128xf32> to vector<16x32xf32>
    %367 = vector.extract_strided_slice %364 {offsets = [0, 96], sizes = [16, 32], strides = [1, 1]} : vector<16x128xf32> to vector<16x32xf32>
    %368 = vector.extract_strided_slice %359 {offsets = [0, 64], sizes = [16, 32], strides = [1, 1]} : vector<16x128xf32> to vector<16x32xf32>
    %369 = math.tanh %368 : vector<16x32xf32>
    %370 = arith.mulf %366, %344 : vector<16x32xf32>
    %371 = arith.mulf %365, %369 : vector<16x32xf32>
    %372 = arith.addf %370, %371 : vector<16x32xf32>
    %373 = math.tanh %372 : vector<16x32xf32>
    %374 = arith.mulf %367, %373 : vector<16x32xf32>
    %375 = arith.addf %347, %374 : vector<16x32xf32>
    %376 = vector.extract_strided_slice %374 {offsets = [0, 0], sizes = [8, 32], strides = [1, 1]} : vector<16x32xf32> to vector<8x32xf32>
    %c32_145 = arith.constant 32 : index
    %c0_146 = arith.constant 0 : index
    %377 = vector.load %arg10[%c32_145, %c0_146] : memref<64x64xf32, #tpu.memory_space<vmem>>, vector<8x32xf32>
    tpu.vector_store %arg10[%c32_145, %c0_146], %376 {strides = array<i32>} : memref<64x64xf32, #tpu.memory_space<vmem>>, vector<8x32xf32>,
    %378 = vector.extract_strided_slice %374 {offsets = [8, 0], sizes = [8, 32], strides = [1, 1]} : vector<16x32xf32> to vector<8x32xf32>
    %c24_147 = arith.constant 24 : index
    %c32_148 = arith.constant 32 : index
    %379 = vector.load %arg10[%c24_147, %c32_148] : memref<64x64xf32, #tpu.memory_space<vmem>>, vector<8x32xf32>
    tpu.vector_store %arg10[%c24_147, %c32_148], %378 {strides = array<i32>} : memref<64x64xf32, #tpu.memory_space<vmem>>, vector<8x32xf32>,
    %c40_149 = arith.constant 40 : index
    %c0_150 = arith.constant 0 : index
    %380 = vector.load %arg8[%c40_149, %c0_150] : memref<64x256xf32, #tpu.memory_space<vmem>>, vector<8x128xf32>
    %c16_151 = arith.constant 16 : index
    %c128_152 = arith.constant 128 : index
    %381 = vector.load %arg8[%c16_151, %c128_152] : memref<64x256xf32, #tpu.memory_space<vmem>>, vector<8x128xf32>
    %382 = tpu.concatenate %380, %381 in 0 : vector<8x128xf32>, vector<8x128xf32> -> vector<16x128xf32>
    %cst_153 = arith.constant dense<0.000000e+00> : vector<16x256xf32>
    %383 = tpu.matmul %374, %228, %cst_153 {dimension_numbers = #tpu.dot_dimension_numbers<[1], [0], [0], [1], [0, 0, 1, 1], [], []>} : vector<16x32xf32>, vector<32x256xf32>, vector<16x256xf32> -> vector<16x256xf32>
    %384 = vector.extract_strided_slice %383 {offsets = [0, 0], sizes = [8, 128], strides = [1, 1]} : vector<16x256xf32> to vector<8x128xf32>
    %385 = vector.extract_strided_slice %383 {offsets = [8, 128], sizes = [8, 128], strides = [1, 1]} : vector<16x256xf32> to vector<8x128xf32>
    %386 = tpu.concatenate %384, %385 in 0 : vector<8x128xf32>, vector<8x128xf32> -> vector<16x128xf32>
    %387 = arith.addf %382, %386 : vector<16x128xf32>
    %388 = arith.negf %387 : vector<16x128xf32>
    %389 = math.exp %388 : vector<16x128xf32>
    %cst_154 = arith.constant 1.000000e+00 : f32
    %390 = vector.broadcast %cst_154 : f32 to vector<16x128xf32>
    %391 = arith.addf %390, %389 : vector<16x128xf32>
    %392 = arith.divf %390, %391 : vector<16x128xf32>
    %393 = vector.extract_strided_slice %392 {offsets = [0, 0], sizes = [16, 32], strides = [1, 1]} : vector<16x128xf32> to vector<16x32xf32>
    %394 = vector.extract_strided_slice %392 {offsets = [0, 32], sizes = [16, 32], strides = [1, 1]} : vector<16x128xf32> to vector<16x32xf32>
    %395 = vector.extract_strided_slice %392 {offsets = [0, 96], sizes = [16, 32], strides = [1, 1]} : vector<16x128xf32> to vector<16x32xf32>
    %396 = vector.extract_strided_slice %387 {offsets = [0, 64], sizes = [16, 32], strides = [1, 1]} : vector<16x128xf32> to vector<16x32xf32>
    %397 = math.tanh %396 : vector<16x32xf32>
    %398 = arith.mulf %394, %372 : vector<16x32xf32>
    %399 = arith.mulf %393, %397 : vector<16x32xf32>
    %400 = arith.addf %398, %399 : vector<16x32xf32>
    %401 = math.tanh %400 : vector<16x32xf32>
    %402 = arith.mulf %395, %401 : vector<16x32xf32>
    %403 = arith.addf %375, %402 : vector<16x32xf32>
    %404 = vector.extract_strided_slice %402 {offsets = [0, 0], sizes = [8, 32], strides = [1, 1]} : vector<16x32xf32> to vector<8x32xf32>
    %c40_155 = arith.constant 40 : index
    %c0_156 = arith.constant 0 : index
    %405 = vector.load %arg10[%c40_155, %c0_156] : memref<64x64xf32, #tpu.memory_space<vmem>>, vector<8x32xf32>
    tpu.vector_store %arg10[%c40_155, %c0_156], %404 {strides = array<i32>} : memref<64x64xf32, #tpu.memory_space<vmem>>, vector<8x32xf32>,
    %406 = vector.extract_strided_slice %402 {offsets = [8, 0], sizes = [8, 32], strides = [1, 1]} : vector<16x32xf32> to vector<8x32xf32>
    %c16_157 = arith.constant 16 : index
    %c32_158 = arith.constant 32 : index
    %407 = vector.load %arg10[%c16_157, %c32_158] : memref<64x64xf32, #tpu.memory_space<vmem>>, vector<8x32xf32>
    tpu.vector_store %arg10[%c16_157, %c32_158], %406 {strides = array<i32>} : memref<64x64xf32, #tpu.memory_space<vmem>>, vector<8x32xf32>,
    %c48_159 = arith.constant 48 : index
    %c0_160 = arith.constant 0 : index
    %408 = vector.load %arg8[%c48_159, %c0_160] : memref<64x256xf32, #tpu.memory_space<vmem>>, vector<8x128xf32>
    %c8_161 = arith.constant 8 : index
    %c128_162 = arith.constant 128 : index
    %409 = vector.load %arg8[%c8_161, %c128_162] : memref<64x256xf32, #tpu.memory_space<vmem>>, vector<8x128xf32>
    %410 = tpu.concatenate %408, %409 in 0 : vector<8x128xf32>, vector<8x128xf32> -> vector<16x128xf32>
    %cst_163 = arith.constant dense<0.000000e+00> : vector<16x256xf32>
    %411 = tpu.matmul %402, %228, %cst_163 {dimension_numbers = #tpu.dot_dimension_numbers<[1], [0], [0], [1], [0, 0, 1, 1], [], []>} : vector<16x32xf32>, vector<32x256xf32>, vector<16x256xf32> -> vector<16x256xf32>
    %412 = vector.extract_strided_slice %411 {offsets = [0, 0], sizes = [8, 128], strides = [1, 1]} : vector<16x256xf32> to vector<8x128xf32>
    %413 = vector.extract_strided_slice %411 {offsets = [8, 128], sizes = [8, 128], strides = [1, 1]} : vector<16x256xf32> to vector<8x128xf32>
    %414 = tpu.concatenate %412, %413 in 0 : vector<8x128xf32>, vector<8x128xf32> -> vector<16x128xf32>
    %415 = arith.addf %410, %414 : vector<16x128xf32>
    %416 = arith.negf %415 : vector<16x128xf32>
    %417 = math.exp %416 : vector<16x128xf32>
    %cst_164 = arith.constant 1.000000e+00 : f32
    %418 = vector.broadcast %cst_164 : f32 to vector<16x128xf32>
    %419 = arith.addf %418, %417 : vector<16x128xf32>
    %420 = arith.divf %418, %419 : vector<16x128xf32>
    %421 = vector.extract_strided_slice %420 {offsets = [0, 0], sizes = [16, 32], strides = [1, 1]} : vector<16x128xf32> to vector<16x32xf32>
    %422 = vector.extract_strided_slice %420 {offsets = [0, 32], sizes = [16, 32], strides = [1, 1]} : vector<16x128xf32> to vector<16x32xf32>
    %423 = vector.extract_strided_slice %420 {offsets = [0, 96], sizes = [16, 32], strides = [1, 1]} : vector<16x128xf32> to vector<16x32xf32>
    %424 = vector.extract_strided_slice %415 {offsets = [0, 64], sizes = [16, 32], strides = [1, 1]} : vector<16x128xf32> to vector<16x32xf32>
    %425 = math.tanh %424 : vector<16x32xf32>
    %426 = arith.mulf %422, %400 : vector<16x32xf32>
    %427 = arith.mulf %421, %425 : vector<16x32xf32>
    %428 = arith.addf %426, %427 : vector<16x32xf32>
    %429 = math.tanh %428 : vector<16x32xf32>
    %430 = arith.mulf %423, %429 : vector<16x32xf32>
    %431 = arith.addf %403, %430 : vector<16x32xf32>
    %432 = vector.extract_strided_slice %430 {offsets = [0, 0], sizes = [8, 32], strides = [1, 1]} : vector<16x32xf32> to vector<8x32xf32>
    %c48_165 = arith.constant 48 : index
    %c0_166 = arith.constant 0 : index
    %433 = vector.load %arg10[%c48_165, %c0_166] : memref<64x64xf32, #tpu.memory_space<vmem>>, vector<8x32xf32>
    tpu.vector_store %arg10[%c48_165, %c0_166], %432 {strides = array<i32>} : memref<64x64xf32, #tpu.memory_space<vmem>>, vector<8x32xf32>,
    %434 = vector.extract_strided_slice %430 {offsets = [8, 0], sizes = [8, 32], strides = [1, 1]} : vector<16x32xf32> to vector<8x32xf32>
    %c8_167 = arith.constant 8 : index
    %c32_168 = arith.constant 32 : index
    %435 = vector.load %arg10[%c8_167, %c32_168] : memref<64x64xf32, #tpu.memory_space<vmem>>, vector<8x32xf32>
    tpu.vector_store %arg10[%c8_167, %c32_168], %434 {strides = array<i32>} : memref<64x64xf32, #tpu.memory_space<vmem>>, vector<8x32xf32>,
    %c56_169 = arith.constant 56 : index
    %c0_170 = arith.constant 0 : index
    %436 = vector.load %arg8[%c56_169, %c0_170] : memref<64x256xf32, #tpu.memory_space<vmem>>, vector<8x128xf32>
    %c0_171 = arith.constant 0 : index
    %c128_172 = arith.constant 128 : index
    %437 = vector.load %arg8[%c0_171, %c128_172] : memref<64x256xf32, #tpu.memory_space<vmem>>, vector<8x128xf32>
    %438 = tpu.concatenate %436, %437 in 0 : vector<8x128xf32>, vector<8x128xf32> -> vector<16x128xf32>
    %cst_173 = arith.constant dense<0.000000e+00> : vector<16x256xf32>
    %439 = tpu.matmul %430, %228, %cst_173 {dimension_numbers = #tpu.dot_dimension_numbers<[1], [0], [0], [1], [0, 0, 1, 1], [], []>} : vector<16x32xf32>, vector<32x256xf32>, vector<16x256xf32> -> vector<16x256xf32>
    %440 = vector.extract_strided_slice %439 {offsets = [0, 0], sizes = [8, 128], strides = [1, 1]} : vector<16x256xf32> to vector<8x128xf32>
    %441 = vector.extract_strided_slice %439 {offsets = [8, 128], sizes = [8, 128], strides = [1, 1]} : vector<16x256xf32> to vector<8x128xf32>
    %442 = tpu.concatenate %440, %441 in 0 : vector<8x128xf32>, vector<8x128xf32> -> vector<16x128xf32>
    %443 = arith.addf %438, %442 : vector<16x128xf32>
    %444 = arith.negf %443 : vector<16x128xf32>
    %445 = math.exp %444 : vector<16x128xf32>
    %cst_174 = arith.constant 1.000000e+00 : f32
    %446 = vector.broadcast %cst_174 : f32 to vector<16x128xf32>
    %447 = arith.addf %446, %445 : vector<16x128xf32>
    %448 = arith.divf %446, %447 : vector<16x128xf32>
    %449 = vector.extract_strided_slice %448 {offsets = [0, 0], sizes = [16, 32], strides = [1, 1]} : vector<16x128xf32> to vector<16x32xf32>
    %450 = vector.extract_strided_slice %448 {offsets = [0, 32], sizes = [16, 32], strides = [1, 1]} : vector<16x128xf32> to vector<16x32xf32>
    %451 = vector.extract_strided_slice %448 {offsets = [0, 96], sizes = [16, 32], strides = [1, 1]} : vector<16x128xf32> to vector<16x32xf32>
    %452 = vector.extract_strided_slice %443 {offsets = [0, 64], sizes = [16, 32], strides = [1, 1]} : vector<16x128xf32> to vector<16x32xf32>
    %453 = math.tanh %452 : vector<16x32xf32>
    %454 = arith.mulf %450, %428 : vector<16x32xf32>
    %455 = arith.mulf %449, %453 : vector<16x32xf32>
    %456 = arith.addf %454, %455 : vector<16x32xf32>
    %457 = math.tanh %456 : vector<16x32xf32>
    %458 = arith.mulf %451, %457 : vector<16x32xf32>
    %459 = arith.addf %431, %458 : vector<16x32xf32>
    %460 = vector.extract_strided_slice %458 {offsets = [0, 0], sizes = [8, 32], strides = [1, 1]} : vector<16x32xf32> to vector<8x32xf32>
    %c56_175 = arith.constant 56 : index
    %c0_176 = arith.constant 0 : index
    %461 = vector.load %arg10[%c56_175, %c0_176] : memref<64x64xf32, #tpu.memory_space<vmem>>, vector<8x32xf32>
    tpu.vector_store %arg10[%c56_175, %c0_176], %460 {strides = array<i32>} : memref<64x64xf32, #tpu.memory_space<vmem>>, vector<8x32xf32>,
    %462 = vector.extract_strided_slice %458 {offsets = [8, 0], sizes = [8, 32], strides = [1, 1]} : vector<16x32xf32> to vector<8x32xf32>
    %c0_177 = arith.constant 0 : index
    %c32_178 = arith.constant 32 : index
    %463 = vector.load %arg10[%c0_177, %c32_178] : memref<64x64xf32, #tpu.memory_space<vmem>>, vector<8x32xf32>
    tpu.vector_store %arg10[%c0_177, %c32_178], %462 {strides = array<i32>} : memref<64x64xf32, #tpu.memory_space<vmem>>, vector<8x32xf32>,
    %464 = vector.extract_strided_slice %459 {offsets = [0, 0], sizes = [8, 32], strides = [1, 1]} : vector<16x32xf32> to vector<8x32xf32>
    %cst_179 = arith.constant 1.250000e-01 : f32
    %465 = vector.broadcast %cst_179 : f32 to vector<8x32xf32>
    %466 = arith.mulf %464, %465 : vector<8x32xf32>
    %467 = vector.extract_strided_slice %459 {offsets = [8, 0], sizes = [8, 32], strides = [1, 1]} : vector<16x32xf32> to vector<8x32xf32>
    %cst_180 = arith.constant 1.250000e-01 : f32
    %468 = vector.broadcast %cst_180 : f32 to vector<8x32xf32>
    %469 = arith.mulf %467, %468 : vector<8x32xf32>
    %c0_181 = arith.constant 0 : index
    %c0_182 = arith.constant 0 : index
    %470 = vector.load %arg5[%c0_181, %c0_182] : memref<120x128xf32, #tpu.memory_space<vmem>>, vector<64x32xf32>
    %c0_183 = arith.constant 0 : index
    %c0_184 = arith.constant 0 : index
    %471 = vector.load %arg6[%c0_183, %c0_184] : memref<4x128xf32, #tpu.memory_space<vmem>>, vector<1x32xf32>
    %472 = vector.extract_strided_slice %470 {offsets = [0, 0], sizes = [32, 32], strides = [1, 1]} : vector<64x32xf32> to vector<32x32xf32>
    %cst_185 = arith.constant dense<0.000000e+00> : vector<8x32xf32>
    %473 = tpu.matmul %466, %472, %cst_185 {dimension_numbers = #tpu.dot_dimension_numbers<[1], [0], [0], [1], [0, 0, 1, 1], [], []>} : vector<8x32xf32>, vector<32x32xf32>, vector<8x32xf32> -> vector<8x32xf32>
    %474 = vector.extract_strided_slice %470 {offsets = [32, 0], sizes = [32, 32], strides = [1, 1]} : vector<64x32xf32> to vector<32x32xf32>
    %cst_186 = arith.constant dense<0.000000e+00> : vector<8x32xf32>
    %475 = tpu.matmul %469, %474, %cst_186 {dimension_numbers = #tpu.dot_dimension_numbers<[1], [0], [0], [1], [0, 0, 1, 1], [], []>} : vector<8x32xf32>, vector<32x32xf32>, vector<8x32xf32> -> vector<8x32xf32>
    %476 = arith.addf %473, %475 : vector<8x32xf32>
    %477 = vector.broadcast %471 : vector<1x32xf32> to vector<8x32xf32>
    %478 = arith.addf %476, %477 : vector<8x32xf32>
    %479 = vector.extract_strided_slice %478 {offsets = [0, 0], sizes = [4, 32], strides = [1, 1]} : vector<8x32xf32> to vector<4x32xf32>
    %cst_187 = arith.constant dense<0.000000e+00> : vector<32xf32>
    %480 = vector.multi_reduction <add>, %479, %cst_187 [0] : vector<4x32xf32> to vector<32xf32>
    %481 = vector.shape_cast %480 : vector<32xf32> to vector<1x32xf32>
    %cst_188 = arith.constant 4.000000e+00 : f32
    %482 = vector.broadcast %cst_188 : f32 to vector<1x32xf32>
    %483 = arith.divf %481, %482 : vector<1x32xf32>
    %484 = vector.broadcast %483 : vector<1x32xf32> to vector<4x32xf32>
    %485 = arith.subf %479, %484 : vector<4x32xf32>
    %486 = arith.mulf %485, %485 : vector<4x32xf32>
    %cst_189 = arith.constant dense<0.000000e+00> : vector<32xf32>
    %487 = vector.multi_reduction <add>, %486, %cst_189 [0] : vector<4x32xf32> to vector<32xf32>
    %488 = vector.shape_cast %487 : vector<32xf32> to vector<1x32xf32>
    %cst_190 = arith.constant 4.000000e+00 : f32
    %489 = vector.broadcast %cst_190 : f32 to vector<1x32xf32>
    %490 = arith.divf %488, %489 : vector<1x32xf32>
    %491 = vector.broadcast %483 : vector<1x32xf32> to vector<8x32xf32>
    %492 = arith.subf %478, %491 : vector<8x32xf32>
    %cst_191 = arith.constant 9.99999974E-6 : f32
    %493 = vector.broadcast %cst_191 : f32 to vector<1x32xf32>
    %494 = arith.addf %490, %493 : vector<1x32xf32>
    %495 = math.rsqrt %494 : vector<1x32xf32>
    %496 = vector.broadcast %495 : vector<1x32xf32> to vector<8x32xf32>
    %497 = arith.mulf %492, %496 : vector<8x32xf32>
    %cst_192 = arith.constant 0.000000e+00 : f32
    %498 = vector.broadcast %cst_192 : f32 to vector<8x32xf32>
    %499 = arith.maximumf %497, %498 : vector<8x32xf32>
    %c64 = arith.constant 64 : index
    %c0_193 = arith.constant 0 : index
    %500 = vector.load %arg5[%c64, %c0_193] : memref<120x128xf32, #tpu.memory_space<vmem>>, vector<32x16xf32>
    %c1_194 = arith.constant 1 : index
    %c0_195 = arith.constant 0 : index
    %501 = vector.load %arg6[%c1_194, %c0_195] : memref<4x128xf32, #tpu.memory_space<vmem>>, vector<1x16xf32>
    %cst_196 = arith.constant dense<0.000000e+00> : vector<8x16xf32>
    %502 = tpu.matmul %499, %500, %cst_196 {dimension_numbers = #tpu.dot_dimension_numbers<[1], [0], [0], [1], [0, 0, 1, 1], [], []>} : vector<8x32xf32>, vector<32x16xf32>, vector<8x16xf32> -> vector<8x16xf32>
    %503 = vector.broadcast %501 : vector<1x16xf32> to vector<8x16xf32>
    %504 = arith.addf %502, %503 : vector<8x16xf32>
    %505 = vector.extract_strided_slice %504 {offsets = [0, 0], sizes = [4, 16], strides = [1, 1]} : vector<8x16xf32> to vector<4x16xf32>
    %cst_197 = arith.constant dense<0.000000e+00> : vector<16xf32>
    %506 = vector.multi_reduction <add>, %505, %cst_197 [0] : vector<4x16xf32> to vector<16xf32>
    %507 = vector.shape_cast %506 : vector<16xf32> to vector<1x16xf32>
    %cst_198 = arith.constant 4.000000e+00 : f32
    %508 = vector.broadcast %cst_198 : f32 to vector<1x16xf32>
    %509 = arith.divf %507, %508 : vector<1x16xf32>
    %510 = vector.broadcast %509 : vector<1x16xf32> to vector<4x16xf32>
    %511 = arith.subf %505, %510 : vector<4x16xf32>
    %512 = arith.mulf %511, %511 : vector<4x16xf32>
    %cst_199 = arith.constant dense<0.000000e+00> : vector<16xf32>
    %513 = vector.multi_reduction <add>, %512, %cst_199 [0] : vector<4x16xf32> to vector<16xf32>
    %514 = vector.shape_cast %513 : vector<16xf32> to vector<1x16xf32>
    %cst_200 = arith.constant 4.000000e+00 : f32
    %515 = vector.broadcast %cst_200 : f32 to vector<1x16xf32>
    %516 = arith.divf %514, %515 : vector<1x16xf32>
    %517 = vector.broadcast %509 : vector<1x16xf32> to vector<8x16xf32>
    %518 = arith.subf %504, %517 : vector<8x16xf32>
    %cst_201 = arith.constant 9.99999974E-6 : f32
    %519 = vector.broadcast %cst_201 : f32 to vector<1x16xf32>
    %520 = arith.addf %516, %519 : vector<1x16xf32>
    %521 = math.rsqrt %520 : vector<1x16xf32>
    %522 = vector.broadcast %521 : vector<1x16xf32> to vector<8x16xf32>
    %523 = arith.mulf %518, %522 : vector<8x16xf32>
    %cst_202 = arith.constant 0.000000e+00 : f32
    %524 = vector.broadcast %cst_202 : f32 to vector<8x16xf32>
    %525 = arith.maximumf %523, %524 : vector<8x16xf32>
    %c96 = arith.constant 96 : index
    %c0_203 = arith.constant 0 : index
    %526 = vector.load %arg5[%c96, %c0_203] : memref<120x128xf32, #tpu.memory_space<vmem>>, vector<16x8xf32>
    %c2 = arith.constant 2 : index
    %c0_204 = arith.constant 0 : index
    %527 = vector.load %arg6[%c2, %c0_204] : memref<4x128xf32, #tpu.memory_space<vmem>>, vector<1x8xf32>
    %cst_205 = arith.constant dense<0.000000e+00> : vector<8x8xf32>
    %528 = tpu.matmul %525, %526, %cst_205 {dimension_numbers = #tpu.dot_dimension_numbers<[1], [0], [0], [1], [0, 0, 1, 1], [], []>} : vector<8x16xf32>, vector<16x8xf32>, vector<8x8xf32> -> vector<8x8xf32>
    %529 = vector.broadcast %527 : vector<1x8xf32> to vector<8x8xf32>
    %530 = arith.addf %528, %529 : vector<8x8xf32>
    %531 = vector.extract_strided_slice %530 {offsets = [0, 0], sizes = [4, 8], strides = [1, 1]} : vector<8x8xf32> to vector<4x8xf32>
    %cst_206 = arith.constant dense<0.000000e+00> : vector<8xf32>
    %532 = vector.multi_reduction <add>, %531, %cst_206 [0] : vector<4x8xf32> to vector<8xf32>
    %533 = vector.shape_cast %532 : vector<8xf32> to vector<1x8xf32>
    %cst_207 = arith.constant 4.000000e+00 : f32
    %534 = vector.broadcast %cst_207 : f32 to vector<1x8xf32>
    %535 = arith.divf %533, %534 : vector<1x8xf32>
    %536 = vector.broadcast %535 : vector<1x8xf32> to vector<4x8xf32>
    %537 = arith.subf %531, %536 : vector<4x8xf32>
    %538 = arith.mulf %537, %537 : vector<4x8xf32>
    %cst_208 = arith.constant dense<0.000000e+00> : vector<8xf32>
    %539 = vector.multi_reduction <add>, %538, %cst_208 [0] : vector<4x8xf32> to vector<8xf32>
    %540 = vector.shape_cast %539 : vector<8xf32> to vector<1x8xf32>
    %cst_209 = arith.constant 4.000000e+00 : f32
    %541 = vector.broadcast %cst_209 : f32 to vector<1x8xf32>
    %542 = arith.divf %540, %541 : vector<1x8xf32>
    %543 = vector.broadcast %535 : vector<1x8xf32> to vector<8x8xf32>
    %544 = arith.subf %530, %543 : vector<8x8xf32>
    %cst_210 = arith.constant 9.99999974E-6 : f32
    %545 = vector.broadcast %cst_210 : f32 to vector<1x8xf32>
    %546 = arith.addf %542, %545 : vector<1x8xf32>
    %547 = math.rsqrt %546 : vector<1x8xf32>
    %548 = vector.broadcast %547 : vector<1x8xf32> to vector<8x8xf32>
    %549 = arith.mulf %544, %548 : vector<8x8xf32>
    %cst_211 = arith.constant 0.000000e+00 : f32
    %550 = vector.broadcast %cst_211 : f32 to vector<8x8xf32>
    %551 = arith.maximumf %549, %550 : vector<8x8xf32>
    %c112 = arith.constant 112 : index
    %c0_212 = arith.constant 0 : index
    %552 = vector.load %arg5[%c112, %c0_212] : memref<120x128xf32, #tpu.memory_space<vmem>>, vector<8x128xf32>
    %c3 = arith.constant 3 : index
    %c0_213 = arith.constant 0 : index
    %553 = vector.load %arg6[%c3, %c0_213] : memref<4x128xf32, #tpu.memory_space<vmem>>, vector<1x128xf32>
    %cst_214 = arith.constant dense<0.000000e+00> : vector<8x128xf32>
    %554 = tpu.matmul %551, %552, %cst_214 {dimension_numbers = #tpu.dot_dimension_numbers<[1], [0], [0], [1], [0, 0, 1, 1], [], []>} : vector<8x8xf32>, vector<8x128xf32>, vector<8x128xf32> -> vector<8x128xf32>
    %555 = vector.broadcast %553 : vector<1x128xf32> to vector<8x128xf32>
    %556 = arith.addf %554, %555 : vector<8x128xf32>
    %c0_215 = arith.constant 0 : index
    %c0_216 = arith.constant 0 : index
    %557 = vector.load %arg7[%c0_215, %c0_216] : memref<8x128xf32, #tpu.memory_space<vmem>>, vector<8x128xf32>
    tpu.vector_store %arg7[%c0_215, %c0_216], %556 {strides = array<i32>} : memref<8x128xf32, #tpu.memory_space<vmem>>, vector<8x128xf32>,
    return
  }
}

</mosaic_0001>

<bundles_post_ra>
// kernel: tpu_custom_call.1
= control target key start
LH: loop header
LB: loop body
LE: loop exit
PB: predicated region body
PF: predicated region fallthrough
CT: control target
= control target key end

     0   :  { %12 = vsyncpa [#allocation6], 0  ;;  %s4639_s0 = inlined_call_operand.vmem [shape: f32[64,16], index: 0, kind: input, shape index: {}]   ;;  %s4640_s1 = inlined_call_operand.vmem [shape: f32[16,256], index: 1, kind: input, shape index: {}]   ;;  %s4641_s2 = inlined_call_operand.hbm [shape: f32[1,64,256], index: 2, kind: input, shape index: {}]   ;;  %s4642_s3 = inlined_call_operand.hbm [shape: f32[2,32,256], index: 3, kind: input, shape index: {}]   ;;  %s4643_s4 = inlined_call_operand.vmem [shape: f32[2,256], index: 4, kind: input, shape index: {}]   ;;  %s4644_s5 = inlined_call_operand.hbm [shape: f32[120,128], index: 5, kind: input, shape index: {}]   ;;  %s4645_s6 = inlined_call_operand.vmem [shape: f32[4,128], index: 6, kind: input, shape index: {}]   ;;  %s4646_s7 = inlined_call_operand.hbm [shape: f32[8,128], index: 7, kind: output, shape index: {}]  }
   0x1   :  { %13 = vsyncpa [#allocation9], 0 }
   0x2   :  { %14 = vsyncpa [#allocation7], 0  ;;  %s3935_s24 = smov [#allocation8]   ;;  %s3936_s26 = smov [#allocation5]  }
   0x3   :  { %s36_s25 = sshll.u32 %s3935_s24, 4  ;;  %s24_s27 = sshll.u32 %s3936_s26, 4  ;;  %s37_s25 = int_to_ptr.vmem [resolvable:$true] %s36_s25  ;;  %s3988_s27 = int_to_ptr.vmem [resolvable:$true] %s24_s27 }
   0x4   :  { %s3841_s30 = scalar_lea.hbm %s4642_s3, 2048 }
   0x5   :  { %p3842_p0 = scmp.ne.s32.totalorder %s4642_s3, %s3841_s30  ;;  %p3845_p1 = scmp.lt.u32.totalorder %s3841_s30, %s4642_s3 }
   0x7   :  { %p3847_p2 = pnand %p3845_p1, %p3842_p0 }
   0x9   :  { %3850 = shalt.err (!%p3847_p2)
}
   0xa   :  { %s3851_s12 = scalar_lea.vmem %s37_s25, 2048  ;;  %p3856_p4 = scmp.lt.s32.totalorder %s37_s25, %s37_s25 }
   0xb   :  { %p3852_p3 = scmp.ne.s32.totalorder %s37_s25, %s3851_s12  ;;  %p3857_p5 = scmp.lt.s32.totalorder %s3851_s12, %s3851_s12 }
   0xd   :  { %p3858_p6 = por %p3857_p5, %p3856_p4 }
   0xf   :  { %p3859_p7 = pnand %p3858_p6, %p3852_p3 }
  0x11   :  { %3862 = shalt.err (!%p3859_p7)
}
  0x12   :  { %s3937_s13 = smov 256   ;;  %s3938_s14 = smov 16  }
  0x13   :  { %42 = dma.hbm_to_vmem [thread:$0]  %s4642_s3, 2048, %s37_s25, [#allocation9], %s3937_s13, %s3937_s13, %s3938_s14  }
  0x14   :  { %s3863_s19 = scalar_lea.hbm %s4641_s2, 2048 }
  0x15   :  { %p3864_p8 = scmp.ne.s32.totalorder %s4641_s2, %s3863_s19  ;;  %p3867_p9 = scmp.lt.u32.totalorder %s3863_s19, %s4641_s2 }
  0x17   :  { %p3869_p10 = pnand %p3867_p9, %p3864_p8 }
  0x19   :  { %3872 = shalt.err (!%p3869_p10)
}
  0x1a   :  { %s3873_s24 = scalar_lea.vmem %s3988_s27, 2048  ;;  %p3878_p12 = scmp.lt.s32.totalorder %s3988_s27, %s3988_s27 }
  0x1b   :  { %p3874_p11 = scmp.ne.s32.totalorder %s3988_s27, %s3873_s24  ;;  %p3879_p13 = scmp.lt.s32.totalorder %s3873_s24, %s3873_s24 }
  0x1d   :  { %p3880_p0 = por %p3879_p13, %p3878_p12 }
  0x1f   :  { %p3881_p1 = pnand %p3880_p0, %p3874_p11 }
  0x21   :  { %3884 = shalt.err (!%p3881_p1)
}
  0x22   :  { %30 = dma.hbm_to_vmem [thread:$0]  %s4641_s2, 2048, %s3988_s27, [#allocation6], %s3937_s13, %s3937_s13, %s3938_s14  }
  0x23   :  { %s3939_s26 = smov [#allocation10]   ;;  %s3885_s8 = scalar_lea.hbm %s4644_s5, 1920 }
  0x24   :  { %s50_s28 = sshll.u32 %s3939_s26, 4  ;;  %p3886_p2 = scmp.ne.s32.totalorder %s4644_s5, %s3885_s8  ;;  %s51_s28 = int_to_ptr.vmem [resolvable:$true] %s50_s28 }
  0x25   :  { %p3889_p3 = scmp.lt.u32.totalorder %s3885_s8, %s4644_s5 }
  0x27   :  { %p3891_p4 = pnand %p3889_p3, %p3886_p2 }
  0x29   :  { %3894 = shalt.err (!%p3891_p4)
}
  0x2a   :  { %s3895_s15 = scalar_lea.vmem %s51_s28, 1920  ;;  %p3900_p6 = scmp.lt.s32.totalorder %s51_s28, %s51_s28 }
  0x2b   :  { %p3896_p5 = scmp.ne.s32.totalorder %s51_s28, %s3895_s15  ;;  %p3901_p7 = scmp.lt.s32.totalorder %s3895_s15, %s3895_s15 }
  0x2d   :  { %p3902_p8 = por %p3901_p7, %p3900_p6 }
  0x2f   :  { %p3903_p9 = pnand %p3902_p8, %p3896_p5 }
  0x31   :  { %3906 = shalt.err (!%p3903_p9)
}
  0x32   :  { %s3940_s2 = smov 128   ;;  %s3941_s27 = smov 8  }
  0x33   :  { %56 = dma.hbm_to_vmem [thread:$0]  %s4644_s5, 1920, %s51_s28, [#allocation9], %s3940_s2, %s3940_s2, %s3941_s27  }
  0x34   :  { %3929 = dma.done.wait [#allocation6], 2048  }
  0x35   :  { %3930 = vsyncadd [#allocation6], 4294965248 }
  0x36   :  { %3931 = dma.done.wait [#allocation9], 3968  }
  0x37   :  { %3932 = vsyncadd [#allocation9], 4294963328  ;;  %v3942_v0 = vmov 0.0   ;;  %v86_v1 = vld [vmem:[%s4640_s1 + $0x8] sm:$0xff]  ;;  %v88_v2 = vld [vmem:[%s4640_s1 + $0x18] sm:$0xff]  ;;  %vm100_vm0 = vcmask 130048   ;;  %v90_v27 = vlaneseq }
  0x38   :  { %189 = vmatprep.mubr.f32.mxu0 %v3942_v0  ;;  %324 = vmatprep.mubr.f32.mxu1 %v3942_v0  ;;  %v69_v3 = vld [vmem:[#allocation8 + $0x8] sm:$0xff]  ;;  %v3397_v4 = vpack.c.bf16 %v88_v2, %v86_v1  ;;  %v71_v5 = vld [vmem:[#allocation8 + $0x18] sm:$0xff]  ;;  %v85_v6 = vld [vmem:[%s4640_s1] sm:$0xff]  ;;  %s3944_s14 = smov 32   ;;  %vm256_vm1 = vcmask 261120   ;;  %vm394_vm2 = vcmask 523520  }
  0x39   :  { %v87_v7 = vld [vmem:[%s4640_s1 + $0x10] sm:$0xff]  ;;  %v4045_v8 = vpack.c.bf16 %v71_v5, %v69_v3  ;;  %v68_v10 = vld [vmem:[#allocation8] sm:$0xff]  ;;  %v73_v13 = vld [vmem:[#allocation8 + $0x28] sm:$0xff]  ;;  %v4111_v28 = vshrl.u32 %v90_v27, 7  ;;  %vm1443_vm3 = vcmask 523264   ;;  %vm3946_vm4 = vmmov 0  }
  0x3a   :  { %v3399_v9 = vpack.c.bf16 %v87_v7, %v85_v6  ;;  %v70_v11 = vld [vmem:[#allocation8 + $0x10] sm:$0xff]  ;;  %3398 = vmatprep.subr.bf16.mxu0 %v3397_v4  ;;  %v75_v14 = vld [vmem:[#allocation8 + $0x38] sm:$0xff]  ;;  %v72_v15 = vld [vmem:[#allocation8 + $0x20] sm:$0xff]  ;;  %vm2917_vm5 = vcmask 257024   ;;  %vm3023_vm6 = vcmask 125952   ;;  %vm3126_vm7 = vcmask 60416  }
  0x3b   :  { %v4047_v12 = vpack.c.bf16 %v70_v11, %v68_v10  ;;  %3402 = vmatprep.subr.bf16.mxu1 %v4045_v8  ;;  %v77_v16 = vld [vmem:[%s4639_s0] sm:$0xff]  ;;  %v4053_v17 = vpack.c.bf16 %v75_v14, %v73_v13  ;;  %v74_v18 = vld [vmem:[#allocation8 + $0x30] sm:$0xff]  ;;  %v78_v20 = vld [vmem:[%s4639_s0 + $0x8] sm:$0xff]  ;;  %v96_v29 = vsub.s32 1, %v4111_v28  ;;  %v92_v31 = vsub.s32 0, %v4111_v28  ;;  %s3947_s24 = smov [#allocation11]  }
  0x3c   :  { %3400 = vmatpush1.bf16.msra.mxu0 %v3399_v9  ;;  %v4056_v19 = vpack.c.bf16 %v74_v18, %v72_v15  ;;  %v79_v21 = vld [vmem:[%s4639_s0 + $0x10] sm:$0xff]  ;;  %v80_v22 = vld [vmem:[%s4639_s0 + $0x18] sm:$0xff]  ;;  %v81_v23 = vld [vmem:[%s4639_s0 + $0x20] sm:$0xff]  ;;  %vm3155_vm8 = vcmask 64512   ;;  %s3236_s1 = sshll.u32 %s3947_s24, 4  ;;  %s3237_s1 = int_to_ptr.vmem [resolvable:$true] %s3236_s1 }
  0x3d   :  { %3404 = vmatpush1.bf16.msra.mxu1 %v4047_v12  ;;  %3434 = vmatprep.subr.bf16.mxu0 %v4045_v8  ;;  %v82_v24 = vld [vmem:[%s4639_s0 + $0x28] sm:$0xff]  ;;  %v83_v25 = vld [vmem:[%s4639_s0 + $0x30] sm:$0xff]  ;;  %v84_v26 = vld [vmem:[%s4639_s0 + $0x38] sm:$0xff]  ;;  %s3943_s0 = smov 64   ;;  %s3907_s3 = scalar_lea.vmem %s3237_s1, 128 }
  0x3e   :  { %3406 = vmatprep.subr.bf16.mxu1 %v4053_v17  ;;  %v76_v30 = vld [vmem:[%s4643_s4] ss:$2 sm:$0x3]  ;;  %p3908_p10 = scmp.ne.s32.totalorder %s3237_s1, %s3907_s3  ;;  %p3912_p11 = scmp.lt.s32.totalorder %s3237_s1, %s3237_s1 }
  0x3f   :  { %3246 = vmatmul.mubr.msk.f32.vlgmr.msra.gmra.mrb[0].mxu0 %vm100_vm0, %v77_v16  ;;  %v97_v32 = vrot.slane %v76_v30, %v96_v29  ;;  %v93_v33 = vrot.slane %v76_v30, %v92_v31  ;;  %p3913_p12 = scmp.lt.s32.totalorder %s3907_s3, %s3907_s3 }
  0x40   :  { %195 = vmatprep.mubr.f32.mxu0 %v3942_v0  ;;  %3436 = vmatpush1.bf16.msra.mxu0 %v4047_v12 }
  0x41   :  { %3408 = vmatpush1.bf16.msra.mxu1 %v4056_v19  ;;  %3438 = vmatprep.subr.bf16.mxu0 %v4053_v17  ;;  %p3914_p13 = por %p3913_p12, %p3912_p11 }
  0x42   :  { %3410 = vmatprep.subr.bf16.mxu1 %v4045_v8 }
  0x43   :  { %3247 = vmatmul.mubr.msk.f32.gmra.mrb[2].mxu0 %vm100_vm0, %v78_v20  ;;  %p3915_p0 = pnand %p3914_p13, %p3908_p10 }
  0x44   :  { %325 = vmatmul.mubr.f32.vlgmr.msra.gmra.mrb[0].mxu1 %v3942_v0  ;;  %201 = vmatprep.mubr.f32.mxu0 %v3942_v0 }
  0x45   :  { %329 = vmatprep.mubr.f32.mxu1 %v3942_v0  ;;  %3412 = vmatpush1.bf16.msra.mxu1 %v4047_v12 }
  0x46   :  { %3414 = vmatprep.subr.bf16.mxu1 %v4053_v17  ;;  %3440 = vmatpush1.bf16.msra.mxu0 %v4056_v19 }
  0x47   :  { %3248 = vmatmul.mubr.msk.f32.gmra.mrb[4].mxu0 %vm100_vm0, %v79_v21  ;;  %3450 = vmatprep.subr.bf16.mxu0 %v4045_v8 }
  0x48   :  { %207 = vmatprep.mubr.f32.mxu0 %v3942_v0  ;;  %330 = vmatmul.mubr.f32.gmra.mrb[2].mxu1 %v3942_v0 }
  0x49   :  { %3416 = vmatpush1.bf16.msra.mxu1 %v4056_v19  ;;  %468 = vmatprep.mubr.f32.mxu1 %v3942_v0 }
  0x4a   :  { %3418 = vmatprep.subr.bf16.mxu1 %v4045_v8 }
  0x4b   :  { %3249 = vmatmul.mubr.msk.f32.gmra.mrb[6].mxu0 %vm100_vm0, %v80_v22 }
  0x4c   :  { %213 = vmatprep.mubr.f32.mxu0 %v3942_v0 }
  0x4f   :  { %3250 = vmatmul.mubr.msk.f32.gmra.mrb[8].mxu0 %vm100_vm0, %v81_v23 }
  0x50   :  { %219 = vmatprep.mubr.f32.mxu0 %v3942_v0 }
  0x53   :  { %3251 = vmatmul.mubr.msk.f32.gmra.mrb[10].mxu0 %vm100_vm0, %v82_v24 }
  0x54   :  { %225 = vmatprep.mubr.f32.mxu0 %v3942_v0 }
  0x57   :  { %3252 = vmatmul.mubr.msk.f32.gmra.mrb[12].mxu0 %vm100_vm0, %v83_v25 }
  0x58   :  { %231 = vmatprep.mubr.f32.mxu0 %v3942_v0 }
  0x5b   :  { %3253 = vmatmul.mubr.msk.f32.gmra.mrb[14].mxu0 %vm100_vm0, %v84_v26 }
  0x5c   :  { %897 = vmatprep.mubr.f32.mxu0 %v3942_v0 }
 0x112   :  { %v191_v34 = vpop.f32.mrb[0].mxu0 }
 0x113   :  { %v193_v35 = vpop.f32.mrb[1].mxu0  ;;  %v192_v37 = vadd.f32 %v191_v34, %v93_v33 }
 0x114   :  { %v4122_v36 = vadd.f32 %v193_v35, %v97_v32 }
 0x116   :  { %v197_v38 = vpop.f32.mrb[2].mxu0 }
 0x117   :  { %v4124_v39 = vadd.f32 %v197_v38, %v93_v33  ;;  %v326_v40 = vpop.f32.mrb[0].mxu1  ;;  %v199_v41 = vpop.f32.mrb[3].mxu0 }
 0x118   :  { %v335_v42 = vadd.f32 %v326_v40, %v192_v37  ;;  %v4126_v43 = vadd.f32 %v199_v41, %v97_v32  ;;  %v328_v44 = vpop.f32.mrb[1].mxu1 }
 0x11a   :  { %3579 = vtanh.f32 %v335_v42  ;;  %v203_v45 = vpop.f32.mrb[4].mxu0  ;;  %v3254_v13 = vmul.f32 -1.442695, %v335_v42 }
 0x11b   :  { %v4128_v46 = vadd.f32 %v203_v45, %v93_v33  ;;  %v205_v47 = vpop.f32.mrb[5].mxu0  ;;  %v331_v48 = vpop.f32.mrb[2].mxu1 }
 0x11c   :  { %v4130_v49 = vadd.f32 %v205_v47, %v97_v32  ;;  %v332_v50 = vpop.f32.mrb[3].mxu1 }
 0x11e   :  { %v209_v51 = vpop.f32.mrb[6].mxu0 }
 0x11f   :  { %v4132_v52 = vadd.f32 %v209_v51, %v93_v33  ;;  %v211_v53 = vpop.f32.mrb[7].mxu0 }
 0x120   :  { %v4134_v54 = vadd.f32 %v211_v53, %v97_v32 }
 0x122   :  { %v215_v55 = vpop.f32.mrb[8].mxu0 }
 0x123   :  { %v4136_v56 = vadd.f32 %v215_v55, %v93_v33  ;;  %v217_v57 = vpop.f32.mrb[9].mxu0 }
 0x124   :  { %v3580_v58 = vpop.eup %3579  ;;  %v4138_v59 = vadd.f32 %v217_v57, %v97_v32 }
 0x125   :  { %355 = vrot.lane.b32.xlu0 %v3580_v58, %s3943_s0 }
 0x126   :  { %v221_v60 = vpop.f32.mrb[10].mxu0 }
 0x127   :  { %v4141_v61 = vadd.f32 %v221_v60, %v93_v33  ;;  %v223_v62 = vpop.f32.mrb[11].mxu0 }
 0x128   :  { %v4143_v63 = vadd.f32 %v223_v62, %v97_v32 }
 0x12a   :  { %v227_v1 = vpop.f32.mrb[12].mxu0 }
 0x12b   :  { %v4145_v2 = vadd.f32 %v227_v1, %v93_v33  ;;  %v229_v3 = vpop.f32.mrb[13].mxu0 }
 0x12c   :  { %v4147_v4 = vadd.f32 %v229_v3, %v97_v32 }
 0x12e   :  { %v233_v5 = vpop.f32.mrb[14].mxu0 }
 0x12f   :  { %v4149_v6 = vadd.f32 %v233_v5, %v93_v33  ;;  %v235_v7 = vpop.f32.mrb[15].mxu0 }
 0x130   :  { %v236_v9 = vadd.f32 %v235_v7, %v97_v32 }
 0x132   :  { %v336_v10 = vadd.f32 %v332_v50, %v236_v9 }
 0x134   :  { %3581 = vtanh.f32 %v336_v10  ;;  %v3255_v16 = vmul.f32 -1.442695, %v336_v10 }
 0x135   :  { %3583 = vpow2.f32 %v3254_v13 }
 0x13e   :  { %v3582_v11 = vpop.eup %3581 }
 0x13f   :  { %357 = vrot.lane.b32.xlu0 %v3582_v11, %s3943_s0  ;;  %v3584_v14 = vpop.eup %3583 }
 0x140   :  { %v343_v15 = vadd.f32 1.0, %v3584_v14 }
 0x142   :  { %3585 = vrcp.f32 %v343_v15 }
 0x143   :  { %3587 = vpow2.f32 %v3255_v16 }
 0x14c   :  { %v3586_v18 = vpop.eup %3585 }
 0x14d   :  { %v3588_v22 = vpop.eup %3587  ;;  %v351_v27 = vmul.f32 0.0, %v3586_v18 }
 0x14e   :  { %v344_v23 = vadd.f32 1.0, %v3588_v22 }
 0x150   :  { %3589 = vrcp.f32 %v344_v23 }
 0x15a   :  { %v3590_v24 = vpop.eup %3589 }
 0x15b   :  { %v352_v34 = vmul.f32 0.0, %v3590_v24 }
 0x197   :  { %v356_v20 = vpop.permute.xlu0 %355 }
 0x198   :  { %v361_v21 = vmul.f32 %v3586_v18, %v356_v20 }
 0x19a   :  { %365 = vrot.lane.b32.xlu1 %v361_v21, %s3944_s14 }
 0x1b1   :  { %v358_v25 = vpop.permute.xlu0 %357 }
 0x1b2   :  { %v362_v26 = vmul.f32 %v3590_v24, %v358_v25 }
 0x1b4   :  { %367 = vrot.lane.b32.xlu1 %v362_v26, %s3944_s14 }
 0x20c   :  { %v366_v30 = vpop.permute.xlu1 %365 }
 0x20d   :  { %v371_v32 = vadd.f32 %v366_v30, %v351_v27 }
 0x20f   :  { %3591 = vtanh.f32 %v371_v32 }
 0x219   :  { %v3592_v33 = vpop.eup %3591 }
 0x21a   :  { %377 = vrot.lane.b32.xlu0 %v3592_v33, %s3943_s0 }
 0x226   :  { %v368_v35 = vpop.permute.xlu1 %367 }
 0x227   :  { %v372_v37 = vadd.f32 %v368_v35, %v352_v34 }
 0x229   :  { %3593 = vtanh.f32 %v372_v37 }
 0x233   :  { %v3594_v38 = vpop.eup %3593 }
 0x234   :  { %379 = vrot.lane.b32.xlu1 %v3594_v38, %s3943_s0 }
 0x28c   :  { %v378_v40 = vpop.permute.xlu0 %377 }
 0x28d   :  { %v383_v41 = vmul.f32 %v3586_v18, %v378_v40 }
 0x28f   :  { %386 = vrot.lane.b32.xlu0 %v383_v41, %s3944_s14 }
 0x2a6   :  { %v380_v42 = vpop.permute.xlu1 %379 }
 0x2a7   :  { %v4157_v44 = vmul.f32 %v3590_v24, %v380_v42 }
 0x2a9   :  { %398 = vrot.lane.b32.xlu1 %v4157_v44, %s3944_s14 }
 0x301   :  { %v387_v45 = vpop.permute.xlu0 %386 }
 0x302   :  { %389 = vst.msk [vmem:[#allocation3] sm:$0xff] %vm256_vm1, %v387_v45  ;;  %3256 = vmatmul.mubr.msk.f32.vlgmr.msra.gmra.mrb[4].mxu1 %vm256_vm1, %v387_v45 }
 0x303   :  { %473 = vmatprep.mubr.f32.mxu1 %v3942_v0  ;;  %3420 = vmatpush1.bf16.msra.mxu1 %v4047_v12 }
 0x304   :  { %3422 = vmatprep.subr.bf16.mxu1 %v4053_v17 }
 0x307   :  { %3424 = vmatpush1.bf16.msra.mxu1 %v4056_v19 }
 0x308   :  { %3426 = vmatprep.subr.bf16.mxu1 %v4045_v8 }
 0x31b   :  { %v399_v47 = vpop.permute.xlu1 %398 }
 0x31c   :  { %3257 = vmatmul.mubr.msk.f32.gmra.mrb[6].mxu1 %vm256_vm1, %v399_v47 }
 0x31d   :  { %611 = vmatprep.mubr.f32.mxu1 %v3942_v0 }
 0x3d5   :  { %v470_v48 = vpop.f32.mrb[4].mxu1 }
 0x3d6   :  { %v479_v50 = vadd.f32 %v470_v48, %v4124_v39  ;;  %v472_v51 = vpop.f32.mrb[5].mxu1 }
 0x3d8   :  { %3595 = vtanh.f32 %v479_v50  ;;  %v3258_v62 = vmul.f32 -1.442695, %v479_v50 }
 0x3e2   :  { %v3596_v53 = vpop.eup %3595 }
 0x3e3   :  { %499 = vrot.lane.b32.xlu0 %v3596_v53, %s3943_s0 }
 0x3ef   :  { %v475_v55 = vpop.f32.mrb[6].mxu1 }
 0x3f0   :  { %v476_v57 = vpop.f32.mrb[7].mxu1 }
 0x3f1   :  { %v480_v58 = vadd.f32 %v476_v57, %v4147_v4 }
 0x3f3   :  { %3597 = vtanh.f32 %v480_v58  ;;  %v3259_v5 = vmul.f32 -1.442695, %v480_v58 }
 0x3f4   :  { %3599 = vpow2.f32 %v3258_v62 }
 0x3fd   :  { %v3598_v60 = vpop.eup %3597 }
 0x3fe   :  { %501 = vrot.lane.b32.xlu1 %v3598_v60, %s3943_s0  ;;  %v3600_v1 = vpop.eup %3599 }
 0x3ff   :  { %v487_v3 = vadd.f32 1.0, %v3600_v1 }
 0x401   :  { %3601 = vrcp.f32 %v487_v3 }
 0x402   :  { %3603 = vpow2.f32 %v3259_v5 }
 0x40b   :  { %v3602_v39 = vpop.eup %3601 }
 0x40c   :  { %v3604_v10 = vpop.eup %3603  ;;  %v495_v15 = vmul.f32 %v3602_v39, %v371_v32 }
 0x40d   :  { %v488_v11 = vadd.f32 1.0, %v3604_v10 }
 0x40f   :  { %3605 = vrcp.f32 %v488_v11 }
 0x419   :  { %v3606_v4 = vpop.eup %3605 }
 0x41a   :  { %v496_v21 = vmul.f32 %v3606_v4, %v372_v37 }
 0x455   :  { %v500_v7 = vpop.permute.xlu0 %499 }
 0x456   :  { %v505_v9 = vmul.f32 %v3602_v39, %v500_v7 }
 0x458   :  { %509 = vrot.lane.b32.xlu0 %v505_v9, %s3944_s14 }
 0x470   :  { %v502_v13 = vpop.permute.xlu1 %501 }
 0x471   :  { %v506_v14 = vmul.f32 %v3606_v4, %v502_v13 }
 0x473   :  { %511 = vrot.lane.b32.xlu1 %v506_v14, %s3944_s14 }
 0x4ca   :  { %v510_v16 = vpop.permute.xlu0 %509 }
 0x4cb   :  { %v515_v18 = vadd.f32 %v510_v16, %v495_v15 }
 0x4cd   :  { %3607 = vtanh.f32 %v515_v18 }
 0x4d7   :  { %v3608_v20 = vpop.eup %3607 }
 0x4d8   :  { %521 = vrot.lane.b32.xlu0 %v3608_v20, %s3943_s0 }
 0x4e5   :  { %v512_v22 = vpop.permute.xlu1 %511 }
 0x4e6   :  { %v516_v23 = vadd.f32 %v512_v22, %v496_v21 }
 0x4e8   :  { %3609 = vtanh.f32 %v516_v23 }
 0x4f2   :  { %v3610_v24 = vpop.eup %3609 }
 0x4f3   :  { %523 = vrot.lane.b32.xlu1 %v3610_v24, %s3943_s0 }
 0x54a   :  { %v522_v25 = vpop.permute.xlu0 %521 }
 0x54b   :  { %v527_v26 = vmul.f32 %v3602_v39, %v522_v25 }
 0x54d   :  { %530 = vrot.lane.b32.xlu0 %v527_v26, %s3944_s14 }
 0x565   :  { %v524_v27 = vpop.permute.xlu1 %523 }
 0x566   :  { %v4179_v30 = vmul.f32 %v3606_v4, %v524_v27 }
 0x568   :  { %541 = vrot.lane.b32.xlu1 %v4179_v30, %s3944_s14 }
 0x5bf   :  { %v531_v32 = vpop.permute.xlu0 %530 }
 0x5c0   :  { %533 = vst.msk [vmem:[#allocation3 + $0x8] sm:$0xff] %vm256_vm1, %v531_v32  ;;  %3260 = vmatmul.mubr.msk.f32.vlgmr.msra.gmra.mrb[8].mxu1 %vm256_vm1, %v531_v32 }
 0x5c1   :  { %616 = vmatprep.mubr.f32.mxu1 %v3942_v0  ;;  %3428 = vmatpush1.bf16.msra.mxu1 %v4047_v12 }
 0x5c2   :  { %3430 = vmatprep.subr.bf16.mxu1 %v4053_v17 }
 0x5c5   :  { %3432 = vmatpush1.bf16.msra.mxu1 %v4056_v19 }
 0x5c6   :  { %3442 = vmatprep.subr.bf16.mxu1 %v4045_v8 }
 0x5da   :  { %v542_v33 = vpop.permute.xlu1 %541 }
 0x5db   :  { %3261 = vmatmul.mubr.msk.f32.gmra.mrb[10].mxu1 %vm256_vm1, %v542_v33 }
 0x5dc   :  { %754 = vmatprep.mubr.f32.mxu1 %v3942_v0 }
 0x693   :  { %v613_v34 = vpop.f32.mrb[8].mxu1 }
 0x694   :  { %v622_v35 = vadd.f32 %v613_v34, %v4128_v46  ;;  %v615_v37 = vpop.f32.mrb[9].mxu1 }
 0x696   :  { %3611 = vtanh.f32 %v622_v35  ;;  %v3262_v47 = vmul.f32 -1.442695, %v622_v35 }
 0x6a0   :  { %v3612_v38 = vpop.eup %3611 }
 0x6a1   :  { %642 = vrot.lane.b32.xlu0 %v3612_v38, %s3943_s0 }
 0x6ae   :  { %v618_v40 = vpop.f32.mrb[10].mxu1 }
 0x6af   :  { %v619_v41 = vpop.f32.mrb[11].mxu1 }
 0x6b0   :  { %v623_v42 = vadd.f32 %v619_v41, %v4143_v63 }
 0x6b2   :  { %3613 = vtanh.f32 %v623_v42  ;;  %v3263_v51 = vmul.f32 -1.442695, %v623_v42 }
 0x6b3   :  { %3615 = vpow2.f32 %v3262_v47 }
 0x6bc   :  { %v3614_v45 = vpop.eup %3613 }
 0x6bd   :  { %644 = vrot.lane.b32.xlu1 %v3614_v45, %s3943_s0  ;;  %v3616_v48 = vpop.eup %3615 }
 0x6be   :  { %v630_v50 = vadd.f32 1.0, %v3616_v48 }
 0x6c0   :  { %3617 = vrcp.f32 %v630_v50 }
 0x6c1   :  { %3619 = vpow2.f32 %v3263_v51 }
 0x6ca   :  { %v3618_v46 = vpop.eup %3617 }
 0x6cb   :  { %v3620_v57 = vpop.eup %3619  ;;  %v638_v1 = vmul.f32 %v3618_v46, %v515_v18 }
 0x6cc   :  { %v631_v58 = vadd.f32 1.0, %v3620_v57 }
 0x6ce   :  { %3621 = vrcp.f32 %v631_v58 }
 0x6d8   :  { %v3622_v63 = vpop.eup %3621 }
 0x6d9   :  { %v639_v7 = vmul.f32 %v3622_v63, %v516_v23 }
 0x713   :  { %v643_v53 = vpop.permute.xlu0 %642 }
 0x714   :  { %v648_v55 = vmul.f32 %v3618_v46, %v643_v53 }
 0x716   :  { %652 = vrot.lane.b32.xlu0 %v648_v55, %s3944_s14 }
 0x72f   :  { %v645_v60 = vpop.permute.xlu1 %644 }
 0x730   :  { %v649_v62 = vmul.f32 %v3622_v63, %v645_v60 }
 0x732   :  { %654 = vrot.lane.b32.xlu1 %v649_v62, %s3944_s14 }
 0x788   :  { %v653_v3 = vpop.permute.xlu0 %652 }
 0x789   :  { %v658_v5 = vadd.f32 %v653_v3, %v638_v1 }
 0x78b   :  { %3623 = vtanh.f32 %v658_v5 }
 0x795   :  { %v3624_v39 = vpop.eup %3623 }
 0x796   :  { %664 = vrot.lane.b32.xlu0 %v3624_v39, %s3943_s0 }
 0x7a4   :  { %v655_v9 = vpop.permute.xlu1 %654 }
 0x7a5   :  { %v659_v10 = vadd.f32 %v655_v9, %v639_v7 }
 0x7a7   :  { %3625 = vtanh.f32 %v659_v10 }
 0x7b1   :  { %v3626_v11 = vpop.eup %3625 }
 0x7b2   :  { %666 = vrot.lane.b32.xlu1 %v3626_v11, %s3943_s0 }
 0x808   :  { %v665_v4 = vpop.permute.xlu0 %664 }
 0x809   :  { %v670_v13 = vmul.f32 %v3618_v46, %v665_v4 }
 0x80b   :  { %673 = vrot.lane.b32.xlu0 %v670_v13, %s3944_s14 }
 0x824   :  { %v667_v14 = vpop.permute.xlu1 %666 }
 0x825   :  { %v4201_v15 = vmul.f32 %v3622_v63, %v667_v14 }
 0x827   :  { %684 = vrot.lane.b32.xlu1 %v4201_v15, %s3944_s14 }
 0x87d   :  { %v674_v16 = vpop.permute.xlu0 %673 }
 0x87e   :  { %676 = vst.msk [vmem:[#allocation3 + $0x10] sm:$0xff] %vm256_vm1, %v674_v16  ;;  %3264 = vmatmul.mubr.msk.f32.vlgmr.msra.gmra.mrb[12].mxu1 %vm256_vm1, %v674_v16 }
 0x87f   :  { %759 = vmatprep.mubr.f32.mxu1 %v3942_v0  ;;  %3444 = vmatpush1.bf16.msra.mxu1 %v4047_v12 }
 0x880   :  { %3446 = vmatprep.subr.bf16.mxu1 %v4053_v17 }
 0x883   :  { %3448 = vmatpush1.bf16.msra.mxu1 %v4056_v19 }
 0x884   :  { %3458 = vmatprep.subr.bf16.mxu1 %v4045_v8 }
 0x899   :  { %v685_v18 = vpop.permute.xlu1 %684 }
 0x89a   :  { %3265 = vmatmul.mubr.msk.f32.gmra.mrb[14].mxu1 %vm256_vm1, %v685_v18 }
 0x89b   :  { %1040 = vmatprep.mubr.f32.mxu1 %v3942_v0 }
 0x951   :  { %v756_v20 = vpop.f32.mrb[12].mxu1 }
 0x952   :  { %v765_v21 = vadd.f32 %v756_v20, %v4132_v52  ;;  %v758_v22 = vpop.f32.mrb[13].mxu1 }
 0x954   :  { %3627 = vtanh.f32 %v765_v21  ;;  %v3266_v8 = vmul.f32 -1.442695, %v765_v21 }
 0x95e   :  { %v3628_v23 = vpop.eup %3627 }
 0x95f   :  { %785 = vrot.lane.b32.xlu0 %v3628_v23, %s3943_s0 }
 0x96d   :  { %v761_v24 = vpop.f32.mrb[14].mxu1 }
 0x96e   :  { %v762_v25 = vpop.f32.mrb[15].mxu1 }
 0x96f   :  { %v766_v26 = vadd.f32 %v762_v25, %v4138_v59 }
 0x971   :  { %3629 = vtanh.f32 %v766_v26  ;;  %v3267_v34 = vmul.f32 -1.442695, %v766_v26 }
 0x972   :  { %3631 = vpow2.f32 %v3266_v8 }
 0x97b   :  { %v3630_v27 = vpop.eup %3629 }
 0x97c   :  { %787 = vrot.lane.b32.xlu1 %v3630_v27, %s3943_s0  ;;  %v3632_v32 = vpop.eup %3631 }
 0x97d   :  { %v773_v33 = vadd.f32 1.0, %v3632_v32 }
 0x97f   :  { %3633 = vrcp.f32 %v773_v33 }
 0x980   :  { %3635 = vpow2.f32 %v3267_v34 }
 0x989   :  { %v3634_v52 = vpop.eup %3633 }
 0x98a   :  { %v3636_v38 = vpop.eup %3635  ;;  %v781_v45 = vmul.f32 %v3634_v52, %v658_v5 }
 0x98b   :  { %v774_v40 = vadd.f32 1.0, %v3636_v38 }
 0x98d   :  { %3637 = vrcp.f32 %v774_v40 }
 0x997   :  { %v3638_v59 = vpop.eup %3637 }
 0x998   :  { %v782_v51 = vmul.f32 %v3638_v59, %v659_v10 }
 0x9d1   :  { %v786_v35 = vpop.permute.xlu0 %785 }
 0x9d2   :  { %v791_v37 = vmul.f32 %v3634_v52, %v786_v35 }
 0x9d4   :  { %795 = vrot.lane.b32.xlu0 %v791_v37, %s3944_s14 }
 0x9ee   :  { %v788_v41 = vpop.permute.xlu1 %787 }
 0x9ef   :  { %v792_v42 = vmul.f32 %v3638_v59, %v788_v41 }
 0x9f1   :  { %797 = vrot.lane.b32.xlu1 %v792_v42, %s3944_s14 }
 0xa46   :  { %v796_v47 = vpop.permute.xlu0 %795 }
 0xa47   :  { %v801_v48 = vadd.f32 %v796_v47, %v781_v45 }
 0xa49   :  { %3639 = vtanh.f32 %v801_v48 }
 0xa53   :  { %v3640_v50 = vpop.eup %3639 }
 0xa54   :  { %807 = vrot.lane.b32.xlu0 %v3640_v50, %s3943_s0 }
 0xa63   :  { %v798_v46 = vpop.permute.xlu1 %797 }
 0xa64   :  { %v802_v53 = vadd.f32 %v798_v46, %v782_v51 }
 0xa66   :  { %3641 = vtanh.f32 %v802_v53 }
 0xa70   :  { %v3642_v55 = vpop.eup %3641 }
 0xa71   :  { %809 = vrot.lane.b32.xlu1 %v3642_v55, %s3943_s0 }
 0xac6   :  { %v808_v57 = vpop.permute.xlu0 %807 }
 0xac7   :  { %v813_v58 = vmul.f32 %v3634_v52, %v808_v57 }
 0xac9   :  { %816 = vrot.lane.b32.xlu0 %v813_v58, %s3944_s14 }
 0xae3   :  { %v810_v63 = vpop.permute.xlu1 %809 }
 0xae4   :  { %v4223_v60 = vmul.f32 %v3638_v59, %v810_v63 }
 0xae6   :  { %827 = vrot.lane.b32.xlu1 %v4223_v60, %s3944_s14 }
 0xb3b   :  { %v817_v62 = vpop.permute.xlu0 %816 }
 0xb3c   :  { %819 = vst.msk [vmem:[#allocation3 + $0x18] sm:$0xff] %vm256_vm1, %v817_v62  ;;  %3268 = vmatmul.mubr.msk.f32.vlgmr.msra.gmra.mrb[16].mxu0 %vm256_vm1, %v817_v62 }
 0xb3d   :  { %902 = vmatprep.mubr.f32.mxu0 %v3942_v0  ;;  %3452 = vmatpush1.bf16.msra.mxu0 %v4047_v12 }
 0xb3e   :  { %3454 = vmatprep.subr.bf16.mxu0 %v4053_v17 }
 0xb41   :  { %3456 = vmatpush1.bf16.msra.mxu0 %v4056_v19 }
 0xb58   :  { %v828_v1 = vpop.permute.xlu1 %827 }
 0xb59   :  { %3269 = vmatmul.mubr.msk.f32.gmra.mrb[18].mxu0 %vm256_vm1, %v828_v1 }
 0xb5a   :  { %1183 = vmatprep.mubr.f32.mxu0 %v3942_v0 }
 0xc0f   :  { %v899_v3 = vpop.f32.mrb[16].mxu0 }
 0xc10   :  { %v908_v5 = vadd.f32 %v899_v3, %v4136_v56  ;;  %v901_v39 = vpop.f32.mrb[17].mxu0 }
 0xc12   :  { %3643 = vtanh.f32 %v908_v5  ;;  %v3270_v13 = vmul.f32 -1.442695, %v908_v5 }
 0xc1c   :  { %v3644_v7 = vpop.eup %3643 }
 0xc1d   :  { %928 = vrot.lane.b32.xlu0 %v3644_v7, %s3943_s0 }
 0xc2c   :  { %v904_v9 = vpop.f32.mrb[18].mxu0 }
 0xc2d   :  { %v905_v10 = vpop.f32.mrb[19].mxu0 }
 0xc2e   :  { %v909_v11 = vadd.f32 %v905_v10, %v4134_v54 }
 0xc30   :  { %3645 = vtanh.f32 %v909_v11  ;;  %v3271_v18 = vmul.f32 -1.442695, %v909_v11 }
 0xc31   :  { %3647 = vpow2.f32 %v3270_v13 }
 0xc3a   :  { %v3646_v4 = vpop.eup %3645 }
 0xc3b   :  { %930 = vrot.lane.b32.xlu1 %v3646_v4, %s3943_s0  ;;  %v3648_v14 = vpop.eup %3647 }
 0xc3c   :  { %v916_v16 = vadd.f32 1.0, %v3648_v14 }
 0xc3e   :  { %3649 = vrcp.f32 %v916_v16 }
 0xc3f   :  { %3651 = vpow2.f32 %v3271_v18 }
 0xc48   :  { %v3650_v56 = vpop.eup %3649 }
 0xc49   :  { %v3652_v22 = vpop.eup %3651  ;;  %v924_v26 = vmul.f32 %v3650_v56, %v801_v48 }
 0xc4a   :  { %v917_v23 = vadd.f32 1.0, %v3652_v22 }
 0xc4c   :  { %3653 = vrcp.f32 %v917_v23 }
 0xc56   :  { %v3654_v54 = vpop.eup %3653 }
 0xc57   :  { %v925_v33 = vmul.f32 %v3654_v54, %v802_v53 }
 0xc8f   :  { %v929_v20 = vpop.permute.xlu0 %928 }
 0xc90   :  { %v934_v21 = vmul.f32 %v3650_v56, %v929_v20 }
 0xc92   :  { %938 = vrot.lane.b32.xlu0 %v934_v21, %s3944_s14 }
 0xcad   :  { %v931_v24 = vpop.permute.xlu1 %930 }
 0xcae   :  { %v935_v25 = vmul.f32 %v3654_v54, %v931_v24 }
 0xcb0   :  { %940 = vrot.lane.b32.xlu1 %v935_v25, %s3944_s14 }
 0xd04   :  { %v939_v27 = vpop.permute.xlu0 %938 }
 0xd05   :  { %v944_v8 = vadd.f32 %v939_v27, %v924_v26 }
 0xd07   :  { %3655 = vtanh.f32 %v944_v8 }
 0xd11   :  { %v3656_v32 = vpop.eup %3655 }
 0xd12   :  { %950 = vrot.lane.b32.xlu0 %v3656_v32, %s3943_s0 }
 0xd22   :  { %v941_v34 = vpop.permute.xlu1 %940 }
 0xd23   :  { %v945_v52 = vadd.f32 %v941_v34, %v925_v33 }
 0xd25   :  { %3657 = vtanh.f32 %v945_v52 }
 0xd2f   :  { %v3658_v35 = vpop.eup %3657 }
 0xd30   :  { %952 = vrot.lane.b32.xlu1 %v3658_v35, %s3943_s0 }
 0xd84   :  { %v951_v37 = vpop.permute.xlu0 %950 }
 0xd85   :  { %v956_v38 = vmul.f32 %v3650_v56, %v951_v37 }
 0xd87   :  { %959 = vrot.lane.b32.xlu0 %v956_v38, %s3944_s14 }
 0xda2   :  { %v953_v40 = vpop.permute.xlu1 %952 }
 0xda3   :  { %v4244_v59 = vmul.f32 %v3654_v54, %v953_v40 }
 0xda5   :  { %970 = vrot.lane.b32.xlu1 %v4244_v59, %s3944_s14 }
 0xdf9   :  { %v4248_v41 = vpop.permute.xlu0 %959 }
 0xdfa   :  { %3272 = vmatmul.mubr.msk.f32.vlgmr.msra.gmra.mrb[16].mxu1 %vm256_vm1, %v4248_v41 }
 0xdfb   :  { %1045 = vmatprep.mubr.f32.mxu1 %v3942_v0  ;;  %3460 = vmatpush1.bf16.msra.mxu1 %v4047_v12 }
 0xdfc   :  { %3462 = vmatprep.subr.bf16.mxu1 %v4053_v17 }
 0xdff   :  { %3464 = vmatpush1.bf16.msra.mxu1 %v4056_v19 }
 0xe17   :  { %v971_v42 = vpop.permute.xlu1 %970 }
 0xe18   :  { %3273 = vmatmul.mubr.msk.f32.gmra.mrb[18].mxu1 %vm256_vm1, %v971_v42 }
 0xe19   :  { %1326 = vmatprep.mubr.f32.mxu1 %v3942_v0 }
 0xecd   :  { %v1042_v45 = vpop.f32.mrb[16].mxu1 }
 0xece   :  { %v1051_v47 = vadd.f32 %v1042_v45, %v4141_v61  ;;  %v1044_v48 = vpop.f32.mrb[17].mxu1 }
 0xed0   :  { %3659 = vtanh.f32 %v1051_v47  ;;  %v3274_v19 = vmul.f32 -1.442695, %v1051_v47 }
 0xeda   :  { %v3660_v50 = vpop.eup %3659 }
 0xedb   :  { %1071 = vrot.lane.b32.xlu0 %v3660_v50, %s3943_s0 }
 0xeeb   :  { %v1047_v51 = vpop.f32.mrb[18].mxu1 }
 0xeec   :  { %v1048_v46 = vpop.f32.mrb[19].mxu1 }
 0xeed   :  { %v1052_v12 = vadd.f32 %v1048_v46, %v4130_v49 }
 0xeef   :  { %3661 = vtanh.f32 %v1052_v12  ;;  %v3275_v61 = vmul.f32 -1.442695, %v1052_v12 }
 0xef0   :  { %3663 = vpow2.f32 %v3274_v19 }
 0xef9   :  { %v3662_v17 = vpop.eup %3661 }
 0xefa   :  { %1073 = vrot.lane.b32.xlu1 %v3662_v17, %s3943_s0  ;;  %v3664_v53 = vpop.eup %3663 }
 0xefb   :  { %v1059_v55 = vadd.f32 1.0, %v3664_v53 }
 0xefd   :  { %3665 = vrcp.f32 %v1059_v55 }
 0xefe   :  { %3667 = vpow2.f32 %v3275_v61 }
 0xf07   :  { %v3666_v57 = vpop.eup %3665 }
 0xf08   :  { %v3668_v62 = vpop.eup %3667  ;;  %v1067_v39 = vmul.f32 %v3666_v57, %v944_v8 }
 0xf09   :  { %v1060_v1 = vadd.f32 1.0, %v3668_v62 }
 0xf0b   :  { %3669 = vrcp.f32 %v1060_v1 }
 0xf15   :  { %v3670_v49 = vpop.eup %3669 }
 0xf16   :  { %v1068_v11 = vmul.f32 %v3670_v49, %v945_v52 }
 0xf4d   :  { %v1072_v58 = vpop.permute.xlu0 %1071 }
 0xf4e   :  { %v1077_v63 = vmul.f32 %v3666_v57, %v1072_v58 }
 0xf50   :  { %1081 = vrot.lane.b32.xlu0 %v1077_v63, %s3944_s14 }
 0xf6c   :  { %v1074_v3 = vpop.permute.xlu1 %1073 }
 0xf6d   :  { %v1078_v5 = vmul.f32 %v3670_v49, %v1074_v3 }
 0xf6f   :  { %1083 = vrot.lane.b32.xlu1 %v1078_v5, %s3944_s14 }
 0xfc2   :  { %v1082_v7 = vpop.permute.xlu0 %1081 }
 0xfc3   :  { %v1087_v9 = vadd.f32 %v1082_v7, %v1067_v39 }
 0xfc5   :  { %3671 = vtanh.f32 %v1087_v9 }
 0xfcf   :  { %v3672_v10 = vpop.eup %3671 }
 0xfd0   :  { %1093 = vrot.lane.b32.xlu0 %v3672_v10, %s3943_s0 }
 0xfe1   :  { %v1084_v4 = vpop.permute.xlu1 %1083 }
 0xfe2   :  { %v1088_v13 = vadd.f32 %v1084_v4, %v1068_v11 }
 0xfe4   :  { %3673 = vtanh.f32 %v1088_v13 }
 0xfee   :  { %v3674_v14 = vpop.eup %3673 }
 0xfef   :  { %1095 = vrot.lane.b32.xlu1 %v3674_v14, %s3943_s0 }
0x1042   :  { %v1094_v16 = vpop.permute.xlu0 %1093 }
0x1043   :  { %v1099_v18 = vmul.f32 %v3666_v57, %v1094_v16 }
0x1045   :  { %1102 = vrot.lane.b32.xlu0 %v1099_v18, %s3944_s14 }
0x1061   :  { %v1096_v56 = vpop.permute.xlu1 %1095 }
0x1062   :  { %v4267_v20 = vmul.f32 %v3670_v49, %v1096_v56 }
0x1064   :  { %1113 = vrot.lane.b32.xlu1 %v4267_v20, %s3944_s14 }
0x10b7   :  { %v4271_v21 = vpop.permute.xlu0 %1102 }
0x10b8   :  { %3276 = vmatmul.mubr.msk.f32.vlgmr.msra.gmra.mrb[20].mxu0 %vm256_vm1, %v4271_v21 }
0x10b9   :  { %1188 = vmatprep.mubr.f32.mxu0 %v3942_v0 }
0x10d6   :  { %v1114_v22 = vpop.permute.xlu1 %1113 }
0x10d7   :  { %3277 = vmatmul.mubr.msk.f32.gmra.mrb[22].mxu0 %vm256_vm1, %v1114_v22 }
0x10d8   :  { %1532 = vmatprep.mubr.f32.mxu0 %v3942_v0 }
0x118b   :  { %v1185_v23 = vpop.f32.mrb[20].mxu0 }
0x118c   :  { %v1194_v54 = vadd.f32 %v1185_v23, %v4145_v2  ;;  %v1187_v24 = vpop.f32.mrb[21].mxu0 }
0x118e   :  { %3675 = vtanh.f32 %v1194_v54  ;;  %v3278_v33 = vmul.f32 -1.442695, %v1194_v54 }
0x1198   :  { %v3676_v25 = vpop.eup %3675 }
0x1199   :  { %1214 = vrot.lane.b32.xlu0 %v3676_v25, %s3943_s0 }
0x11aa   :  { %v1190_v26 = vpop.f32.mrb[22].mxu0 }
0x11ab   :  { %v1191_v27 = vpop.f32.mrb[23].mxu0 }
0x11ac   :  { %v1195_v8 = vadd.f32 %v1191_v27, %v4126_v43 }
0x11ae   :  { %3677 = vtanh.f32 %v1195_v8  ;;  %v3279_v37 = vmul.f32 -1.442695, %v1195_v8 }
0x11af   :  { %3679 = vpow2.f32 %v3278_v33 }
0x11b8   :  { %v3678_v32 = vpop.eup %3677 }
0x11b9   :  { %1216 = vrot.lane.b32.xlu1 %v3678_v32, %s3943_s0  ;;  %v3680_v34 = vpop.eup %3679 }
0x11ba   :  { %v1202_v52 = vadd.f32 1.0, %v3680_v34 }
0x11bc   :  { %3681 = vrcp.f32 %v1202_v52  ;;  %v1409_v52 = vld [vmem:[#allocation5 + $0x8] sm:$0xff] }
0x11bd   :  { %3683 = vpow2.f32 %v3279_v37 }
0x11c6   :  { %v3682_v35 = vpop.eup %3681 }
0x11c7   :  { %v3684_v40 = vpop.eup %3683  ;;  %v1210_v48 = vmul.f32 %v3682_v35, %v1087_v9 }
0x11c8   :  { %v1203_v42 = vadd.f32 1.0, %v3684_v40  ;;  %v1415_v40 = vld [vmem:[#allocation5 + $0x38] sm:$0xff] }
0x11ca   :  { %3685 = vrcp.f32 %v1203_v42 }
0x11d4   :  { %v3686_v43 = vpop.eup %3685 }
0x11d5   :  { %v1211_v12 = vmul.f32 %v3686_v43, %v1088_v13 }
0x120b   :  { %v1215_v2 = vpop.permute.xlu0 %1214 }
0x120c   :  { %v1220_v38 = vmul.f32 %v3682_v35, %v1215_v2  ;;  %v1408_v2 = vld [vmem:[#allocation5] sm:$0xff] }
0x120e   :  { %1224 = vrot.lane.b32.xlu0 %v1220_v38, %s3944_s14  ;;  %v1410_v38 = vld [vmem:[#allocation5 + $0x10] sm:$0xff] }
0x120f   :  { %v3467_v42 = vpack.c.bf16 %v1410_v38, %v1408_v2 }
0x122b   :  { %v1217_v45 = vpop.permute.xlu1 %1216 }
0x122c   :  { %v1221_v47 = vmul.f32 %v3686_v43, %v1217_v45  ;;  %v1414_v45 = vld [vmem:[#allocation5 + $0x30] sm:$0xff] }
0x122e   :  { %1226 = vrot.lane.b32.xlu1 %v1221_v47, %s3944_s14 }
0x1280   :  { %v1225_v50 = vpop.permute.xlu0 %1224 }
0x1281   :  { %v1230_v51 = vadd.f32 %v1225_v50, %v1210_v48 }
0x1283   :  { %3687 = vtanh.f32 %v1230_v51 }
0x128d   :  { %v3688_v46 = vpop.eup %3687 }
0x128e   :  { %1236 = vrot.lane.b32.xlu0 %v3688_v46, %s3943_s0 }
0x12a0   :  { %v1227_v17 = vpop.permute.xlu1 %1226 }
0x12a1   :  { %v1231_v19 = vadd.f32 %v1227_v17, %v1211_v12  ;;  %v1417_v12 = vld [vmem:[#allocation5 + $0x48] sm:$0xff]  ;;  %v1419_v17 = vld [vmem:[#allocation5 + $0x58] sm:$0xff] }
0x12a3   :  { %3689 = vtanh.f32 %v1231_v19 }
0x12ad   :  { %v3690_v53 = vpop.eup %3689 }
0x12ae   :  { %1238 = vrot.lane.b32.xlu1 %v3690_v53, %s3943_s0  ;;  %v1416_v53 = vld [vmem:[#allocation5 + $0x40] sm:$0xff] }
0x1300   :  { %v1237_v55 = vpop.permute.xlu0 %1236 }
0x1301   :  { %v1242_v57 = vmul.f32 %v3682_v35, %v1237_v55  ;;  %v1411_v35 = vld [vmem:[#allocation5 + $0x18] sm:$0xff]  ;;  %v1418_v55 = vld [vmem:[#allocation5 + $0x50] sm:$0xff] }
0x1302   :  { %v3465_v37 = vpack.c.bf16 %v1411_v35, %v1409_v52  ;;  %v3284_v35 = vld [vmem:[%s4643_s4 + $0x1] ss:$2 sm:$0x3] }
0x1303   :  { %1245 = vrot.lane.b32.xlu0 %v1242_v57, %s3944_s14  ;;  %v3475_v57 = vpack.c.bf16 %v1418_v55, %v1416_v53  ;;  %v1436_v2 = vrot.slane %v3284_v35, %v92_v31 }
0x1304   :  { %3466 = vmatprep.subr.bf16.mxu0 %v3465_v37  ;;  %v1440_v37 = vrot.slane %v3284_v35, %v96_v29 }
0x1305   :  { %3468 = vmatpush1.bf16.msra.mxu0 %v3467_v42 }
0x1320   :  { %v1239_v61 = vpop.permute.xlu1 %1238 }
0x1321   :  { %v1243_v58 = vmul.f32 %v3686_v43, %v1239_v61  ;;  %v1412_v43 = vld [vmem:[#allocation5 + $0x20] sm:$0xff]  ;;  %v1399_v61 = vld [vmem:[#allocation8 + $0x48] sm:$0xff] }
0x1323   :  { %1256 = vrot.lane.b32.xlu1 %v1243_v58, %s3944_s14 }
0x1375   :  { %v4288_v63 = vpop.permute.xlu0 %1245 }
0x1376   :  { %3280 = vmatmul.mubr.msk.f32.vlgmr.msra.gmra.mrb[20].mxu1 %vm256_vm1, %v4288_v63 }
0x1377   :  { %1331 = vmatprep.mubr.f32.mxu1 %v3942_v0 }
0x1395   :  { %v1257_v62 = vpop.permute.xlu1 %1256 }
0x1396   :  { %3281 = vmatmul.mubr.msk.f32.gmra.mrb[22].mxu1 %vm256_vm1, %v1257_v62  ;;  %v1398_v62 = vld [vmem:[#allocation8 + $0x40] sm:$0xff] }
0x1397   :  { %1663 = vmatprep.mubr.f32.mxu1 %v3942_v0 }
0x1449   :  { %v1328_v1 = vpop.f32.mrb[20].mxu1 }
0x144a   :  { %v1337_v49 = vadd.f32 %v1328_v1, %v4149_v6  ;;  %v1330_v3 = vpop.f32.mrb[21].mxu1 }
0x144c   :  { %3691 = vtanh.f32 %v1337_v49  ;;  %v3282_v11 = vmul.f32 -1.442695, %v1337_v49  ;;  %v1400_v49 = vld [vmem:[#allocation8 + $0x50] sm:$0xff] }
0x144d   :  { %v4326_v3 = vpack.c.bf16 %v1400_v49, %v1398_v62 }
0x1456   :  { %v3692_v5 = vpop.eup %3691 }
0x1457   :  { %1357 = vrot.lane.b32.xlu1 %v3692_v5, %s3943_s0  ;;  %v1423_v5 = vld [vmem:[#allocation5 + $0x78] sm:$0xff] }
0x1469   :  { %v1333_v39 = vpop.f32.mrb[22].mxu1 }
0x146a   :  { %v1334_v7 = vpop.f32.mrb[23].mxu1 }
0x146b   :  { %v1338_v9 = vadd.f32 %v1334_v7, %v4122_v36  ;;  %v1420_v7 = vld [vmem:[#allocation5 + $0x60] sm:$0xff] }
0x146d   :  { %3693 = vtanh.f32 %v1338_v9  ;;  %v3283_v18 = vmul.f32 -1.442695, %v1338_v9  ;;  %v1422_v9 = vld [vmem:[#allocation5 + $0x70] sm:$0xff] }
0x146e   :  { %3695 = vpow2.f32 %v3282_v11  ;;  %v1403_v11 = vld [vmem:[#allocation8 + $0x68] sm:$0xff] }
0x1477   :  { %v3694_v10 = vpop.eup %3693 }
0x1478   :  { %1359 = vrot.lane.b32.xlu0 %v3694_v10, %s3943_s0  ;;  %v3696_v4 = vpop.eup %3695  ;;  %v3479_v10 = vpack.c.bf16 %v1422_v9, %v1420_v7 }
0x1479   :  { %v1345_v13 = vadd.f32 1.0, %v3696_v4  ;;  %v1405_v4 = vld [vmem:[#allocation8 + $0x78] sm:$0xff] }
0x147b   :  { %3697 = vrcp.f32 %v1345_v13  ;;  %v1402_v13 = vld [vmem:[#allocation8 + $0x60] sm:$0xff] }
0x147c   :  { %3699 = vpow2.f32 %v3283_v18 }
0x1485   :  { %v4299_v14 = vpop.eup %3697 }
0x1486   :  { %v3700_v56 = vpop.eup %3699  ;;  %v1353_v24 = vmul.f32 %v4299_v14, %v1230_v51 }
0x1487   :  { %v1346_v36 = vadd.f32 1.0, %v3700_v56 }
0x1489   :  { %3701 = vrcp.f32 %v1346_v36 }
0x1493   :  { %v4303_v22 = vpop.eup %3701 }
0x1494   :  { %v1354_v8 = vmul.f32 %v4303_v22, %v1231_v19  ;;  %v3473_v19 = vpack.c.bf16 %v1419_v17, %v1417_v12 }
0x14c9   :  { %v1358_v6 = vpop.permute.xlu1 %1357 }
0x14ca   :  { %v1363_v16 = vmul.f32 %v4299_v14, %v1358_v6  ;;  %v4330_v6 = vpack.c.bf16 %v1405_v4, %v1403_v11 }
0x14cc   :  { %1367 = vrot.lane.b32.xlu1 %v1363_v16, %s3944_s14  ;;  %v1404_v16 = vld [vmem:[#allocation8 + $0x70] sm:$0xff] }
0x14cd   :  { %v4332_v18 = vpack.c.bf16 %v1404_v16, %v1402_v13 }
0x14ea   :  { %v1360_v23 = vpop.permute.xlu0 %1359 }
0x14eb   :  { %v1364_v54 = vmul.f32 %v4303_v22, %v1360_v23 }
0x14ed   :  { %1369 = vrot.lane.b32.xlu0 %v1364_v54, %s3944_s14 }
0x153e   :  { %v1368_v25 = vpop.permute.xlu1 %1367 }
0x153f   :  { %v1373_v26 = vadd.f32 %v1368_v25, %v1353_v24 }
0x1541   :  { %3703 = vtanh.f32 %v1373_v26 }
0x154b   :  { %v3704_v27 = vpop.eup %3703 }
0x154c   :  { %1379 = vrot.lane.b32.xlu1 %v3704_v27, %s3943_s0 }
0x1550   :  { %1250 = vrot.lane.b32.xlu1 %v1243_v58, %s3943_s0  ;;  %v1401_v58 = vld [vmem:[#allocation8 + $0x58] sm:$0xff] }
0x1551   :  { %v4324_v1 = vpack.c.bf16 %v1401_v58, %v1399_v61 }
0x1553   :  { %3482 = vmatprep.subr.bf16.mxu1 %v4324_v1 }
0x1554   :  { %964 = vrot.lane.b32.xlu1 %v4244_v59, %s3943_s0  ;;  %v1413_v59 = vld [vmem:[#allocation5 + $0x28] sm:$0xff]  ;;  %3484 = vmatpush1.bf16.msra.mxu1 %v4326_v3 }
0x1555   :  { %3486 = vmatprep.subr.bf16.mxu1 %v4330_v6 }
0x1558   :  { %678 = vrot.lane.b32.xlu1 %v4201_v15, %s3943_s0  ;;  %v3469_v15 = vpack.c.bf16 %v1415_v40, %v1413_v59  ;;  %3488 = vmatpush1.bf16.msra.mxu1 %v4332_v18 }
0x1559   :  { %3490 = vmatprep.subr.bf16.mxu1 %v4324_v1 }
0x155a   :  { %3470 = vmatprep.subr.bf16.mxu0 %v3469_v15 }
0x155b   :  { %1664 = vmatmul.mubr.f32.vlgmr.msra.gmra.mrb[24].mxu1 %v3942_v0 }
0x155c   :  { %391 = vrot.lane.b32.xlu1 %v4157_v44, %s3943_s0  ;;  %v3471_v44 = vpack.c.bf16 %v1414_v45, %v1412_v43  ;;  %1668 = vmatprep.mubr.f32.mxu1 %v3942_v0 }
0x155d   :  { %3492 = vmatpush1.bf16.msra.mxu1 %v4326_v3 }
0x155e   :  { %3472 = vmatpush1.bf16.msra.mxu0 %v3471_v44  ;;  %3494 = vmatprep.subr.bf16.mxu1 %v4330_v6 }
0x155f   :  { %v1370_v32 = vpop.permute.xlu0 %1369  ;;  %3474 = vmatprep.subr.bf16.mxu0 %v3473_v19  ;;  %1669 = vmatmul.mubr.f32.gmra.mrb[26].mxu1 %v3942_v0 }
0x1560   :  { %v1374_v33 = vadd.f32 %v1370_v32, %v1354_v8  ;;  %1808 = vmatprep.mubr.f32.mxu1 %v3942_v0 }
0x1561   :  { %3496 = vmatpush1.bf16.msra.mxu1 %v4332_v18 }
0x1562   :  { %3705 = vtanh.f32 %v1374_v33  ;;  %3476 = vmatpush1.bf16.msra.mxu0 %v3475_v57  ;;  %3498 = vmatprep.subr.bf16.mxu1 %v4324_v1 }
0x156c   :  { %v3706_v34 = vpop.eup %3705 }
0x156d   :  { %1381 = vrot.lane.b32.xlu0 %v3706_v34, %s3943_s0 }
0x15be   :  { %v1380_v47 = vpop.permute.xlu1 %1379 }
0x15c2   :  { %v1251_v48 = vpop.permute.xlu1 %1250 }
0x15c3   :  { %1253 = vst.msk [vmem:[#allocation3 + $0x8] sm:$0xff] %vm394_vm2, %v1251_v48 }
0x15c6   :  { %v965_v50 = vpop.permute.xlu1 %964 }
0x15c7   :  { %967 = vst.msk [vmem:[#allocation3 + $0x18] sm:$0xff] %vm394_vm2, %v965_v50 }
0x15ca   :  { %v679_v51 = vpop.permute.xlu1 %678 }
0x15cb   :  { %681 = vst.msk [vmem:[#allocation3 + $0x28] sm:$0xff] %vm394_vm2, %v679_v51 }
0x15cc   :  { %1105 = vst.msk [vmem:[#allocation3 + $0x28] sm:$0xff] %vm256_vm1, %v4271_v21  ;;  %v1421_v21 = vld [vmem:[#allocation5 + $0x68] sm:$0xff] }
0x15cd   :  { %v3477_v39 = vpack.c.bf16 %v1423_v5, %v1421_v21 }
0x15ce   :  { %v392_v46 = vpop.permute.xlu1 %391  ;;  %v1427_v25 = vld [vmem:[#allocation3 + $0x18] sm:$0xff] }
0x15cf   :  { %395 = vst.msk [vmem:[#allocation3 + $0x38] sm:$0xff] %vm394_vm2, %v392_v46  ;;  %3478 = vmatprep.subr.bf16.mxu0 %v3477_v39 }
0x15d0   :  { %3480 = vmatpush1.bf16.msra.mxu0 %v3479_v10 }
0x15d1   :  { %3522 = vmatprep.subr.bf16.mxu0 %v4324_v1 }
0x15d3   :  { %v1429_v26 = vld [vmem:[#allocation3 + $0x28] sm:$0xff] }
0x15df   :  { %v1382_v56 = vpop.permute.xlu0 %1381 }
0x15e0   :  { %v1386_v36 = vmul.f32 %v4303_v22, %v1382_v56  ;;  %v1385_v22 = vmul.f32 %v4299_v14, %v1380_v47 }
0x15e2   :  { %1393 = vrot.lane.b32.xlu0 %v1386_v36, %s3943_s0 }
0x15e6   :  { %1107 = vrot.lane.b32.xlu0 %v4267_v20, %s3943_s0 }
0x15ea   :  { %821 = vrot.lane.b32.xlu0 %v4223_v60, %s3943_s0  ;;  %v1425_v60 = vld [vmem:[#allocation3 + $0x8] sm:$0xff] }
0x15ee   :  { %535 = vrot.lane.b32.xlu0 %v4179_v30, %s3943_s0 }
0x15f2   :  { %1388 = vrot.lane.b32.xlu0 %v1385_v22, %s3944_s14 }
0x162e   :  { %v1665_v32 = vpop.f32.mrb[24].mxu1 }
0x162f   :  { %v1667_v33 = vpop.f32.mrb[25].mxu1 }
0x1632   :  { %v1670_v34 = vpop.f32.mrb[26].mxu1 }
0x1633   :  { %v1671_v52 = vpop.f32.mrb[27].mxu1 }
0x1654   :  { %v1394_v23 = vpop.permute.xlu0 %1393 }
0x1655   :  { %1396 = vst.msk [vmem:[#allocation3] sm:$0xff] %vm394_vm2, %v1394_v23 }
0x1658   :  { %v1108_v54 = vpop.permute.xlu0 %1107 }
0x1659   :  { %1110 = vst.msk [vmem:[#allocation3 + $0x10] sm:$0xff] %vm394_vm2, %v1108_v54 }
0x165c   :  { %v822_v20 = vpop.permute.xlu0 %821  ;;  %v1424_v24 = vld [vmem:[#allocation3] sm:$0xff] }
0x165d   :  { %824 = vst.msk [vmem:[#allocation3 + $0x20] sm:$0xff] %vm394_vm2, %v822_v20  ;;  %3285 = vmatmul.mubr.msk.f32.vlgmr.msra.gmra.mrb[24].mxu0 %vm1443_vm3, %v1424_v24 }
0x165e   :  { %962 = vst.msk [vmem:[#allocation3 + $0x20] sm:$0xff] %vm256_vm1, %v4248_v41  ;;  %1538 = vmatprep.mubr.f32.mxu0 %v3942_v0  ;;  %3524 = vmatpush1.bf16.msra.mxu0 %v4326_v3 }
0x165f   :  { %3526 = vmatprep.subr.bf16.mxu0 %v4330_v6 }
0x1660   :  { %v536_v30 = vpop.permute.xlu0 %535  ;;  %v1426_v14 = vld [vmem:[#allocation3 + $0x10] sm:$0xff] }
0x1661   :  { %538 = vst.msk [vmem:[#allocation3 + $0x30] sm:$0xff] %vm394_vm2, %v536_v30  ;;  %3286 = vmatmul.mubr.msk.f32.gmra.mrb[26].mxu0 %vm1443_vm3, %v1425_v60 }
0x1662   :  { %1248 = vst.msk [vmem:[#allocation3 + $0x30] sm:$0xff] %vm256_vm1, %v4288_v63  ;;  %1544 = vmatprep.mubr.f32.mxu0 %v3942_v0  ;;  %3528 = vmatpush1.bf16.msra.mxu0 %v4332_v18 }
0x1663   :  { %3538 = vmatprep.subr.bf16.mxu0 %v4324_v1 }
0x1664   :  { %v1389_v41 = vpop.permute.xlu0 %1388 }
0x1665   :  { %1391 = vst.msk [vmem:[#allocation3 + $0x38] sm:$0xff] %vm256_vm1, %v1389_v41  ;;  %3287 = vmatmul.mubr.msk.f32.gmra.mrb[28].mxu0 %vm1443_vm3, %v1426_v14  ;;  %v1428_v63 = vld [vmem:[#allocation3 + $0x20] sm:$0xff] }
0x1666   :  { %1550 = vmatprep.mubr.f32.mxu0 %v3942_v0 }
0x1669   :  { %3288 = vmatmul.mubr.msk.f32.gmra.mrb[30].mxu0 %vm1443_vm3, %v1427_v25  ;;  %v1430_v27 = vld [vmem:[#allocation3 + $0x30] sm:$0xff] }
0x166a   :  { %1556 = vmatprep.mubr.f32.mxu0 %v3942_v0 }
0x166c   :  { %v1431_v8 = vld [vmem:[#allocation3 + $0x38] sm:$0xff] }
0x166d   :  { %3289 = vmatmul.mubr.msk.f32.gmra.mrb[32].mxu0 %vm1443_vm3, %v1428_v63 }
0x166e   :  { %1562 = vmatprep.mubr.f32.mxu0 %v3942_v0 }
0x1671   :  { %3290 = vmatmul.mubr.msk.f32.gmra.mrb[34].mxu0 %vm1443_vm3, %v1429_v26 }
0x1672   :  { %1568 = vmatprep.mubr.f32.mxu0 %v3942_v0 }
0x1675   :  { %3291 = vmatmul.mubr.msk.f32.gmra.mrb[36].mxu0 %vm1443_vm3, %v1430_v27 }
0x1676   :  { %1574 = vmatprep.mubr.f32.mxu0 %v3942_v0 }
0x1679   :  { %3292 = vmatmul.mubr.msk.f32.gmra.mrb[38].mxu0 %vm1443_vm3, %v1431_v8 }
0x167a   :  { %2388 = vmatprep.mubr.f32.mxu0 %v3942_v0 }
0x1730   :  { %v1534_v38 = vpop.f32.mrb[24].mxu0 }
0x1731   :  { %v1535_v59 = vadd.f32 %v1534_v38, %v1436_v2  ;;  %v1536_v40 = vpop.f32.mrb[25].mxu0 }
0x1732   :  { %v4392_v42 = vadd.f32 %v1536_v40, %v1440_v37 }
0x1733   :  { %v1674_v15 = vadd.f32 %v1665_v32, %v1535_v59 }
0x1734   :  { %v1540_v43 = vpop.f32.mrb[26].mxu0 }
0x1735   :  { %3707 = vtanh.f32 %v1674_v15  ;;  %v4394_v45 = vadd.f32 %v1540_v43, %v1436_v2  ;;  %v1542_v44 = vpop.f32.mrb[27].mxu0  ;;  %v3293_v56 = vmul.f32 -1.442695, %v1674_v15 }
0x1736   :  { %v4396_v47 = vadd.f32 %v1542_v44, %v1440_v37 }
0x1738   :  { %v1546_v48 = vpop.f32.mrb[28].mxu0 }
0x1739   :  { %v4398_v50 = vadd.f32 %v1546_v48, %v1436_v2  ;;  %v1548_v31 = vpop.f32.mrb[29].mxu0 }
0x173a   :  { %v4400_v51 = vadd.f32 %v1548_v31, %v1440_v37 }
0x173c   :  { %v1552_v28 = vpop.f32.mrb[30].mxu0 }
0x173d   :  { %v4402_v29 = vadd.f32 %v1552_v28, %v1436_v2  ;;  %v1554_v46 = vpop.f32.mrb[31].mxu0 }
0x173e   :  { %v4404_v12 = vadd.f32 %v1554_v46, %v1440_v37 }
0x173f   :  { %v3708_v17 = vpop.eup %3707 }
0x1740   :  { %1694 = vrot.lane.b32.xlu1 %v3708_v17, %s3943_s0  ;;  %v1558_v19 = vpop.f32.mrb[32].mxu0 }
0x1741   :  { %v4407_v53 = vadd.f32 %v1558_v19, %v1436_v2  ;;  %v1560_v55 = vpop.f32.mrb[33].mxu0 }
0x1742   :  { %v4409_v57 = vadd.f32 %v1560_v55, %v1440_v37 }
0x1744   :  { %v1564_v61 = vpop.f32.mrb[34].mxu0 }
0x1745   :  { %v4411_v58 = vadd.f32 %v1564_v61, %v1436_v2  ;;  %v1566_v62 = vpop.f32.mrb[35].mxu0 }
0x1746   :  { %v4413_v49 = vadd.f32 %v1566_v62, %v1440_v37 }
0x1748   :  { %v1570_v21 = vpop.f32.mrb[36].mxu0 }
0x1749   :  { %v4415_v5 = vadd.f32 %v1570_v21, %v1436_v2  ;;  %v1572_v39 = vpop.f32.mrb[37].mxu0 }
0x174a   :  { %v4417_v7 = vadd.f32 %v1572_v39, %v1440_v37 }
0x174c   :  { %v1576_v9 = vpop.f32.mrb[38].mxu0 }
0x174d   :  { %v4419_v10 = vadd.f32 %v1576_v9, %v1436_v2  ;;  %v1578_v11 = vpop.f32.mrb[39].mxu0 }
0x174e   :  { %v1579_v4 = vadd.f32 %v1578_v11, %v1440_v37 }
0x1750   :  { %v1675_v13 = vadd.f32 %v1671_v52, %v1579_v4 }
0x1752   :  { %3709 = vtanh.f32 %v1675_v13  ;;  %v3294_v23 = vmul.f32 -1.442695, %v1675_v13 }
0x1753   :  { %3711 = vpow2.f32 %v3293_v56 }
0x175c   :  { %v3710_v16 = vpop.eup %3709 }
0x175d   :  { %1696 = vrot.lane.b32.xlu0 %v3710_v16, %s3943_s0  ;;  %v3712_v36 = vpop.eup %3711 }
0x175e   :  { %v1682_v22 = vadd.f32 1.0, %v3712_v36 }
0x1760   :  { %3713 = vrcp.f32 %v1682_v22 }
0x1761   :  { %3715 = vpow2.f32 %v3294_v23 }
0x176a   :  { %v3714_v54 = vpop.eup %3713 }
0x176b   :  { %v3716_v30 = vpop.eup %3715  ;;  %v1690_v63 = vmul.f32 0.0, %v3714_v54 }
0x176c   :  { %v1683_v60 = vadd.f32 1.0, %v3716_v30 }
0x176e   :  { %3717 = vrcp.f32 %v1683_v60 }
0x1778   :  { %v3718_v41 = vpop.eup %3717 }
0x1779   :  { %v1691_v32 = vmul.f32 0.0, %v3718_v41 }
0x17b2   :  { %v1695_v20 = vpop.permute.xlu1 %1694 }
0x17b3   :  { %v1700_v24 = vmul.f32 %v3714_v54, %v1695_v20 }
0x17b5   :  { %1704 = vrot.lane.b32.xlu1 %v1700_v24, %s3944_s14 }
0x17cf   :  { %v1697_v14 = vpop.permute.xlu0 %1696 }
0x17d0   :  { %v1701_v25 = vmul.f32 %v3718_v41, %v1697_v14 }
0x17d2   :  { %1706 = vrot.lane.b32.xlu0 %v1701_v25, %s3944_s14 }
0x1827   :  { %v1705_v26 = vpop.permute.xlu1 %1704 }
0x1828   :  { %v1710_v27 = vadd.f32 %v1705_v26, %v1690_v63 }
0x182a   :  { %3719 = vtanh.f32 %v1710_v27 }
0x1834   :  { %v3720_v8 = vpop.eup %3719 }
0x1835   :  { %1716 = vrot.lane.b32.xlu1 %v3720_v8, %s3943_s0 }
0x1844   :  { %v1707_v33 = vpop.permute.xlu0 %1706 }
0x1845   :  { %v1711_v34 = vadd.f32 %v1707_v33, %v1691_v32 }
0x1847   :  { %3721 = vtanh.f32 %v1711_v34 }
0x1851   :  { %v3722_v52 = vpop.eup %3721 }
0x1852   :  { %1718 = vrot.lane.b32.xlu0 %v3722_v52, %s3943_s0 }
0x18a7   :  { %v1717_v35 = vpop.permute.xlu1 %1716 }
0x18a8   :  { %v4426_v2 = vmul.f32 %v3714_v54, %v1717_v35 }
0x18aa   :  { %1727 = vrot.lane.b32.xlu1 %v4426_v2, %s3944_s14 }
0x18c4   :  { %v1719_v37 = vpop.permute.xlu0 %1718 }
0x18c5   :  { %v4430_v38 = vmul.f32 %v3718_v41, %v1719_v37 }
0x18c7   :  { %1738 = vrot.lane.b32.xlu0 %v4430_v38, %s3944_s14 }
0x191c   :  { %v1728_v59 = vpop.permute.xlu1 %1727 }
0x191d   :  { %3295 = vmatmul.mubr.msk.f32.vlgmr.msra.gmra.mrb[28].mxu1 %vm256_vm1, %v1728_v59 }
0x191e   :  { %1813 = vmatprep.mubr.f32.mxu1 %v3942_v0  ;;  %3500 = vmatpush1.bf16.msra.mxu1 %v4326_v3 }
0x191f   :  { %3502 = vmatprep.subr.bf16.mxu1 %v4330_v6 }
0x1922   :  { %3504 = vmatpush1.bf16.msra.mxu1 %v4332_v18 }
0x1923   :  { %3506 = vmatprep.subr.bf16.mxu1 %v4324_v1 }
0x1939   :  { %v1739_v40 = vpop.permute.xlu0 %1738 }
0x193a   :  { %3296 = vmatmul.mubr.msk.f32.gmra.mrb[30].mxu1 %vm256_vm1, %v1739_v40 }
0x193b   :  { %1953 = vmatprep.mubr.f32.mxu1 %v3942_v0 }
0x19f0   :  { %v1810_v15 = vpop.f32.mrb[28].mxu1 }
0x19f1   :  { %v1819_v43 = vadd.f32 %v1810_v15, %v4394_v45  ;;  %v1812_v44 = vpop.f32.mrb[29].mxu1 }
0x19f3   :  { %3723 = vtanh.f32 %v1819_v43  ;;  %v3297_v19 = vmul.f32 -1.442695, %v1819_v43 }
0x19fd   :  { %v3724_v48 = vpop.eup %3723 }
0x19fe   :  { %1839 = vrot.lane.b32.xlu1 %v3724_v48, %s3943_s0 }
0x1a0d   :  { %v1815_v31 = vpop.f32.mrb[30].mxu1 }
0x1a0e   :  { %v1816_v28 = vpop.f32.mrb[31].mxu1 }
0x1a0f   :  { %v1820_v46 = vadd.f32 %v1816_v28, %v4417_v7 }
0x1a11   :  { %3725 = vtanh.f32 %v1820_v46  ;;  %v3298_v62 = vmul.f32 -1.442695, %v1820_v46 }
0x1a12   :  { %3727 = vpow2.f32 %v3297_v19 }
0x1a1b   :  { %v3726_v17 = vpop.eup %3725 }
0x1a1c   :  { %1841 = vrot.lane.b32.xlu0 %v3726_v17, %s3943_s0  ;;  %v3728_v55 = vpop.eup %3727 }
0x1a1d   :  { %v1827_v61 = vadd.f32 1.0, %v3728_v55 }
0x1a1f   :  { %3729 = vrcp.f32 %v1827_v61 }
0x1a20   :  { %3731 = vpow2.f32 %v3298_v62 }
0x1a29   :  { %v3730_v45 = vpop.eup %3729 }
0x1a2a   :  { %v3732_v9 = vpop.eup %3731  ;;  %v1835_v16 = vmul.f32 %v3730_v45, %v1710_v27 }
0x1a2b   :  { %v1828_v11 = vadd.f32 1.0, %v3732_v9 }
0x1a2d   :  { %3733 = vrcp.f32 %v1828_v11 }
0x1a37   :  { %v3734_v7 = vpop.eup %3733 }
0x1a38   :  { %v1836_v23 = vmul.f32 %v3734_v7, %v1711_v34 }
0x1a70   :  { %v1840_v21 = vpop.permute.xlu1 %1839 }
0x1a71   :  { %v1845_v39 = vmul.f32 %v3730_v45, %v1840_v21 }
0x1a73   :  { %1849 = vrot.lane.b32.xlu1 %v1845_v39, %s3944_s14 }
0x1a8e   :  { %v1842_v4 = vpop.permute.xlu0 %1841 }
0x1a8f   :  { %v1846_v13 = vmul.f32 %v3734_v7, %v1842_v4 }
0x1a91   :  { %1851 = vrot.lane.b32.xlu0 %v1846_v13, %s3944_s14 }
0x1ae5   :  { %v1850_v56 = vpop.permute.xlu1 %1849 }
0x1ae6   :  { %v1855_v36 = vadd.f32 %v1850_v56, %v1835_v16 }
0x1ae8   :  { %3735 = vtanh.f32 %v1855_v36 }
0x1af2   :  { %v3736_v22 = vpop.eup %3735 }
0x1af3   :  { %1861 = vrot.lane.b32.xlu1 %v3736_v22, %s3943_s0 }
0x1b03   :  { %v1852_v54 = vpop.permute.xlu0 %1851 }
0x1b04   :  { %v1856_v20 = vadd.f32 %v1852_v54, %v1836_v23 }
0x1b06   :  { %3737 = vtanh.f32 %v1856_v20 }
0x1b10   :  { %v3738_v24 = vpop.eup %3737 }
0x1b11   :  { %1863 = vrot.lane.b32.xlu0 %v3738_v24, %s3943_s0 }
0x1b65   :  { %v1862_v30 = vpop.permute.xlu1 %1861 }
0x1b66   :  { %v1867_v60 = vmul.f32 %v3730_v45, %v1862_v30 }
0x1b68   :  { %1872 = vrot.lane.b32.xlu1 %v1867_v60, %s3944_s14  ;;  %v1869_v11 = vadd.f32 %v1867_v60, %v4426_v2 }
0x1b83   :  { %v1864_v41 = vpop.permute.xlu0 %1863 }
0x1b84   :  { %v4451_v14 = vmul.f32 %v3734_v7, %v1864_v41 }
0x1b86   :  { %1883 = vrot.lane.b32.xlu0 %v4451_v14, %s3944_s14 }
0x1bda   :  { %v1873_v25 = vpop.permute.xlu1 %1872 }
0x1bdb   :  { %3299 = vmatmul.mubr.msk.f32.vlgmr.msra.gmra.mrb[32].mxu1 %vm256_vm1, %v1873_v25 }
0x1bdc   :  { %1958 = vmatprep.mubr.f32.mxu1 %v3942_v0  ;;  %3508 = vmatpush1.bf16.msra.mxu1 %v4326_v3 }
0x1bdd   :  { %3510 = vmatprep.subr.bf16.mxu1 %v4330_v6 }
0x1be0   :  { %3512 = vmatpush1.bf16.msra.mxu1 %v4332_v18 }
0x1be1   :  { %3514 = vmatprep.subr.bf16.mxu1 %v4324_v1 }
0x1bf8   :  { %v1884_v63 = vpop.permute.xlu0 %1883 }
0x1bf9   :  { %3300 = vmatmul.mubr.msk.f32.gmra.mrb[34].mxu1 %vm256_vm1, %v1884_v63 }
0x1bfa   :  { %2098 = vmatprep.mubr.f32.mxu1 %v3942_v0 }
0x1cae   :  { %v1955_v26 = vpop.f32.mrb[32].mxu1 }
0x1caf   :  { %v1964_v27 = vadd.f32 %v1955_v26, %v4398_v50  ;;  %v1957_v8 = vpop.f32.mrb[33].mxu1 }
0x1cb1   :  { %3739 = vtanh.f32 %v1964_v27  ;;  %v3301_v37 = vmul.f32 -1.442695, %v1964_v27 }
0x1cbb   :  { %v3740_v32 = vpop.eup %3739 }
0x1cbc   :  { %1984 = vrot.lane.b32.xlu1 %v3740_v32, %s3943_s0 }
0x1ccc   :  { %v1960_v33 = vpop.f32.mrb[34].mxu1 }
0x1ccd   :  { %v1961_v34 = vpop.f32.mrb[35].mxu1 }
0x1cce   :  { %v1965_v52 = vadd.f32 %v1961_v34, %v4413_v49 }
0x1cd0   :  { %3741 = vtanh.f32 %v1965_v52  ;;  %v3302_v50 = vmul.f32 -1.442695, %v1965_v52 }
0x1cd1   :  { %3743 = vpow2.f32 %v3301_v37 }
0x1cda   :  { %v3742_v35 = vpop.eup %3741 }
0x1cdb   :  { %1986 = vrot.lane.b32.xlu0 %v3742_v35, %s3943_s0  ;;  %v3744_v59 = vpop.eup %3743 }
0x1cdc   :  { %v1972_v40 = vadd.f32 1.0, %v3744_v59 }
0x1cde   :  { %3745 = vrcp.f32 %v1972_v40 }
0x1cdf   :  { %3747 = vpow2.f32 %v3302_v50 }
0x1ce8   :  { %v3746_v15 = vpop.eup %3745 }
0x1ce9   :  { %v3748_v48 = vpop.eup %3747  ;;  %v1980_v17 = vmul.f32 %v3746_v15, %v1855_v36 }
0x1cea   :  { %v1973_v31 = vadd.f32 1.0, %v3748_v48 }
0x1cec   :  { %3749 = vrcp.f32 %v1973_v31 }
0x1cf6   :  { %v3750_v49 = vpop.eup %3749 }
0x1cf7   :  { %v1981_v62 = vmul.f32 %v3750_v49, %v1856_v20 }
0x1d2e   :  { %v1985_v43 = vpop.permute.xlu1 %1984 }
0x1d2f   :  { %v1990_v44 = vmul.f32 %v3746_v15, %v1985_v43 }
0x1d31   :  { %1994 = vrot.lane.b32.xlu1 %v1990_v44, %s3944_s14 }
0x1d4d   :  { %v1987_v28 = vpop.permute.xlu0 %1986 }
0x1d4e   :  { %v1991_v46 = vmul.f32 %v3750_v49, %v1987_v28 }
0x1d50   :  { %1996 = vrot.lane.b32.xlu0 %v1991_v46, %s3944_s14 }
0x1da3   :  { %v1995_v19 = vpop.permute.xlu1 %1994 }
0x1da4   :  { %v2000_v55 = vadd.f32 %v1995_v19, %v1980_v17 }
0x1da6   :  { %3751 = vtanh.f32 %v2000_v55 }
0x1db0   :  { %v3752_v61 = vpop.eup %3751 }
0x1db1   :  { %2006 = vrot.lane.b32.xlu1 %v3752_v61, %s3943_s0 }
0x1dc2   :  { %v1997_v45 = vpop.permute.xlu0 %1996 }
0x1dc3   :  { %v2001_v21 = vadd.f32 %v1997_v45, %v1981_v62 }
0x1dc5   :  { %3753 = vtanh.f32 %v2001_v21 }
0x1dcf   :  { %v3754_v39 = vpop.eup %3753 }
0x1dd0   :  { %2008 = vrot.lane.b32.xlu0 %v3754_v39, %s3943_s0 }
0x1e23   :  { %v2007_v9 = vpop.permute.xlu1 %2006 }
0x1e24   :  { %v2012_v7 = vmul.f32 %v3746_v15, %v2007_v9 }
0x1e26   :  { %v2014_v4 = vadd.f32 %v2012_v7, %v1869_v11  ;;  %2017 = vrot.lane.b32.xlu1 %v2012_v7, %s3944_s14 }
0x1e42   :  { %v2009_v13 = vpop.permute.xlu0 %2008 }
0x1e43   :  { %v4473_v16 = vmul.f32 %v3750_v49, %v2009_v13 }
0x1e45   :  { %2028 = vrot.lane.b32.xlu0 %v4473_v16, %s3944_s14 }
0x1e98   :  { %v2018_v56 = vpop.permute.xlu1 %2017 }
0x1e99   :  { %3303 = vmatmul.mubr.msk.f32.vlgmr.msra.gmra.mrb[36].mxu1 %vm256_vm1, %v2018_v56 }
0x1e9a   :  { %2103 = vmatprep.mubr.f32.mxu1 %v3942_v0  ;;  %3516 = vmatpush1.bf16.msra.mxu1 %v4326_v3 }
0x1e9b   :  { %3518 = vmatprep.subr.bf16.mxu1 %v4330_v6 }
0x1e9e   :  { %3520 = vmatpush1.bf16.msra.mxu1 %v4332_v18 }
0x1e9f   :  { %3530 = vmatprep.subr.bf16.mxu1 %v4324_v1 }
0x1eb7   :  { %v2029_v2 = vpop.permute.xlu0 %2028 }
0x1eb8   :  { %3304 = vmatmul.mubr.msk.f32.gmra.mrb[38].mxu1 %vm256_vm1, %v2029_v2 }
0x1eb9   :  { %2243 = vmatprep.mubr.f32.mxu1 %v3942_v0 }
0x1f6c   :  { %v2100_v36 = vpop.f32.mrb[36].mxu1 }
0x1f6d   :  { %v2109_v22 = vadd.f32 %v2100_v36, %v4402_v29  ;;  %v2102_v23 = vpop.f32.mrb[37].mxu1 }
0x1f6f   :  { %3755 = vtanh.f32 %v2109_v22  ;;  %v3305_v1 = vmul.f32 -1.442695, %v2109_v22 }
0x1f79   :  { %v3756_v54 = vpop.eup %3755 }
0x1f7a   :  { %2129 = vrot.lane.b32.xlu1 %v3756_v54, %s3943_s0 }
0x1f8b   :  { %v2105_v20 = vpop.f32.mrb[38].mxu1 }
0x1f8c   :  { %v2106_v24 = vpop.f32.mrb[39].mxu1 }
0x1f8d   :  { %v2110_v30 = vadd.f32 %v2106_v24, %v4409_v57 }
0x1f8f   :  { %3757 = vtanh.f32 %v2110_v30  ;;  %v3306_v26 = vmul.f32 -1.442695, %v2110_v30 }
0x1f90   :  { %3759 = vpow2.f32 %v3305_v1 }
0x1f99   :  { %v3758_v60 = vpop.eup %3757 }
0x1f9a   :  { %2131 = vrot.lane.b32.xlu0 %v3758_v60, %s3943_s0  ;;  %v3760_v41 = vpop.eup %3759 }
0x1f9b   :  { %v2117_v25 = vadd.f32 1.0, %v3760_v41 }
0x1f9d   :  { %3761 = vrcp.f32 %v2117_v25 }
0x1f9e   :  { %3763 = vpow2.f32 %v3306_v26 }
0x1fa7   :  { %v3762_v63 = vpop.eup %3761 }
0x1fa8   :  { %v3764_v8 = vpop.eup %3763  ;;  %v2125_v52 = vmul.f32 %v3762_v63, %v2000_v55 }
0x1fa9   :  { %v2118_v32 = vadd.f32 1.0, %v3764_v8 }
0x1fab   :  { %3765 = vrcp.f32 %v2118_v32 }
0x1fb5   :  { %v3766_v57 = vpop.eup %3765 }
0x1fb6   :  { %v2126_v40 = vmul.f32 %v3766_v57, %v2001_v21 }
0x1fec   :  { %v2130_v29 = vpop.permute.xlu1 %2129 }
0x1fed   :  { %v2135_v27 = vmul.f32 %v3762_v63, %v2130_v29 }
0x1fef   :  { %2139 = vrot.lane.b32.xlu1 %v2135_v27, %s3944_s14 }
0x200c   :  { %v2132_v33 = vpop.permute.xlu0 %2131 }
0x200d   :  { %v2136_v34 = vmul.f32 %v3766_v57, %v2132_v33 }
0x200f   :  { %2141 = vrot.lane.b32.xlu0 %v2136_v34, %s3944_s14 }
0x2061   :  { %v2140_v35 = vpop.permute.xlu1 %2139 }
0x2062   :  { %v2145_v37 = vadd.f32 %v2140_v35, %v2125_v52 }
0x2064   :  { %3767 = vtanh.f32 %v2145_v37 }
0x206e   :  { %v3768_v59 = vpop.eup %3767 }
0x206f   :  { %2151 = vrot.lane.b32.xlu1 %v3768_v59, %s3943_s0 }
0x2081   :  { %v2142_v15 = vpop.permute.xlu0 %2141 }
0x2082   :  { %v2146_v50 = vadd.f32 %v2142_v15, %v2126_v40 }
0x2084   :  { %3769 = vtanh.f32 %v2146_v50 }
0x208e   :  { %v3770_v43 = vpop.eup %3769 }
0x208f   :  { %2153 = vrot.lane.b32.xlu0 %v3770_v43, %s3943_s0 }
0x20e1   :  { %v2152_v44 = vpop.permute.xlu1 %2151 }
0x20e2   :  { %v2157_v48 = vmul.f32 %v3762_v63, %v2152_v44 }
0x20e4   :  { %v2159_v31 = vadd.f32 %v2157_v48, %v2014_v4  ;;  %2162 = vrot.lane.b32.xlu1 %v2157_v48, %s3944_s14 }
0x2101   :  { %v2154_v49 = vpop.permute.xlu0 %2153 }
0x2102   :  { %v4494_v28 = vmul.f32 %v3766_v57, %v2154_v49 }
0x2104   :  { %2173 = vrot.lane.b32.xlu0 %v4494_v28, %s3944_s14 }
0x2156   :  { %v2163_v46 = vpop.permute.xlu1 %2162 }
0x2157   :  { %3307 = vmatmul.mubr.msk.f32.vlgmr.msra.gmra.mrb[40].mxu1 %vm256_vm1, %v2163_v46 }
0x2158   :  { %2248 = vmatprep.mubr.f32.mxu1 %v3942_v0  ;;  %3532 = vmatpush1.bf16.msra.mxu1 %v4326_v3 }
0x2159   :  { %3534 = vmatprep.subr.bf16.mxu1 %v4330_v6 }
0x215c   :  { %3536 = vmatpush1.bf16.msra.mxu1 %v4332_v18 }
0x2176   :  { %v2174_v17 = vpop.permute.xlu0 %2173 }
0x2177   :  { %3308 = vmatmul.mubr.msk.f32.gmra.mrb[42].mxu1 %vm256_vm1, %v2174_v17 }
0x2178   :  { %2533 = vmatprep.mubr.f32.mxu1 %v3942_v0 }
0x222a   :  { %v2245_v19 = vpop.f32.mrb[40].mxu1 }
0x222b   :  { %v2254_v55 = vadd.f32 %v2245_v19, %v4407_v53  ;;  %v2247_v61 = vpop.f32.mrb[41].mxu1 }
0x222d   :  { %3771 = vtanh.f32 %v2254_v55  ;;  %v3309_v11 = vmul.f32 -1.442695, %v2254_v55 }
0x2237   :  { %v3772_v62 = vpop.eup %3771 }
0x2238   :  { %2274 = vrot.lane.b32.xlu1 %v3772_v62, %s3943_s0 }
0x224a   :  { %v2250_v45 = vpop.f32.mrb[42].mxu1 }
0x224b   :  { %v2251_v21 = vpop.f32.mrb[43].mxu1 }
0x224c   :  { %v2255_v39 = vadd.f32 %v2251_v21, %v4404_v12 }
0x224e   :  { %3773 = vtanh.f32 %v2255_v39  ;;  %v3310_v2 = vmul.f32 -1.442695, %v2255_v39 }
0x224f   :  { %3775 = vpow2.f32 %v3309_v11 }
0x2258   :  { %v3774_v9 = vpop.eup %3773 }
0x2259   :  { %2276 = vrot.lane.b32.xlu0 %v3774_v9, %s3943_s0  ;;  %v3776_v7 = vpop.eup %3775 }
0x225a   :  { %v2262_v4 = vadd.f32 1.0, %v3776_v7 }
0x225c   :  { %3777 = vrcp.f32 %v2262_v4 }
0x225d   :  { %3779 = vpow2.f32 %v3310_v2 }
0x2266   :  { %v3778_v13 = vpop.eup %3777 }
0x2267   :  { %v3780_v36 = vpop.eup %3779  ;;  %v2270_v20 = vmul.f32 %v3778_v13, %v2145_v37 }
0x2268   :  { %v2263_v22 = vadd.f32 1.0, %v3780_v36 }
0x226a   :  { %3781 = vrcp.f32 %v2263_v22 }
0x2274   :  { %v3782_v12 = vpop.eup %3781 }
0x2275   :  { %v2271_v1 = vmul.f32 %v3782_v12, %v2146_v50 }
0x22aa   :  { %v2275_v53 = vpop.permute.xlu1 %2274 }
0x22ab   :  { %v2280_v56 = vmul.f32 %v3778_v13, %v2275_v53 }
0x22ad   :  { %2284 = vrot.lane.b32.xlu1 %v2280_v56, %s3944_s14 }
0x22cb   :  { %v2277_v23 = vpop.permute.xlu0 %2276 }
0x22cc   :  { %v2281_v54 = vmul.f32 %v3782_v12, %v2277_v23 }
0x22ce   :  { %2286 = vrot.lane.b32.xlu0 %v2281_v54, %s3944_s14 }
0x231f   :  { %v2285_v24 = vpop.permute.xlu1 %2284 }
0x2320   :  { %v2290_v30 = vadd.f32 %v2285_v24, %v2270_v20 }
0x2322   :  { %3783 = vtanh.f32 %v2290_v30 }
0x232c   :  { %v3784_v60 = vpop.eup %3783 }
0x232d   :  { %2296 = vrot.lane.b32.xlu1 %v3784_v60, %s3943_s0 }
0x2340   :  { %v2287_v41 = vpop.permute.xlu0 %2286 }
0x2341   :  { %v2291_v25 = vadd.f32 %v2287_v41, %v2271_v1 }
0x2343   :  { %3785 = vtanh.f32 %v2291_v25 }
0x234d   :  { %v3786_v63 = vpop.eup %3785 }
0x234e   :  { %2298 = vrot.lane.b32.xlu0 %v3786_v63, %s3943_s0 }
0x239f   :  { %v2297_v29 = vpop.permute.xlu1 %2296 }
0x23a0   :  { %v2302_v26 = vmul.f32 %v3778_v13, %v2297_v29 }
0x23a2   :  { %v2304_v27 = vadd.f32 %v2302_v26, %v2159_v31  ;;  %2307 = vrot.lane.b32.xlu1 %v2302_v26, %s3944_s14 }
0x23c0   :  { %v2299_v8 = vpop.permute.xlu0 %2298 }
0x23c1   :  { %v4514_v32 = vmul.f32 %v3782_v12, %v2299_v8 }
0x23c3   :  { %2318 = vrot.lane.b32.xlu0 %v4514_v32, %s3944_s14 }
0x2414   :  { %v2308_v57 = vpop.permute.xlu1 %2307 }
0x2415   :  { %3311 = vmatmul.mubr.msk.f32.vlgmr.msra.gmra.mrb[40].mxu0 %vm256_vm1, %v2308_v57 }
0x2416   :  { %2393 = vmatprep.mubr.f32.mxu0 %v3942_v0  ;;  %3540 = vmatpush1.bf16.msra.mxu0 %v4326_v3 }
0x2417   :  { %3542 = vmatprep.subr.bf16.mxu0 %v4330_v6 }
0x241a   :  { %3544 = vmatpush1.bf16.msra.mxu0 %v4332_v18 }
0x2435   :  { %v2319_v33 = vpop.permute.xlu0 %2318 }
0x2436   :  { %3312 = vmatmul.mubr.msk.f32.gmra.mrb[42].mxu0 %vm256_vm1, %v2319_v33 }
0x2437   :  { %2678 = vmatprep.mubr.f32.mxu0 %v3942_v0 }
0x24e8   :  { %v2390_v34 = vpop.f32.mrb[40].mxu0 }
0x24e9   :  { %v2399_v52 = vadd.f32 %v2390_v34, %v4411_v58  ;;  %v2392_v35 = vpop.f32.mrb[41].mxu0 }
0x24eb   :  { %3787 = vtanh.f32 %v2399_v52  ;;  %v3313_v18 = vmul.f32 -1.442695, %v2399_v52 }
0x24f5   :  { %v3788_v37 = vpop.eup %3787 }
0x24f6   :  { %2419 = vrot.lane.b32.xlu1 %v3788_v37, %s3943_s0 }
0x2509   :  { %v2395_v59 = vpop.f32.mrb[42].mxu0 }
0x250a   :  { %v2396_v40 = vpop.f32.mrb[43].mxu0 }
0x250b   :  { %v2400_v3 = vadd.f32 %v2396_v40, %v4400_v51 }
0x250d   :  { %3789 = vtanh.f32 %v2400_v3  ;;  %v3314_v48 = vmul.f32 -1.442695, %v2400_v3 }
0x250e   :  { %3791 = vpow2.f32 %v3313_v18 }
0x2517   :  { %v3790_v6 = vpop.eup %3789 }
0x2518   :  { %2421 = vrot.lane.b32.xlu0 %v3790_v6, %s3943_s0  ;;  %v3792_v15 = vpop.eup %3791 }
0x2519   :  { %v2407_v50 = vadd.f32 1.0, %v3792_v15 }
0x251b   :  { %3793 = vrcp.f32 %v2407_v50 }
0x251c   :  { %3795 = vpow2.f32 %v3314_v48 }
0x2525   :  { %v3794_v43 = vpop.eup %3793 }
0x2526   :  { %v3796_v31 = vpop.eup %3795  ;;  %v2415_v19 = vmul.f32 %v3794_v43, %v2290_v30 }
0x2527   :  { %v2408_v49 = vadd.f32 1.0, %v3796_v31 }
0x2529   :  { %3797 = vrcp.f32 %v2408_v49 }
0x2533   :  { %v3798_v51 = vpop.eup %3797 }
0x2534   :  { %v2416_v45 = vmul.f32 %v3798_v51, %v2291_v25 }
0x2568   :  { %v2420_v58 = vpop.permute.xlu1 %2419 }
0x2569   :  { %v2425_v44 = vmul.f32 %v3794_v43, %v2420_v58 }
0x256b   :  { %2429 = vrot.lane.b32.xlu1 %v2425_v44, %s3944_s14 }
0x258a   :  { %v2422_v46 = vpop.permute.xlu0 %2421 }
0x258b   :  { %v2426_v17 = vmul.f32 %v3798_v51, %v2422_v46 }
0x258d   :  { %2431 = vrot.lane.b32.xlu0 %v2426_v17, %s3944_s14 }
0x25dd   :  { %v2430_v55 = vpop.permute.xlu1 %2429 }
0x25de   :  { %v2435_v61 = vadd.f32 %v2430_v55, %v2415_v19 }
0x25e0   :  { %3799 = vtanh.f32 %v2435_v61 }
0x25ea   :  { %v3800_v62 = vpop.eup %3799 }
0x25eb   :  { %2441 = vrot.lane.b32.xlu1 %v3800_v62, %s3943_s0 }
0x25ff   :  { %v2432_v21 = vpop.permute.xlu0 %2431 }
0x2600   :  { %v2436_v39 = vadd.f32 %v2432_v21, %v2416_v45 }
0x2602   :  { %3801 = vtanh.f32 %v2436_v39 }
0x260c   :  { %v3802_v9 = vpop.eup %3801 }
0x260d   :  { %2443 = vrot.lane.b32.xlu0 %v3802_v9, %s3943_s0 }
0x265d   :  { %v2442_v11 = vpop.permute.xlu1 %2441 }
0x265e   :  { %v2447_v7 = vmul.f32 %v3794_v43, %v2442_v11 }
0x2660   :  { %v2449_v4 = vadd.f32 %v2447_v7, %v2304_v27  ;;  %2452 = vrot.lane.b32.xlu1 %v2447_v7, %s3944_s14 }
0x267f   :  { %v2444_v13 = vpop.permute.xlu0 %2443 }
0x2680   :  { %v4534_v53 = vmul.f32 %v3798_v51, %v2444_v13 }
0x2682   :  { %2463 = vrot.lane.b32.xlu0 %v4534_v53, %s3944_s14 }
0x26d2   :  { %v2453_v56 = vpop.permute.xlu1 %2452 }
0x26d3   :  { %3315 = vmatmul.mubr.msk.f32.vlgmr.msra.gmra.mrb[44].mxu1 %vm256_vm1, %v2453_v56 }
0x26d4   :  { %2538 = vmatprep.mubr.f32.mxu1 %v3942_v0 }
0x26f4   :  { %v2464_v2 = vpop.permute.xlu0 %2463 }
0x26f5   :  { %3316 = vmatmul.mubr.msk.f32.gmra.mrb[46].mxu1 %vm256_vm1, %v2464_v2 }
0x26f6   :  { %3360 = vmatprep.mubr.msk.f32.mxu1 %vm3946_vm4, %v3942_v0 }
0x27a6   :  { %v2535_v36 = vpop.f32.mrb[44].mxu1 }
0x27a7   :  { %v2544_v22 = vadd.f32 %v2535_v36, %v4415_v5  ;;  %v2537_v12 = vpop.f32.mrb[45].mxu1 }
0x27a9   :  { %3803 = vtanh.f32 %v2544_v22  ;;  %v3317_v60 = vmul.f32 -1.442695, %v2544_v22 }
0x27b3   :  { %v3804_v23 = vpop.eup %3803 }
0x27b4   :  { %2564 = vrot.lane.b32.xlu1 %v3804_v23, %s3943_s0 }
0x27c8   :  { %v2540_v54 = vpop.f32.mrb[46].mxu1 }
0x27c9   :  { %v2541_v20 = vpop.f32.mrb[47].mxu1 }
0x27ca   :  { %v2545_v24 = vadd.f32 %v2541_v20, %v4396_v47 }
0x27cc   :  { %3805 = vtanh.f32 %v2545_v24  ;;  %v3318_v29 = vmul.f32 -1.442695, %v2545_v24  ;;  %v2753_v24 = vld [vmem:[#allocation10] sm:$0xff] }
0x27cd   :  { %3807 = vpow2.f32 %v3317_v60  ;;  %v2755_v60 = vld [vmem:[#allocation10 + $0x10] sm:$0xff] }
0x27d6   :  { %v3806_v30 = vpop.eup %3805 }
0x27d7   :  { %2566 = vrot.lane.b32.xlu0 %v3806_v30, %s3943_s0  ;;  %v3808_v1 = vpop.eup %3807  ;;  %v2754_v30 = vld [vmem:[#allocation10 + $0x8] sm:$0xff] }
0x27d8   :  { %v2552_v41 = vadd.f32 1.0, %v3808_v1  ;;  %v3945_v1 = vmov 0.0|0.0  }
0x27d9   :  { %3551 = vmatprep.subr.bf16.mxu0 %v3945_v1  ;;  %3545 = vmatprep.subr.bf16.mxu1 %v3945_v1 }
0x27da   :  { %3809 = vrcp.f32 %v2552_v41  ;;  %v3552_v41 = vpack.c.bf16 %v2754_v30, %v2753_v24 }
0x27db   :  { %3811 = vpow2.f32 %v3318_v29 }
0x27e4   :  { %v3810_v25 = vpop.eup %3809 }
0x27e5   :  { %v3812_v26 = vpop.eup %3811  ;;  %v2560_v33 = vmul.f32 %v3810_v25, %v2435_v61 }
0x27e6   :  { %v2553_v27 = vadd.f32 1.0, %v3812_v26 }
0x27e8   :  { %3813 = vrcp.f32 %v2553_v27 }
0x27f2   :  { %v3814_v47 = vpop.eup %3813 }
0x27f3   :  { %v2561_v37 = vmul.f32 %v3814_v47, %v2436_v39 }
0x2826   :  { %v2565_v5 = vpop.permute.xlu1 %2564 }
0x2827   :  { %v2570_v63 = vmul.f32 %v3810_v25, %v2565_v5 }
0x2829   :  { %2574 = vrot.lane.b32.xlu1 %v2570_v63, %s3944_s14 }
0x2849   :  { %v2567_v8 = vpop.permute.xlu0 %2566 }
0x284a   :  { %v2571_v57 = vmul.f32 %v3814_v47, %v2567_v8  ;;  %v2758_v8 = vld [vmem:[#allocation10 + $0x28] sm:$0xff] }
0x284c   :  { %2576 = vrot.lane.b32.xlu0 %v2571_v57, %s3944_s14  ;;  %v2759_v57 = vld [vmem:[#allocation10 + $0x30] sm:$0xff] }
0x289b   :  { %v2575_v34 = vpop.permute.xlu1 %2574 }
0x289c   :  { %v2580_v52 = vadd.f32 %v2575_v34, %v2560_v33  ;;  %v2760_v34 = vld [vmem:[#allocation10 + $0x38] sm:$0xff] }
0x289e   :  { %3815 = vtanh.f32 %v2580_v52 }
0x28a8   :  { %v3816_v35 = vpop.eup %3815 }
0x28a9   :  { %2586 = vrot.lane.b32.xlu1 %v3816_v35, %s3943_s0  ;;  %v1870_v35 = vadd.f32 %v4451_v14, %v4430_v38 }
0x28be   :  { %v2577_v59 = vpop.permute.xlu0 %2576 }
0x28bf   :  { %v2581_v40 = vadd.f32 %v2577_v59, %v2561_v37  ;;  %v2015_v37 = vadd.f32 %v4473_v16, %v1870_v35 }
0x28c1   :  { %3817 = vtanh.f32 %v2581_v40  ;;  %v2160_v59 = vadd.f32 %v4494_v28, %v2015_v37 }
0x28cb   :  { %v3818_v3 = vpop.eup %3817 }
0x28cc   :  { %2588 = vrot.lane.b32.xlu0 %v3818_v3, %s3943_s0 }
0x291b   :  { %v2587_v6 = vpop.permute.xlu1 %2586 }
0x291c   :  { %v2592_v18 = vmul.f32 %v3810_v25, %v2587_v6  ;;  %v2756_v25 = vld [vmem:[#allocation10 + $0x18] sm:$0xff] }
0x291d   :  { %v3555_v5 = vpack.c.bf16 %v2756_v25, %v2755_v60 }
0x291e   :  { %v4549_v15 = vadd.f32 %v2592_v18, %v2449_v4  ;;  %2597 = vrot.lane.b32.xlu1 %v2592_v18, %s3944_s14 }
0x293e   :  { %v2589_v50 = vpop.permute.xlu0 %2588 }
0x293f   :  { %v4552_v43 = vmul.f32 %v3814_v47, %v2589_v50  ;;  %v2757_v47 = vld [vmem:[#allocation10 + $0x20] sm:$0xff] }
0x2940   :  { %v3546_v33 = vpack.c.bf16 %v2758_v8, %v2757_v47  ;;  %v3047_v47 = vld [vmem:[#allocation10 + $0x68] sm:$0xff] }
0x2941   :  { %2608 = vrot.lane.b32.xlu0 %v4552_v43, %s3944_s14 }
0x2942   :  { %3547 = vmatpush3.bf16.msra.mxu1 %v3546_v33 }
0x2943   :  { %3548 = vmatprep.subr.bf16.mxu1 %v3945_v1 }
0x2990   :  { %v2598_v58 = vpop.permute.xlu1 %2597 }
0x2991   :  { %3319 = vmatmul.mubr.msk.f32.vlgmr.msra.gmra.mrb[44].mxu0 %vm256_vm1, %v2598_v58 }
0x2992   :  { %2683 = vmatprep.mubr.f32.mxu0 %v3942_v0  ;;  %3553 = vmatpush3.bf16.msra.mxu0 %v3552_v41 }
0x2993   :  { %3554 = vmatprep.subr.bf16.mxu0 %v3945_v1 }
0x2996   :  { %3556 = vmatpush3.bf16.msra.mxu0 %v3555_v5 }
0x2997   :  { %3563 = vmatprep.subr.bf16.mxu0 %v3945_v1 }
0x29b3   :  { %v2609_v44 = vpop.permute.xlu0 %2608 }
0x29b4   :  { %3320 = vmatmul.mubr.msk.f32.gmra.mrb[46].mxu0 %vm256_vm1, %v2609_v44 }
0x29b5   :  { %3371 = vmatprep.mubr.msk.f32.mxu0 %vm3946_vm4, %v3942_v0 }
0x2a64   :  { %v2680_v48 = vpop.f32.mrb[44].mxu0 }
0x2a65   :  { %v2689_v31 = vadd.f32 %v2680_v48, %v4419_v10  ;;  %v2682_v49 = vpop.f32.mrb[45].mxu0 }
0x2a67   :  { %3819 = vtanh.f32 %v2689_v31  ;;  %v3321_v61 = vmul.f32 -1.442695, %v2689_v31 }
0x2a71   :  { %v3820_v51 = vpop.eup %3819 }
0x2a72   :  { %2709 = vrot.lane.b32.xlu1 %v3820_v51, %s3943_s0  ;;  %v2941_v51 = vld [vmem:[#allocation10 + $0x40] sm:$0xff] }
0x2a87   :  { %v2685_v46 = vpop.f32.mrb[46].mxu0 }
0x2a88   :  { %v2686_v17 = vpop.f32.mrb[47].mxu0  ;;  %v2942_v46 = vld [vmem:[#allocation10 + $0x48] sm:$0xff] }
0x2a89   :  { %v2690_v19 = vadd.f32 %v2686_v17, %v4392_v42  ;;  %v3558_v17 = vpack.c.bf16 %v2942_v46, %v2941_v51  ;;  %v3149_v46 = vld [vmem:[#allocation10 + $0x70] sm:$0xff] }
0x2a8b   :  { %3821 = vtanh.f32 %v2690_v19  ;;  %v3322_v9 = vmul.f32 -1.442695, %v2690_v19  ;;  %v2943_v19 = vld [vmem:[#allocation10 + $0x50] sm:$0xff] }
0x2a8c   :  { %3823 = vpow2.f32 %v3321_v61 }
0x2a95   :  { %v3822_v55 = vpop.eup %3821 }
0x2a96   :  { %2711 = vrot.lane.b32.xlu0 %v3822_v55, %s3943_s0  ;;  %v3824_v62 = vpop.eup %3823  ;;  %v2944_v55 = vld [vmem:[#allocation10 + $0x58] sm:$0xff] }
0x2a97   :  { %v2697_v45 = vadd.f32 1.0, %v3824_v62  ;;  %v3561_v61 = vpack.c.bf16 %v2944_v55, %v2943_v19 }
0x2a99   :  { %3825 = vrcp.f32 %v2697_v45 }
0x2a9a   :  { %3827 = vpow2.f32 %v3322_v9 }
0x2aa3   :  { %v3826_v21 = vpop.eup %3825 }
0x2aa4   :  { %v3828_v11 = vpop.eup %3827  ;;  %v2705_v56 = vmul.f32 %v3826_v21, %v2580_v52  ;;  %v3549_v52 = vpack.c.bf16 %v2760_v34, %v2759_v57  ;;  %v3326_v57 = vld [vmem:[%s4645_s6 + $0x1] ss:$0 sm:$0xff] }
0x2aa5   :  { %v2698_v7 = vadd.f32 1.0, %v3828_v11 }
0x2aa6   :  { %3550 = vmatpush3.bf16.msra.mxu1 %v3549_v52 }
0x2aa7   :  { %3829 = vrcp.f32 %v2698_v7  ;;  %3557 = vmatprep.subr.bf16.mxu1 %v3945_v1 }
0x2ab1   :  { %v3830_v42 = vpop.eup %3829 }
0x2ab2   :  { %v2706_v12 = vmul.f32 %v3830_v42, %v2581_v40  ;;  %v2305_v40 = vadd.f32 %v4514_v32, %v2160_v59 }
0x2ab4   :  { %v2450_v3 = vadd.f32 %v4534_v53, %v2305_v40 }
0x2ab6   :  { %v2595_v18 = vadd.f32 %v4552_v43, %v2450_v3 }
0x2ae4   :  { %v2710_v10 = vpop.permute.xlu1 %2709 }
0x2ae5   :  { %v2715_v39 = vmul.f32 %v3826_v21, %v2710_v10 }
0x2ae7   :  { %2719 = vrot.lane.b32.xlu1 %v2715_v39, %s3944_s14 }
0x2b08   :  { %v2712_v4 = vpop.permute.xlu0 %2711 }
0x2b09   :  { %v2716_v13 = vmul.f32 %v3830_v42, %v2712_v4 }
0x2b0b   :  { %2721 = vrot.lane.b32.xlu0 %v2716_v13, %s3944_s14 }
0x2b59   :  { %v2720_v2 = vpop.permute.xlu1 %2719 }
0x2b5a   :  { %v2725_v36 = vadd.f32 %v2720_v2, %v2705_v56 }
0x2b5c   :  { %3831 = vtanh.f32 %v2725_v36 }
0x2b66   :  { %v3832_v22 = vpop.eup %3831 }
0x2b67   :  { %2731 = vrot.lane.b32.xlu1 %v3832_v22, %s3943_s0 }
0x2b7d   :  { %v2722_v23 = vpop.permute.xlu0 %2721 }
0x2b7e   :  { %v2726_v54 = vadd.f32 %v2722_v23, %v2706_v12 }
0x2b80   :  { %3833 = vtanh.f32 %v2726_v54 }
0x2b8a   :  { %v3834_v20 = vpop.eup %3833 }
0x2b8b   :  { %2733 = vrot.lane.b32.xlu0 %v3834_v20, %s3943_s0 }
0x2bd9   :  { %v2732_v63 = vpop.permute.xlu1 %2731 }
0x2bda   :  { %v2737_v29 = vmul.f32 %v3826_v21, %v2732_v63  ;;  %v3325_v21 = vld [vmem:[%s4645_s6] ss:$0 sm:$0xff] }
0x2bdc   :  { %v2739_v26 = vadd.f32 %v2737_v29, %v4549_v15 }
0x2bde   :  { %v2751_v27 = vmul.f32 0.125, %v2739_v26 }
0x2be0   :  { %2838 = vrot.lane.b32.xlu0 %v2751_v27, %s3944_s14  ;;  %v3046_v27 = vld [vmem:[#allocation10 + $0x60] sm:$0xff] }
0x2be1   :  { %v3564_v8 = vpack.c.bf16 %v3047_v47, %v3046_v27 }
0x2be4   :  { %1877 = vrot.lane.b32.xlu0 %v4451_v14, %s3943_s0 }
0x2be8   :  { %2167 = vrot.lane.b32.xlu0 %v4494_v28, %s3943_s0 }
0x2bec   :  { %2457 = vrot.lane.b32.xlu0 %v4534_v53, %s3943_s0 }
0x2bf0   :  { %2742 = vrot.lane.b32.xlu0 %v2737_v29, %s3944_s14 }
0x2bfd   :  { %v2734_v6 = vpop.permute.xlu0 %2733 }
0x2bfe   :  { %v2738_v15 = vmul.f32 %v3830_v42, %v2734_v6 }
0x2c00   :  { %v2740_v50 = vadd.f32 %v2738_v15, %v2595_v18 }
0x2c02   :  { %v2752_v58 = vmul.f32 0.125, %v2740_v50 }
0x2c04   :  { %2763 = vrot.lane.b32.xlu1 %v2752_v58, %s3944_s14 }
0x2c08   :  { %1732 = vrot.lane.b32.xlu1 %v4430_v38, %s3943_s0 }
0x2c0c   :  { %2022 = vrot.lane.b32.xlu1 %v4473_v16, %s3943_s0 }
0x2c10   :  { %2312 = vrot.lane.b32.xlu1 %v4514_v32, %s3943_s0 }
0x2c14   :  { %2602 = vrot.lane.b32.xlu1 %v4552_v43, %s3943_s0 }
0x2c18   :  { %2747 = vrot.lane.b32.xlu1 %v2738_v15, %s3943_s0 }
0x2c52   :  { %v2839_v14 = vpop.permute.xlu0 %2838 }
0x2c53   :  { %3372 = vmatmul.mubr.msk.f32.vlgmr.msra.gmra.mrb[48].mxu0 %vm256_vm1, %v2839_v14 }
0x2c54   :  { %3389 = vmatprep.mubr.msk.f32.mxu0 %vm3946_vm4, %v3942_v0  ;;  %3565 = vmatpush3.bf16.msra.mxu0 %v3564_v8 }
0x2c55   :  { %3392 = vmatprep.subr.mxu0 %v3942_v0 }
0x2c56   :  { %v1878_v28 = vpop.permute.xlu0 %1877 }
0x2c5a   :  { %v2168_v53 = vpop.permute.xlu0 %2167 }
0x2c5e   :  { %v2458_v38 = vpop.permute.xlu0 %2457 }
0x2c62   :  { %v2743_v32 = vpop.permute.xlu0 %2742 }
0x2c76   :  { %v2764_v44 = vpop.permute.xlu1 %2763 }
0x2c77   :  { %3361 = vmatmul.mubr.msk.f32.vlgmr.msra.gmra.mrb[48].mxu1 %vm256_vm1, %v2764_v44 }
0x2c78   :  { %3382 = vmatprep.mubr.msk.f32.mxu1 %vm3946_vm4, %v3942_v0  ;;  %3559 = vmatpush3.bf16.msra.mxu1 %v3558_v17  ;;  %v3328_v17 = vld [vmem:[%s4645_s6 + $0x2] ss:$0 sm:$0xff] }
0x2c79   :  { %3560 = vmatprep.subr.bf16.mxu1 %v3945_v1 }
0x2c7a   :  { %v1733_v16 = vpop.permute.xlu1 %1732 }
0x2c7c   :  { %3562 = vmatpush3.bf16.msra.mxu1 %v3561_v61 }
0x2c7e   :  { %v2023_v43 = vpop.permute.xlu1 %2022 }
0x2c82   :  { %v2313_v48 = vpop.permute.xlu1 %2312 }
0x2c86   :  { %v2603_v31 = vpop.permute.xlu1 %2602 }
0x2c8a   :  { %v2748_v49 = vpop.permute.xlu1 %2747 }
0x2d26   :  { %v2908_v62 = vpop.f32.mrb[48].mxu0 }
0x2d27   :  { %v3373_v45 = vpop.f32.mrb[49].mxu0 }
0x2d4a   :  { %v2833_v10 = vpop.f32.mrb[48].mxu1 }
0x2d4b   :  { %v2909_v39 = vadd.f32 %v2908_v62, %v2833_v10  ;;  %v3362_v9 = vpop.f32.mrb[49].mxu1 }
0x2d4d   :  { %v2916_v11 = vadd.f32 %v3325_v21, %v2909_v39 }
0x2d4f   :  { %v2918_v7 = vsel %vm2917_vm5, %v2916_v11, 0.0 }
0x2d50   :  { %v2919_v42 = vrot.slane %v2918_v7, 4 }
0x2d52   :  { %v2920_v4 = vadd.f32 %v2919_v42, %v2918_v7 }
0x2d54   :  { %v2921_v13 = vrot.slane %v2920_v4, 2 }
0x2d56   :  { %v2922_v56 = vadd.f32 %v2921_v13, %v2920_v4 }
0x2d58   :  { %v2923_v2 = vrot.slane %v2922_v56, 1 }
0x2d5a   :  { %v2924_v36 = vadd.f32 %v2923_v2, %v2922_v56 }
0x2d5c   :  { %v2926_v22 = vmul.f32 0.25, %v2924_v36 }
0x2d5e   :  { %v2927_v12 = vsub.f32 %v2916_v11, %v2926_v22 }
0x2d60   :  { %v2928_v23 = vmul.f32 %v2927_v12, %v2927_v12 }
0x2d62   :  { %v2929_v54 = vsel %vm2917_vm5, %v2928_v23, 0.0 }
0x2d63   :  { %v2930_v20 = vrot.slane %v2929_v54, 4 }
0x2d65   :  { %v2931_v24 = vadd.f32 %v2930_v20, %v2929_v54 }
0x2d67   :  { %v2932_v30 = vrot.slane %v2931_v24, 2 }
0x2d69   :  { %v2933_v60 = vadd.f32 %v2932_v30, %v2931_v24 }
0x2d6b   :  { %v2934_v1 = vrot.slane %v2933_v60, 1 }
0x2d6d   :  { %v2935_v41 = vadd.f32 %v2934_v1, %v2933_v60  ;;  %v3330_v60 = vld [vmem:[%s4645_s6 + $0x3] ss:$0 sm:$0xff] }
0x2d6f   :  { %v2936_v25 = vmul.f32 0.25, %v2935_v41 }
0x2d71   :  { %v2937_v5 = vadd.f32 1e-05, %v2936_v25 }
0x2d73   :  { %3835 = vrsqrt.f32 %v2937_v5 }
0x2d7d   :  { %v3836_v63 = vpop.eup %3835 }
0x2d7e   :  { %v2939_v29 = vmul.f32 %v3836_v63, %v2927_v12 }
0x2d80   :  { %v2940_v26 = vmax.f32 %v2939_v29, 0.0 }
0x2d82   :  { %3383 = vmatmul.mubr.msk.f32.vlgmr.msra.gmra.mrb[50].mxu1 %vm256_vm1, %v2940_v26 }
0x2e55   :  { %v3019_v33 = vpop.f32.mrb[50].mxu1 }
0x2e56   :  { %v3020_v34 = vadd.f32 %v3326_v57, %v3019_v33  ;;  %v3384_v52 = vpop.f32.mrb[51].mxu1 }
0x2e58   :  { %v3024_v35 = vsel %vm3023_vm6, %v3020_v34, 0.0 }
0x2e59   :  { %v3025_v37 = vrot.slane %v3024_v35, 4 }
0x2e5b   :  { %v3026_v59 = vadd.f32 %v3025_v37, %v3024_v35 }
0x2e5d   :  { %v3027_v40 = vrot.slane %v3026_v59, 2 }
0x2e5f   :  { %v3028_v3 = vadd.f32 %v3027_v40, %v3026_v59 }
0x2e61   :  { %v3029_v6 = vrot.slane %v3028_v3, 1 }
0x2e63   :  { %v3030_v18 = vadd.f32 %v3029_v6, %v3028_v3 }
0x2e65   :  { %v3031_v15 = vmul.f32 0.25, %v3030_v18 }
0x2e67   :  { %v3032_v50 = vsub.f32 %v3020_v34, %v3031_v15 }
0x2e69   :  { %v3033_v58 = vmul.f32 %v3032_v50, %v3032_v50 }
0x2e6b   :  { %v3034_v14 = vsel %vm3023_vm6, %v3033_v58, 0.0 }
0x2e6c   :  { %v3035_v28 = vrot.slane %v3034_v14, 4 }
0x2e6e   :  { %v3036_v53 = vadd.f32 %v3035_v28, %v3034_v14 }
0x2e70   :  { %v3037_v38 = vrot.slane %v3036_v53, 2 }
0x2e72   :  { %v3038_v44 = vadd.f32 %v3037_v38, %v3036_v53 }
0x2e74   :  { %v3039_v16 = vrot.slane %v3038_v44, 1 }
0x2e76   :  { %v3040_v32 = vadd.f32 %v3039_v16, %v3038_v44 }
0x2e78   :  { %v3041_v43 = vmul.f32 0.25, %v3040_v32 }
0x2e7a   :  { %v3042_v48 = vadd.f32 1e-05, %v3041_v43 }
0x2e7c   :  { %3837 = vrsqrt.f32 %v3042_v48 }
0x2e86   :  { %v3838_v31 = vpop.eup %3837 }
0x2e87   :  { %v3044_v49 = vmul.f32 %v3838_v31, %v3032_v50 }
0x2e89   :  { %v3045_v51 = vmax.f32 %v3044_v49, 0.0 }
0x2e8b   :  { %3390 = vmatmul.mubr.msk.f32.vlgmr.msra.gmra.mrb[50].mxu0 %vm100_vm0, %v3045_v51 }
0x2e8c   :  { %3394 = vmatprep.mubr.msk.f32.mxu0 %vm3946_vm4, %v3942_v0  ;;  %3393 = vmatpush3.msra.mxu0 %v3149_v46 }
0x2f5e   :  { %v3122_v19 = vpop.f32.mrb[50].mxu0 }
0x2f5f   :  { %v3123_v55 = vadd.f32 %v3328_v17, %v3122_v19  ;;  %v3391_v61 = vpop.f32.mrb[51].mxu0 }
0x2f61   :  { %v3127_v62 = vsel %vm3126_vm7, %v3123_v55, 0.0 }
0x2f62   :  { %v3128_v45 = vrot.slane %v3127_v62, 4 }
0x2f64   :  { %v3129_v21 = vadd.f32 %v3128_v45, %v3127_v62 }
0x2f66   :  { %v3130_v10 = vrot.slane %v3129_v21, 2 }
0x2f68   :  { %v3131_v39 = vadd.f32 %v3130_v10, %v3129_v21 }
0x2f6a   :  { %v3132_v9 = vrot.slane %v3131_v39, 1 }
0x2f6c   :  { %v3133_v11 = vadd.f32 %v3132_v9, %v3131_v39 }
0x2f6e   :  { %v3134_v7 = vmul.f32 0.25, %v3133_v11 }
0x2f70   :  { %v3135_v42 = vsub.f32 %v3123_v55, %v3134_v7 }
0x2f72   :  { %v3136_v0 = vmul.f32 %v3135_v42, %v3135_v42 }
0x2f74   :  { %v3137_v4 = vsel %vm3126_vm7, %v3136_v0, 0.0 }
0x2f75   :  { %v3138_v13 = vrot.slane %v3137_v4, 4 }
0x2f77   :  { %v3139_v56 = vadd.f32 %v3138_v13, %v3137_v4 }
0x2f79   :  { %v3140_v2 = vrot.slane %v3139_v56, 2 }
0x2f7b   :  { %v3141_v36 = vadd.f32 %v3140_v2, %v3139_v56 }
0x2f7d   :  { %v3142_v22 = vrot.slane %v3141_v36, 1 }
0x2f7f   :  { %v3143_v12 = vadd.f32 %v3142_v22, %v3141_v36 }
0x2f81   :  { %v3144_v23 = vmul.f32 0.25, %v3143_v12 }
0x2f83   :  { %v3145_v54 = vadd.f32 1e-05, %v3144_v23 }
0x2f85   :  { %3839 = vrsqrt.f32 %v3145_v54 }
0x2f8f   :  { %v3840_v20 = vpop.eup %3839 }
0x2f90   :  { %v3147_v24 = vmul.f32 %v3840_v20, %v3135_v42 }
0x2f92   :  { %v3148_v30 = vmax.f32 %v3147_v24, 0.0 }
0x2f94   :  { %3395 = vmatmul.mubr.msk.f32.vlgmr.msra.gmra.mrb[52].mxu0 %vm3155_vm8, %v3148_v30 }
0x3067   :  { %v3225_v1 = vpop.f32.mrb[52].mxu0 }
0x3068   :  { %v3226_v41 = vadd.f32 %v3330_v60, %v3225_v1  ;;  %v3396_v25 = vpop.f32.mrb[53].mxu0 }
0x306a   :  { %3229 = vst [vmem:[#allocation11] sm:$0xff] %v3226_v41 }
0x306b   :  { %3918 = shalt.err (!%p3915_p0)
}
0x306c   :  { %s3919_s28 = scalar_lea.hbm %s4646_s7, 128 }
0x306d   :  { %p3920_p1 = scmp.ne.s32.totalorder %s4646_s7, %s3919_s28  ;;  %p3923_p2 = scmp.lt.u32.totalorder %s3919_s28, %s4646_s7 }
0x306f   :  { %p3925_p3 = pnand %p3923_p2, %p3920_p1 }
0x3071   :  { %3928 = shalt.err (!%p3925_p3)
}
0x3072   :  { %3239 = dma.vmem_to_hbm [thread:$0]  %s3237_s1, 128, %s4646_s7, [#allocation7]  }
0x3073   :  { %3933 = dma.done.wait [#allocation7], 128  }
0x3074   :  { %3934 = vsyncadd [#allocation7], 4294967168 }
0x3075   :  { %3243 = vsyncpa [#allocation6], 1 }
0x3076   :  { %3244 = vsyncpa [#allocation9], 1 }
0x3077   :  { %3245 = vsyncpa [#allocation7], 1 }

</bundles_post_ra>
